<compile_context>
chip_gen: v6e
topology: v6e:2x2x1
jax: 0.10.0
libtpu: 0.0.40
codegen_flags: <defaults>
</compile_context>

<pallas_src>
import jax
import jax.numpy as jnp
from jax.experimental import pallas as pl
from jax.experimental.pallas import tpu as pltpu

PATCH = 4
IN_CH = 3
EMBED_DIM = 32          # swin-base uses 128; scaled down for the synthetic run
NUM_HEADS = 4
HEAD_DIM = EMBED_DIM // NUM_HEADS
MLP_RATIO = 4
MLP_HID = MLP_RATIO * EMBED_DIM
NUM_CLASSES = 6
LANES = 128
PADDED_PATCH = 64       # patch-token feature dim 48 zero-padded to 64 (lane-dense vld)
PADDED_CLASSES = 128    # lane-dense classifier width; real classes live in [:6]
NEG_PAD = -1e30         # bias for padded classes -> softmax mass ~0 there
EPS = 1e-5

# ---- packed weight-slab row offsets (bf16 matmul weights, 128 lanes each) ----
ROW_PE, ROW_QKV, ROW_PROJ, ROW_FC1, ROW_FC2, ROW_HEAD = 0, 64, 96, 128, 160, 288
W_ROWS = 320
# ---- packed f32 bias / LayerNorm slab rows (one row per tensor, 128 lanes) ----
(PR_B_PE, PR_LN0_G, PR_LN0_B, PR_LN1_G, PR_LN1_B, PR_B_QKV, PR_B_PROJ,
 PR_LN2_G, PR_LN2_B, PR_B_FC1, PR_B_FC2, PR_LN3_G, PR_LN3_B, PR_B_HEAD) = range(14)
PARAM_ROWS = 16


def _layernorm(x, g, b):
    mu = jnp.mean(x, axis=-1, keepdims=True)
    var = jnp.mean((x - mu) ** 2, axis=-1, keepdims=True)
    return (x - mu) * jax.lax.rsqrt(var + EPS) * g + b


def swin_kernel(patches_ref, w_ref, prm_ref, logits_ref, p_ref, attn_ref):
    TB, N, Ppad = patches_ref.shape
    D, H, Hd = EMBED_DIM, NUM_HEADS, HEAD_DIM
    M = TB * N

    def prow(r, width=LANES):
        return prm_ref[r:r + 1, 0:width]

    # all TB images' tokens as one [TB*N, Ppad] bf16 matrix (major-dim merge)
    x = patches_ref[...].reshape(M, Ppad)

    # ---- patch_embed: 4x4 stride-4 conv expressed as a matmul + LayerNorm ----
    w_pe = w_ref[ROW_PE:ROW_PE + PADDED_PATCH, 0:D]
    tok = jnp.dot(x, w_pe, preferred_element_type=jnp.float32) + prow(PR_B_PE, D)
    tok = _layernorm(tok, prow(PR_LN0_G, D), prow(PR_LN0_B, D))

    # ---- transformer block: window MSA (single window covers each image) ----
    h1 = _layernorm(tok, prow(PR_LN1_G, D), prow(PR_LN1_B, D)).astype(jnp.bfloat16)
    # fused qkv matmul against a lane-padded [D, 128] weight (96 real lanes);
    # 1/sqrt(head_dim) is pre-folded into the q portion by the wrapper.
    w_qkv = w_ref[ROW_QKV:ROW_QKV + D, :]
    qkv = jnp.dot(h1, w_qkv, preferred_element_type=jnp.float32) + prow(PR_B_QKV)

    def heads(mat):  # [M, D] f32 -> [TB*H, N, Hd] bf16 (collapsed batch dim)
        return (mat.reshape(TB, N, H, Hd)
                   .transpose(0, 2, 1, 3)
                   .reshape(TB * H, N, Hd)
                   .astype(jnp.bfloat16))

    qh = heads(qkv[:, 0:D])
    kh = heads(qkv[:, D:2 * D])
    vh = heads(qkv[:, 2 * D:3 * D])

    # one batched score matmul over all images * heads
    s = jnp.einsum('gnd,gmd->gnm', qh, kh, preferred_element_type=jnp.float32)
    s = s - jnp.max(s, axis=-1, keepdims=True)
    e = jnp.exp(s)
    a = e / jnp.sum(e, axis=-1, keepdims=True)        # exact: attn is returned
    # single lane-dense store of all heads' attention probabilities
    attn_ref[...] = a.reshape(TB, H, N * N)

    o = jnp.einsum('gnm,gmd->gnd', a.astype(jnp.bfloat16), vh,
                   preferred_element_type=jnp.float32)          # [TB*H, N, Hd]
    ao = o.reshape(TB, H, N, Hd).transpose(0, 2, 1, 3).reshape(M, D)
    w_proj = w_ref[ROW_PROJ:ROW_PROJ + D, 0:D]
    ao = jnp.dot(ao.astype(jnp.bfloat16), w_proj,
                 preferred_element_type=jnp.float32) + prow(PR_B_PROJ, D)
    tok = tok + ao

    # ---- MLP ----
    h2 = _layernorm(tok, prow(PR_LN2_G, D), prow(PR_LN2_B, D)).astype(jnp.bfloat16)
    w_fc1 = w_ref[ROW_FC1:ROW_FC1 + D, :]
    m = jnp.dot(h2, w_fc1, preferred_element_type=jnp.float32) + prow(PR_B_FC1)
    # TODO(synk): PyTorch nn.GELU defaults to exact erf; tanh approximation here.
    m = jax.nn.gelu(m)
    w_fc2 = w_ref[ROW_FC2:ROW_FC2 + MLP_HID, 0:D]
    m = jnp.dot(m.astype(jnp.bfloat16), w_fc2,
                preferred_element_type=jnp.float32) + prow(PR_B_FC2, D)
    tok = tok + m

    # ---- head: final LN, per-image mean pool, lane-padded linear, softmax ----
    hf = _layernorm(tok, prow(PR_LN3_G, D), prow(PR_LN3_B, D))
    pooled = jnp.mean(hf.reshape(TB, N, D), axis=1)                # [TB, D]
    w_head = w_ref[ROW_HEAD:ROW_HEAD + D, :]
    logits = jnp.dot(pooled.astype(jnp.bfloat16), w_head,
                     preferred_element_type=jnp.float32) + prow(PR_B_HEAD)
    logits_ref[...] = logits[:, None, :]                           # [TB, 1, 128]
    z = logits - jnp.max(logits, axis=-1, keepdims=True)
    ez = jnp.exp(z)
    p_ref[...] = (ez / jnp.sum(ez, axis=-1, keepdims=True))[:, None, :]  # exact


def to_patches(x):
    """[B, C, H, W] (NCHW) -> [B, N, P] patch tokens, P = ph*pw*C."""
    B, C, H, W = x.shape
    gh, gw = H // PATCH, W // PATCH
    x = x.reshape(B, C, gh, PATCH, gw, PATCH)
    x = x.transpose(0, 2, 4, 3, 5, 1)                 # [B, gh, gw, ph, pw, C]
    return x.reshape(B, gh * gw, PATCH * PATCH * C)


def init_params(key):
    D, P, C = EMBED_DIM, PATCH * PATCH * IN_CH, NUM_CLASSES
    Dm = MLP_HID
    ks = jax.random.split(key, 6)

    def w(k, shape):
        return (0.02 * jax.random.normal(k, shape)).astype(jnp.float32)

    zeros = lambda s: jnp.zeros(s, jnp.float32)
    ones = lambda s: jnp.ones(s, jnp.float32)

    return dict(
        w_pe=w(ks[0], (P, D)),       b_pe=zeros((1, D)),
        ln0_g=ones((1, D)),          ln0_b=zeros((1, D)),
        ln1_g=ones((1, D)),          ln1_b=zeros((1, D)),
        w_qkv=w(ks[1], (D, 3 * D)),  b_qkv=zeros((1, 3 * D)),
        w_proj=w(ks[2], (D, D)),     b_proj=zeros((1, D)),
        ln2_g=ones((1, D)),          ln2_b=zeros((1, D)),
        w_fc1=w(ks[3], (D, Dm)),     b_fc1=zeros((1, Dm)),
        w_fc2=w(ks[4], (Dm, D)),     b_fc2=zeros((1, D)),
        ln3_g=ones((1, D)),          ln3_b=zeros((1, D)),
        w_head=w(ks[5], (D, C)),     b_head=zeros((1, C)),
    )


def _prepare_slabs(params):
    """Pack all matmul weights into one bf16 [W_ROWS,128] slab (q-scale folded,
    patch dim zero-padded to 64, head lane-padded to 128) and all biases /
    LayerNorm params into one f32 [PARAM_ROWS,128] slab."""
    D = EMBED_DIM
    P = PATCH * PATCH * IN_CH
    scale = 1.0 / (HEAD_DIM ** 0.5)

    def lane_pad(a, fill=0.0):
        r, c = a.shape
        return jnp.pad(a, ((0, 0), (0, LANES - c)), constant_values=fill)

    w_qkv = jnp.concatenate([params["w_qkv"][:, :D] * scale,
                             params["w_qkv"][:, D:]], axis=-1)
    b_qkv = jnp.concatenate([params["b_qkv"][:, :D] * scale,
                             params["b_qkv"][:, D:]], axis=-1)
    w_pe = jnp.pad(params["w_pe"], ((0, PADDED_PATCH - P), (0, 0)))   # zero rows

    w_slab = jnp.concatenate([
        lane_pad(w_pe),               # ROW_PE   : 64 rows, 32 real lanes
        lane_pad(w_qkv),              # ROW_QKV  : 32 rows, 96 real lanes
        lane_pad(params["w_proj"]),   # ROW_PROJ : 32 rows, 32 real lanes
        lane_pad(params["w_fc1"]),    # ROW_FC1  : 32 rows, 128 real lanes
        lane_pad(params["w_fc2"]),    # ROW_FC2  : 128 rows, 32 real lanes
        lane_pad(params["w_head"]),   # ROW_HEAD : 32 rows, 6 real lanes
    ], axis=0).astype(jnp.bfloat16)

    b_head = jnp.full((1, PADDED_CLASSES), NEG_PAD, jnp.float32)
    b_head = b_head.at[:, :NUM_CLASSES].set(params["b_head"])

    rows = [params["b_pe"], params["ln0_g"], params["ln0_b"],
            params["ln1_g"], params["ln1_b"], b_qkv, params["b_proj"],
            params["ln2_g"], params["ln2_b"], params["b_fc1"], params["b_fc2"],
            params["ln3_g"], params["ln3_b"], b_head]
    prm_slab = jnp.concatenate([lane_pad(r.astype(jnp.float32)) for r in rows], axis=0)
    prm_slab = jnp.pad(prm_slab, ((0, PARAM_ROWS - prm_slab.shape[0]), (0, 0)))
    return w_slab, prm_slab


def _pick_batch_block(B, N, target_rows=2048):
    """Images per grid step so tokens-per-step approaches ~target_rows MXU rows.
    When the batch is large enough, cap TB so the grid has >=2 steps (v7x has
    two TensorCores; the "parallel" batch axis shards across them)."""
    tb = max(1, min(B, target_rows // max(N, 1)))
    if tb >= B and B > 1 and ((B + 1) // 2) * N >= 256:
        tb = (B + 1) // 2
    return tb


def _vmem_limit_bytes(TB, N):
    M, f32, bf16 = TB * N, 4, 2
    est = (2 * TB * N * PADDED_PATCH * bf16                          # dbl-buf patches
           + 2 * (W_ROWS * LANES * bf16 + PARAM_ROWS * LANES * f32)  # weight slabs
           + 2 * TB * (2 * PADDED_CLASSES + NUM_HEADS * N * N) * f32  # dbl-buf outputs
           + M * (10 * EMBED_DIM + 3 * MLP_HID + LANES) * f32        # f32 intermediates
           + 4 * TB * NUM_HEADS * N * N * f32)                       # scores / probs
    return int(min(60 << 20, max(32 << 20, 2 * est)))


@jax.jit
def swin_base_forward(x, params):
    patches = to_patches(x.astype(jnp.float32))
    B, N, P = patches.shape
    TB = _pick_batch_block(B, N)
    B_pad = -(-B // TB) * TB
    # bf16 host-side cast halves the only data-proportional DMA; P padded to 64
    patches = jnp.pad(patches, ((0, B_pad - B), (0, 0), (0, PADDED_PATCH - P)))
    patches = patches.astype(jnp.bfloat16)

    w_slab, prm_slab = _prepare_slabs(params)

    in_specs = [
        pl.BlockSpec((TB, N, PADDED_PATCH), lambda b: (b, 0, 0)),
        # constant index_map -> slabs stay VMEM-resident across grid steps
        pl.BlockSpec((W_ROWS, LANES), lambda b: (0, 0)),
        pl.BlockSpec((PARAM_ROWS, LANES), lambda b: (0, 0)),
    ]
    out_shape = (
        jax.ShapeDtypeStruct((B_pad, 1, PADDED_CLASSES), jnp.float32),      # logits (padded)
        jax.ShapeDtypeStruct((B_pad, 1, PADDED_CLASSES), jnp.float32),      # p (padded)
        jax.ShapeDtypeStruct((B_pad, NUM_HEADS, N * N), jnp.float32),       # attn (lane-dense)
    )
    out_specs = (
        pl.BlockSpec((TB, 1, PADDED_CLASSES), lambda b: (b, 0, 0)),
        pl.BlockSpec((TB, 1, PADDED_CLASSES), lambda b: (b, 0, 0)),
        pl.BlockSpec((TB, NUM_HEADS, N * N), lambda b: (b, 0, 0)),
    )

    logits_pad, p_pad, attn_flat = pl.pallas_call(
        swin_kernel,
        out_shape=out_shape,
        grid_spec=pltpu.PrefetchScalarGridSpec(
            num_scalar_prefetch=0,
            grid=(B_pad // TB,),
            in_specs=in_specs,
            out_specs=out_specs,
        ),
        compiler_params=pltpu.CompilerParams(
            dimension_semantics=("parallel",),
            vmem_limit_bytes=_vmem_limit_bytes(TB, N)),
    )(patches, w_slab, prm_slab)

    logits = logits_pad.reshape(B_pad, PADDED_CLASSES)[:B, :NUM_CLASSES]
    p = p_pad.reshape(B_pad, PADDED_CLASSES)[:B, :NUM_CLASSES]
    attn = attn_flat[:B].reshape(B, NUM_HEADS, N, N)
    return logits, p, attn


if __name__ == "__main__":
    key = jax.random.PRNGKey(0)
    kx, kp = jax.random.split(key)
    # small image consistent with the module: NCHW, 3 channels, 16x16 spatial
    x = jax.random.normal(kx, (2, IN_CH, 16, 16), dtype=jnp.float32)
    params = init_params(kp)

    logits, p, attn = swin_base_forward(x, params)
    jax.block_until_ready((logits, p, attn))

    assert logits.shape == (2, NUM_CLASSES)
    assert p.shape == (2, NUM_CLASSES)
    assert attn.shape == (2, NUM_HEADS, 16, 16)
    print("KERNEL_OK")
</pallas_src>

<mosaic_0001>
module attributes {stable_mosaic.version = 11 : i64} {
  func.func @swin_kernel(%arg0: i32, %arg1: memref<2x16x64xbf16, #tpu.memory_space<vmem>>, %arg2: memref<320x128xbf16, #tpu.memory_space<vmem>>, %arg3: memref<16x128xf32, #tpu.memory_space<vmem>>, %arg4: memref<2x1x128xf32, #tpu.memory_space<vmem>>, %arg5: memref<2x1x128xf32, #tpu.memory_space<vmem>>, %arg6: memref<2x4x256xf32, #tpu.memory_space<vmem>>) attributes {dimension_semantics = [#tpu.dimension_semantics<parallel>], iteration_bounds = array<i64: 1>, scalar_prefetch = 0 : i64, scratch_operands = 0 : i64, tpu.core_type = #tpu.core_type<tc>, window_params = [{transform_indices = @transform_0, window_bounds = array<i64: 2, 16, 64>}, {pipeline_mode = #tpu.pipeline_mode<synchronous>, transform_indices = @transform_1, window_bounds = array<i64: 320, 128>}, {pipeline_mode = #tpu.pipeline_mode<synchronous>, transform_indices = @transform_2, window_bounds = array<i64: 16, 128>}, {transform_indices = @transform_3, window_bounds = array<i64: 2, 1, 128>}, {transform_indices = @transform_4, window_bounds = array<i64: 2, 1, 128>}, {transform_indices = @transform_5, window_bounds = array<i64: 2, 4, 256>}]} {
    %c0 = arith.constant 0 : index
    %c0_0 = arith.constant 0 : index
    %c0_1 = arith.constant 0 : index
    %0 = vector.load %arg1[%c0, %c0_0, %c0_1] : memref<2x16x64xbf16, #tpu.memory_space<vmem>>, vector<2x16x64xbf16>
    %1 = vector.shape_cast %0 : vector<2x16x64xbf16> to vector<32x64xbf16>
    %c0_2 = arith.constant 0 : index
    %c0_3 = arith.constant 0 : index
    %2 = vector.load %arg2[%c0_2, %c0_3] : memref<320x128xbf16, #tpu.memory_space<vmem>>, vector<64x32xbf16>
    %cst = arith.constant dense<0.000000e+00> : vector<32x32xf32>
    %3 = tpu.matmul %1, %2, %cst {dimension_numbers = #tpu.dot_dimension_numbers<[1], [0], [0], [1], [0, 0, 1, 1], [], []>} : vector<32x64xbf16>, vector<64x32xbf16>, vector<32x32xf32> -> vector<32x32xf32>
    %c0_4 = arith.constant 0 : index
    %c0_5 = arith.constant 0 : index
    %4 = vector.load %arg3[%c0_4, %c0_5] : memref<16x128xf32, #tpu.memory_space<vmem>>, vector<1x32xf32>
    %5 = vector.broadcast %4 : vector<1x32xf32> to vector<32x32xf32>
    %6 = arith.addf %3, %5 : vector<32x32xf32>
    %c1 = arith.constant 1 : index
    %c0_6 = arith.constant 0 : index
    %7 = vector.load %arg3[%c1, %c0_6] : memref<16x128xf32, #tpu.memory_space<vmem>>, vector<1x32xf32>
    %c2 = arith.constant 2 : index
    %c0_7 = arith.constant 0 : index
    %8 = vector.load %arg3[%c2, %c0_7] : memref<16x128xf32, #tpu.memory_space<vmem>>, vector<1x32xf32>
    %cst_8 = arith.constant dense<0.000000e+00> : vector<32xf32>
    %9 = vector.multi_reduction <add>, %6, %cst_8 [1] : vector<32x32xf32> to vector<32xf32>
    %10 = vector.shape_cast %9 : vector<32xf32> to vector<32x1xf32>
    %cst_9 = arith.constant 3.200000e+01 : f32
    %11 = vector.broadcast %cst_9 : f32 to vector<32x1xf32>
    %12 = arith.divf %10, %11 : vector<32x1xf32>
    %13 = vector.broadcast %12 : vector<32x1xf32> to vector<32x32xf32>
    %14 = arith.subf %6, %13 : vector<32x32xf32>
    %15 = arith.mulf %14, %14 : vector<32x32xf32>
    %cst_10 = arith.constant dense<0.000000e+00> : vector<32xf32>
    %16 = vector.multi_reduction <add>, %15, %cst_10 [1] : vector<32x32xf32> to vector<32xf32>
    %17 = vector.shape_cast %16 : vector<32xf32> to vector<32x1xf32>
    %cst_11 = arith.constant 3.200000e+01 : f32
    %18 = vector.broadcast %cst_11 : f32 to vector<32x1xf32>
    %19 = arith.divf %17, %18 : vector<32x1xf32>
    %20 = vector.broadcast %12 : vector<32x1xf32> to vector<32x32xf32>
    %21 = arith.subf %6, %20 : vector<32x32xf32>
    %cst_12 = arith.constant 9.99999974E-6 : f32
    %22 = vector.broadcast %cst_12 : f32 to vector<32x1xf32>
    %23 = arith.addf %19, %22 : vector<32x1xf32>
    %24 = math.rsqrt %23 : vector<32x1xf32>
    %25 = vector.broadcast %24 : vector<32x1xf32> to vector<32x32xf32>
    %26 = arith.mulf %21, %25 : vector<32x32xf32>
    %27 = vector.broadcast %7 : vector<1x32xf32> to vector<32x32xf32>
    %28 = arith.mulf %26, %27 : vector<32x32xf32>
    %29 = vector.broadcast %8 : vector<1x32xf32> to vector<32x32xf32>
    %30 = arith.addf %28, %29 : vector<32x32xf32>
    %c3 = arith.constant 3 : index
    %c0_13 = arith.constant 0 : index
    %31 = vector.load %arg3[%c3, %c0_13] : memref<16x128xf32, #tpu.memory_space<vmem>>, vector<1x32xf32>
    %c4 = arith.constant 4 : index
    %c0_14 = arith.constant 0 : index
    %32 = vector.load %arg3[%c4, %c0_14] : memref<16x128xf32, #tpu.memory_space<vmem>>, vector<1x32xf32>
    %cst_15 = arith.constant dense<0.000000e+00> : vector<32xf32>
    %33 = vector.multi_reduction <add>, %30, %cst_15 [1] : vector<32x32xf32> to vector<32xf32>
    %34 = vector.shape_cast %33 : vector<32xf32> to vector<32x1xf32>
    %cst_16 = arith.constant 3.200000e+01 : f32
    %35 = vector.broadcast %cst_16 : f32 to vector<32x1xf32>
    %36 = arith.divf %34, %35 : vector<32x1xf32>
    %37 = vector.broadcast %36 : vector<32x1xf32> to vector<32x32xf32>
    %38 = arith.subf %30, %37 : vector<32x32xf32>
    %39 = arith.mulf %38, %38 : vector<32x32xf32>
    %cst_17 = arith.constant dense<0.000000e+00> : vector<32xf32>
    %40 = vector.multi_reduction <add>, %39, %cst_17 [1] : vector<32x32xf32> to vector<32xf32>
    %41 = vector.shape_cast %40 : vector<32xf32> to vector<32x1xf32>
    %cst_18 = arith.constant 3.200000e+01 : f32
    %42 = vector.broadcast %cst_18 : f32 to vector<32x1xf32>
    %43 = arith.divf %41, %42 : vector<32x1xf32>
    %44 = vector.broadcast %36 : vector<32x1xf32> to vector<32x32xf32>
    %45 = arith.subf %30, %44 : vector<32x32xf32>
    %cst_19 = arith.constant 9.99999974E-6 : f32
    %46 = vector.broadcast %cst_19 : f32 to vector<32x1xf32>
    %47 = arith.addf %43, %46 : vector<32x1xf32>
    %48 = math.rsqrt %47 : vector<32x1xf32>
    %49 = vector.broadcast %48 : vector<32x1xf32> to vector<32x32xf32>
    %50 = arith.mulf %45, %49 : vector<32x32xf32>
    %51 = vector.broadcast %31 : vector<1x32xf32> to vector<32x32xf32>
    %52 = arith.mulf %50, %51 : vector<32x32xf32>
    %53 = vector.broadcast %32 : vector<1x32xf32> to vector<32x32xf32>
    %54 = arith.addf %52, %53 : vector<32x32xf32>
    %55 = arith.truncf %54 : vector<32x32xf32> to vector<32x32xbf16>
    %c64 = arith.constant 64 : index
    %c0_20 = arith.constant 0 : index
    %56 = vector.load %arg2[%c64, %c0_20] : memref<320x128xbf16, #tpu.memory_space<vmem>>, vector<32x128xbf16>
    %cst_21 = arith.constant dense<0.000000e+00> : vector<32x128xf32>
    %57 = tpu.matmul %55, %56, %cst_21 {dimension_numbers = #tpu.dot_dimension_numbers<[1], [0], [0], [1], [0, 0, 1, 1], [], []>} : vector<32x32xbf16>, vector<32x128xbf16>, vector<32x128xf32> -> vector<32x128xf32>
    %c5 = arith.constant 5 : index
    %c0_22 = arith.constant 0 : index
    %58 = vector.load %arg3[%c5, %c0_22] : memref<16x128xf32, #tpu.memory_space<vmem>>, vector<1x128xf32>
    %59 = vector.broadcast %58 : vector<1x128xf32> to vector<32x128xf32>
    %60 = arith.addf %57, %59 : vector<32x128xf32>
    %61 = vector.extract_strided_slice %60 {offsets = [0, 0], sizes = [32, 32], strides = [1, 1]} : vector<32x128xf32> to vector<32x32xf32>
    %62 = vector.shape_cast %61 : vector<32x32xf32> to vector<2x16x4x8xf32>
    %63 = tpu.transpose %62, [0, 2, 1, 3] : vector<2x16x4x8xf32> -> vector<2x4x16x8xf32>
    %64 = vector.shape_cast %63 : vector<2x4x16x8xf32> to vector<8x16x8xf32>
    %65 = arith.truncf %64 : vector<8x16x8xf32> to vector<8x16x8xbf16>
    %66 = vector.extract_strided_slice %60 {offsets = [0, 32], sizes = [32, 32], strides = [1, 1]} : vector<32x128xf32> to vector<32x32xf32>
    %67 = vector.shape_cast %66 : vector<32x32xf32> to vector<2x16x4x8xf32>
    %68 = tpu.transpose %67, [0, 2, 1, 3] : vector<2x16x4x8xf32> -> vector<2x4x16x8xf32>
    %69 = vector.shape_cast %68 : vector<2x4x16x8xf32> to vector<8x16x8xf32>
    %70 = arith.truncf %69 : vector<8x16x8xf32> to vector<8x16x8xbf16>
    %71 = vector.extract_strided_slice %60 {offsets = [0, 64], sizes = [32, 32], strides = [1, 1]} : vector<32x128xf32> to vector<32x32xf32>
    %72 = vector.shape_cast %71 : vector<32x32xf32> to vector<2x16x4x8xf32>
    %73 = tpu.transpose %72, [0, 2, 1, 3] : vector<2x16x4x8xf32> -> vector<2x4x16x8xf32>
    %74 = vector.shape_cast %73 : vector<2x4x16x8xf32> to vector<8x16x8xf32>
    %75 = arith.truncf %74 : vector<8x16x8xf32> to vector<8x16x8xbf16>
    "tpu.trace_start"() <{level = 10 : i32, message = "gnd,gmd->gnm"}> : () -> ()
    %cst_23 = arith.constant dense<0.000000e+00> : vector<8x16x16xf32>
    %76 = tpu.matmul %65, %70, %cst_23 {dimension_numbers = #tpu.dot_dimension_numbers<[2], [2], [1], [1], [0, 0, 0, 1, 1, 1], [0], [0]>} : vector<8x16x8xbf16>, vector<8x16x8xbf16>, vector<8x16x16xf32> -> vector<8x16x16xf32>
    "tpu.trace_stop"() : () -> ()
    %cst_24 = arith.constant dense<0xFF800000> : vector<8x16xf32>
    %77 = vector.multi_reduction <maximumf>, %76, %cst_24 [2] : vector<8x16x16xf32> to vector<8x16xf32>
    %78 = vector.shape_cast %77 : vector<8x16xf32> to vector<8x16x1xf32>
    %79 = vector.broadcast %78 : vector<8x16x1xf32> to vector<8x16x16xf32>
    %80 = arith.subf %76, %79 : vector<8x16x16xf32>
    %81 = math.exp %80 : vector<8x16x16xf32>
    %cst_25 = arith.constant dense<0.000000e+00> : vector<8x16xf32>
    %82 = vector.multi_reduction <add>, %81, %cst_25 [2] : vector<8x16x16xf32> to vector<8x16xf32>
    %83 = vector.shape_cast %82 : vector<8x16xf32> to vector<8x16x1xf32>
    %84 = vector.broadcast %83 : vector<8x16x1xf32> to vector<8x16x16xf32>
    %85 = arith.divf %81, %84 : vector<8x16x16xf32>
    %86 = vector.shape_cast %85 : vector<8x16x16xf32> to vector<2x4x256xf32>
    %c0_26 = arith.constant 0 : index
    %c0_27 = arith.constant 0 : index
    %c0_28 = arith.constant 0 : index
    %87 = vector.load %arg6[%c0_26, %c0_27, %c0_28] : memref<2x4x256xf32, #tpu.memory_space<vmem>>, vector<2x4x256xf32>
    tpu.vector_store %arg6[%c0_26, %c0_27, %c0_28], %86 {strides = array<i32>} : memref<2x4x256xf32, #tpu.memory_space<vmem>>, vector<2x4x256xf32>,
    %88 = arith.truncf %85 : vector<8x16x16xf32> to vector<8x16x16xbf16>
    "tpu.trace_start"() <{level = 10 : i32, message = "gnm,gmd->gnd"}> : () -> ()
    %cst_29 = arith.constant dense<0.000000e+00> : vector<8x16x8xf32>
    %89 = tpu.matmul %88, %75, %cst_29 {dimension_numbers = #tpu.dot_dimension_numbers<[2], [1], [1], [2], [0, 0, 0, 1, 1, 2], [0], [0]>} : vector<8x16x16xbf16>, vector<8x16x8xbf16>, vector<8x16x8xf32> -> vector<8x16x8xf32>
    "tpu.trace_stop"() : () -> ()
    %90 = vector.shape_cast %89 : vector<8x16x8xf32> to vector<2x4x16x8xf32>
    %91 = tpu.transpose %90, [0, 2, 1, 3] : vector<2x4x16x8xf32> -> vector<2x16x4x8xf32>
    %92 = vector.shape_cast %91 : vector<2x16x4x8xf32> to vector<32x32xf32>
    %c96 = arith.constant 96 : index
    %c0_30 = arith.constant 0 : index
    %93 = vector.load %arg2[%c96, %c0_30] : memref<320x128xbf16, #tpu.memory_space<vmem>>, vector<32x32xbf16>
    %94 = arith.truncf %92 : vector<32x32xf32> to vector<32x32xbf16>
    %cst_31 = arith.constant dense<0.000000e+00> : vector<32x32xf32>
    %95 = tpu.matmul %94, %93, %cst_31 {dimension_numbers = #tpu.dot_dimension_numbers<[1], [0], [0], [1], [0, 0, 1, 1], [], []>} : vector<32x32xbf16>, vector<32x32xbf16>, vector<32x32xf32> -> vector<32x32xf32>
    %c6 = arith.constant 6 : index
    %c0_32 = arith.constant 0 : index
    %96 = vector.load %arg3[%c6, %c0_32] : memref<16x128xf32, #tpu.memory_space<vmem>>, vector<1x32xf32>
    %97 = vector.broadcast %96 : vector<1x32xf32> to vector<32x32xf32>
    %98 = arith.addf %95, %97 : vector<32x32xf32>
    %99 = arith.addf %30, %98 : vector<32x32xf32>
    %c7 = arith.constant 7 : index
    %c0_33 = arith.constant 0 : index
    %100 = vector.load %arg3[%c7, %c0_33] : memref<16x128xf32, #tpu.memory_space<vmem>>, vector<1x32xf32>
    %c8 = arith.constant 8 : index
    %c0_34 = arith.constant 0 : index
    %101 = vector.load %arg3[%c8, %c0_34] : memref<16x128xf32, #tpu.memory_space<vmem>>, vector<1x32xf32>
    %cst_35 = arith.constant dense<0.000000e+00> : vector<32xf32>
    %102 = vector.multi_reduction <add>, %99, %cst_35 [1] : vector<32x32xf32> to vector<32xf32>
    %103 = vector.shape_cast %102 : vector<32xf32> to vector<32x1xf32>
    %cst_36 = arith.constant 3.200000e+01 : f32
    %104 = vector.broadcast %cst_36 : f32 to vector<32x1xf32>
    %105 = arith.divf %103, %104 : vector<32x1xf32>
    %106 = vector.broadcast %105 : vector<32x1xf32> to vector<32x32xf32>
    %107 = arith.subf %99, %106 : vector<32x32xf32>
    %108 = arith.mulf %107, %107 : vector<32x32xf32>
    %cst_37 = arith.constant dense<0.000000e+00> : vector<32xf32>
    %109 = vector.multi_reduction <add>, %108, %cst_37 [1] : vector<32x32xf32> to vector<32xf32>
    %110 = vector.shape_cast %109 : vector<32xf32> to vector<32x1xf32>
    %cst_38 = arith.constant 3.200000e+01 : f32
    %111 = vector.broadcast %cst_38 : f32 to vector<32x1xf32>
    %112 = arith.divf %110, %111 : vector<32x1xf32>
    %113 = vector.broadcast %105 : vector<32x1xf32> to vector<32x32xf32>
    %114 = arith.subf %99, %113 : vector<32x32xf32>
    %cst_39 = arith.constant 9.99999974E-6 : f32
    %115 = vector.broadcast %cst_39 : f32 to vector<32x1xf32>
    %116 = arith.addf %112, %115 : vector<32x1xf32>
    %117 = math.rsqrt %116 : vector<32x1xf32>
    %118 = vector.broadcast %117 : vector<32x1xf32> to vector<32x32xf32>
    %119 = arith.mulf %114, %118 : vector<32x32xf32>
    %120 = vector.broadcast %100 : vector<1x32xf32> to vector<32x32xf32>
    %121 = arith.mulf %119, %120 : vector<32x32xf32>
    %122 = vector.broadcast %101 : vector<1x32xf32> to vector<32x32xf32>
    %123 = arith.addf %121, %122 : vector<32x32xf32>
    %124 = arith.truncf %123 : vector<32x32xf32> to vector<32x32xbf16>
    %c128 = arith.constant 128 : index
    %c0_40 = arith.constant 0 : index
    %125 = vector.load %arg2[%c128, %c0_40] : memref<320x128xbf16, #tpu.memory_space<vmem>>, vector<32x128xbf16>
    %cst_41 = arith.constant dense<0.000000e+00> : vector<32x128xf32>
    %126 = tpu.matmul %124, %125, %cst_41 {dimension_numbers = #tpu.dot_dimension_numbers<[1], [0], [0], [1], [0, 0, 1, 1], [], []>} : vector<32x32xbf16>, vector<32x128xbf16>, vector<32x128xf32> -> vector<32x128xf32>
    %c9 = arith.constant 9 : index
    %c0_42 = arith.constant 0 : index
    %127 = vector.load %arg3[%c9, %c0_42] : memref<16x128xf32, #tpu.memory_space<vmem>>, vector<1x128xf32>
    %128 = vector.broadcast %127 : vector<1x128xf32> to vector<32x128xf32>
    %129 = arith.addf %126, %128 : vector<32x128xf32>
    %130 = arith.mulf %129, %129 : vector<32x128xf32>
    %131 = arith.mulf %129, %130 : vector<32x128xf32>
    %cst_43 = arith.constant 4.471500e-02 : f32
    %132 = vector.broadcast %cst_43 : f32 to vector<32x128xf32>
    %133 = arith.mulf %132, %131 : vector<32x128xf32>
    %134 = arith.addf %129, %133 : vector<32x128xf32>
    %cst_44 = arith.constant 0.797884583 : f32
    %135 = vector.broadcast %cst_44 : f32 to vector<32x128xf32>
    %136 = arith.mulf %135, %134 : vector<32x128xf32>
    %137 = math.tanh %136 : vector<32x128xf32>
    %cst_45 = arith.constant 1.000000e+00 : f32
    %138 = vector.broadcast %cst_45 : f32 to vector<32x128xf32>
    %139 = arith.addf %138, %137 : vector<32x128xf32>
    %cst_46 = arith.constant 5.000000e-01 : f32
    %140 = vector.broadcast %cst_46 : f32 to vector<32x128xf32>
    %141 = arith.mulf %140, %139 : vector<32x128xf32>
    %142 = arith.mulf %129, %141 : vector<32x128xf32>
    %c160 = arith.constant 160 : index
    %c0_47 = arith.constant 0 : index
    %143 = vector.load %arg2[%c160, %c0_47] : memref<320x128xbf16, #tpu.memory_space<vmem>>, vector<128x32xbf16>
    %144 = arith.truncf %142 : vector<32x128xf32> to vector<32x128xbf16>
    %cst_48 = arith.constant dense<0.000000e+00> : vector<32x32xf32>
    %145 = tpu.matmul %144, %143, %cst_48 {dimension_numbers = #tpu.dot_dimension_numbers<[1], [0], [0], [1], [0, 0, 1, 1], [], []>} : vector<32x128xbf16>, vector<128x32xbf16>, vector<32x32xf32> -> vector<32x32xf32>
    %c10 = arith.constant 10 : index
    %c0_49 = arith.constant 0 : index
    %146 = vector.load %arg3[%c10, %c0_49] : memref<16x128xf32, #tpu.memory_space<vmem>>, vector<1x32xf32>
    %147 = vector.broadcast %146 : vector<1x32xf32> to vector<32x32xf32>
    %148 = arith.addf %145, %147 : vector<32x32xf32>
    %149 = arith.addf %99, %148 : vector<32x32xf32>
    %c11 = arith.constant 11 : index
    %c0_50 = arith.constant 0 : index
    %150 = vector.load %arg3[%c11, %c0_50] : memref<16x128xf32, #tpu.memory_space<vmem>>, vector<1x32xf32>
    %c12 = arith.constant 12 : index
    %c0_51 = arith.constant 0 : index
    %151 = vector.load %arg3[%c12, %c0_51] : memref<16x128xf32, #tpu.memory_space<vmem>>, vector<1x32xf32>
    %cst_52 = arith.constant dense<0.000000e+00> : vector<32xf32>
    %152 = vector.multi_reduction <add>, %149, %cst_52 [1] : vector<32x32xf32> to vector<32xf32>
    %153 = vector.shape_cast %152 : vector<32xf32> to vector<32x1xf32>
    %cst_53 = arith.constant 3.200000e+01 : f32
    %154 = vector.broadcast %cst_53 : f32 to vector<32x1xf32>
    %155 = arith.divf %153, %154 : vector<32x1xf32>
    %156 = vector.broadcast %155 : vector<32x1xf32> to vector<32x32xf32>
    %157 = arith.subf %149, %156 : vector<32x32xf32>
    %158 = arith.mulf %157, %157 : vector<32x32xf32>
    %cst_54 = arith.constant dense<0.000000e+00> : vector<32xf32>
    %159 = vector.multi_reduction <add>, %158, %cst_54 [1] : vector<32x32xf32> to vector<32xf32>
    %160 = vector.shape_cast %159 : vector<32xf32> to vector<32x1xf32>
    %cst_55 = arith.constant 3.200000e+01 : f32
    %161 = vector.broadcast %cst_55 : f32 to vector<32x1xf32>
    %162 = arith.divf %160, %161 : vector<32x1xf32>
    %163 = vector.broadcast %155 : vector<32x1xf32> to vector<32x32xf32>
    %164 = arith.subf %149, %163 : vector<32x32xf32>
    %cst_56 = arith.constant 9.99999974E-6 : f32
    %165 = vector.broadcast %cst_56 : f32 to vector<32x1xf32>
    %166 = arith.addf %162, %165 : vector<32x1xf32>
    %167 = math.rsqrt %166 : vector<32x1xf32>
    %168 = vector.broadcast %167 : vector<32x1xf32> to vector<32x32xf32>
    %169 = arith.mulf %164, %168 : vector<32x32xf32>
    %170 = vector.broadcast %150 : vector<1x32xf32> to vector<32x32xf32>
    %171 = arith.mulf %169, %170 : vector<32x32xf32>
    %172 = vector.broadcast %151 : vector<1x32xf32> to vector<32x32xf32>
    %173 = arith.addf %171, %172 : vector<32x32xf32>
    %174 = vector.shape_cast %173 : vector<32x32xf32> to vector<2x16x32xf32>
    %cst_57 = arith.constant dense<0.000000e+00> : vector<2x32xf32>
    %175 = vector.multi_reduction <add>, %174, %cst_57 [1] : vector<2x16x32xf32> to vector<2x32xf32>
    %cst_58 = arith.constant 1.600000e+01 : f32
    %176 = vector.broadcast %cst_58 : f32 to vector<2x32xf32>
    %177 = arith.divf %175, %176 : vector<2x32xf32>
    %c288 = arith.constant 288 : index
    %c0_59 = arith.constant 0 : index
    %178 = vector.load %arg2[%c288, %c0_59] : memref<320x128xbf16, #tpu.memory_space<vmem>>, vector<32x128xbf16>
    %179 = arith.truncf %177 : vector<2x32xf32> to vector<2x32xbf16>
    %cst_60 = arith.constant dense<0.000000e+00> : vector<2x128xf32>
    %180 = tpu.matmul %179, %178, %cst_60 {dimension_numbers = #tpu.dot_dimension_numbers<[1], [0], [0], [1], [0, 0, 1, 1], [], []>} : vector<2x32xbf16>, vector<32x128xbf16>, vector<2x128xf32> -> vector<2x128xf32>
    %c13 = arith.constant 13 : index
    %c0_61 = arith.constant 0 : index
    %181 = vector.load %arg3[%c13, %c0_61] : memref<16x128xf32, #tpu.memory_space<vmem>>, vector<1x128xf32>
    %182 = vector.broadcast %181 : vector<1x128xf32> to vector<2x128xf32>
    %183 = arith.addf %180, %182 : vector<2x128xf32>
    %184 = vector.shape_cast %183 : vector<2x128xf32> to vector<2x1x128xf32>
    %c0_62 = arith.constant 0 : index
    %c0_63 = arith.constant 0 : index
    %c0_64 = arith.constant 0 : index
    %185 = vector.load %arg4[%c0_62, %c0_63, %c0_64] : memref<2x1x128xf32, #tpu.memory_space<vmem>>, vector<2x1x128xf32>
    tpu.vector_store %arg4[%c0_62, %c0_63, %c0_64], %184 {strides = array<i32>} : memref<2x1x128xf32, #tpu.memory_space<vmem>>, vector<2x1x128xf32>,
    %cst_65 = arith.constant dense<0xFF800000> : vector<2xf32>
    %186 = vector.multi_reduction <maximumf>, %183, %cst_65 [1] : vector<2x128xf32> to vector<2xf32>
    %187 = vector.shape_cast %186 : vector<2xf32> to vector<2x1xf32>
    %188 = vector.broadcast %187 : vector<2x1xf32> to vector<2x128xf32>
    %189 = arith.subf %183, %188 : vector<2x128xf32>
    %190 = math.exp %189 : vector<2x128xf32>
    %cst_66 = arith.constant dense<0.000000e+00> : vector<2xf32>
    %191 = vector.multi_reduction <add>, %190, %cst_66 [1] : vector<2x128xf32> to vector<2xf32>
    %192 = vector.shape_cast %191 : vector<2xf32> to vector<2x1xf32>
    %193 = vector.broadcast %192 : vector<2x1xf32> to vector<2x128xf32>
    %194 = arith.divf %190, %193 : vector<2x128xf32>
    %195 = vector.shape_cast %194 : vector<2x128xf32> to vector<2x1x128xf32>
    %c0_67 = arith.constant 0 : index
    %c0_68 = arith.constant 0 : index
    %c0_69 = arith.constant 0 : index
    %196 = vector.load %arg5[%c0_67, %c0_68, %c0_69] : memref<2x1x128xf32, #tpu.memory_space<vmem>>, vector<2x1x128xf32>
    tpu.vector_store %arg5[%c0_67, %c0_68, %c0_69], %195 {strides = array<i32>} : memref<2x1x128xf32, #tpu.memory_space<vmem>>, vector<2x1x128xf32>,
    return
  }
  func.func @transform_0(%arg0: i32) -> (i32, i32, i32) {
    %c0_i32 = arith.constant 0 : i32
    %c0_i32_0 = arith.constant 0 : i32
    %c0_i32_1 = arith.constant 0 : i32
    return %arg0, %c0_i32, %c0_i32_0 : i32, i32, i32
  }
  func.func @transform_1(%arg0: i32) -> (i32, i32) {
    %c0_i32 = arith.constant 0 : i32
    %c0_i32_0 = arith.constant 0 : i32
    %c0_i32_1 = arith.constant 0 : i32
    return %c0_i32, %c0_i32_0 : i32, i32
  }
  func.func @transform_2(%arg0: i32) -> (i32, i32) {
    %c0_i32 = arith.constant 0 : i32
    %c0_i32_0 = arith.constant 0 : i32
    %c0_i32_1 = arith.constant 0 : i32
    return %c0_i32, %c0_i32_0 : i32, i32
  }
  func.func @transform_3(%arg0: i32) -> (i32, i32, i32) {
    %c0_i32 = arith.constant 0 : i32
    %c0_i32_0 = arith.constant 0 : i32
    %c0_i32_1 = arith.constant 0 : i32
    return %arg0, %c0_i32, %c0_i32_0 : i32, i32, i32
  }
  func.func @transform_4(%arg0: i32) -> (i32, i32, i32) {
    %c0_i32 = arith.constant 0 : i32
    %c0_i32_0 = arith.constant 0 : i32
    %c0_i32_1 = arith.constant 0 : i32
    return %arg0, %c0_i32, %c0_i32_0 : i32, i32, i32
  }
  func.func @transform_5(%arg0: i32) -> (i32, i32, i32) {
    %c0_i32 = arith.constant 0 : i32
    %c0_i32_0 = arith.constant 0 : i32
    %c0_i32_1 = arith.constant 0 : i32
    return %arg0, %c0_i32, %c0_i32_0 : i32, i32, i32
  }
}

</mosaic_0001>

<bundles_post_ra>
// kernel: swin_base_forward.1
= control target key start
LH: loop header
LB: loop body
LE: loop exit
PB: predicated region body
PF: predicated region fallthrough
CT: control target
= control target key end

     0   :  { %11 = vsyncpa [#allocation3], 0  ;;  %vm71_vm0 = vcmask 523264   ;;  %s6765_s0 = inlined_call_operand.vmem [shape: bf16[2,16,64], index: 0, kind: input, shape index: {}]   ;;  %s6766_s1 = inlined_call_operand.vmem [shape: bf16[320,128], index: 1, kind: input, shape index: {}]   ;;  %s6767_s2 = inlined_call_operand.vmem [shape: f32[16,128], index: 2, kind: input, shape index: {}]   ;;  %s6768_s3 = inlined_call_operand.hbm [shape: f32[2,1,128], index: 3, kind: output, shape index: {0}]   ;;  %s6769_s4 = inlined_call_operand.hbm [shape: f32[2,1,128], index: 4, kind: output, shape index: {1}]   ;;  %s6770_s5 = inlined_call_operand.vmem [shape: f32[2,4,256], index: 5, kind: output, shape index: {2}]  }
   0x1   :  { %v5109_v0 = vld [vmem:[%s6766_s1 + $0x18] sm:$0xff]   ;;  %v5110_v1 = vld [vmem:[%s6766_s1 + $0x10] sm:$0xff]   ;;  %v5111_v2 = vld [vmem:[%s6766_s1 + $0x8] sm:$0xff]  }
   0x2   :  { %4900 = vmatprep.subr.bf16.mxu0 %v5109_v0  ;;  %v5113_v3 = vld [vmem:[%s6765_s0] sm:$0xff]   ;;  %v5114_v5 = vld [vmem:[%s6765_s0 + $0x8] sm:$0xff]  }
   0x3   :  { %4901 = vmatpush3.bf16.msra.mxu0 %v5109_v0  ;;  %v5112_v4 = vld [vmem:[%s6766_s1] sm:$0xff]   ;;  %4908 = vmatprep.mubr.msk.bf16.mxu0 %vm71_vm0, %v5113_v3 }
   0x4   :  { %4902 = vmatprep.subr.bf16.mxu0 %v5110_v1 }
   0x7   :  { %4903 = vmatpush3.bf16.msra.mxu0 %v5110_v1 }
   0x8   :  { %4904 = vmatprep.subr.bf16.mxu0 %v5111_v2 }
   0xb   :  { %4905 = vmatpush3.bf16.msra.mxu0 %v5111_v2 }
   0xc   :  { %4906 = vmatprep.subr.bf16.mxu0 %v5112_v4 }
   0xf   :  { %4907 = vmatpush3.bf16.msra.mxu0 %v5112_v4 }
  0x10   :  { %12 = vsyncpa [#allocation5], 0  ;;  %v4740_v6 = vld [vmem:[%s6767_s2] ss:$0 sm:$0xff]  ;;  %vm129_vm1 = vcmask 261120   ;;  %s5283_s20 = smov 112  }
  0x11   :  { %v4749_v52 = vld [vmem:[%s6767_s2 + $0x1] ss:$0 sm:$0xff]  ;;  %v4750_v54 = vld [vmem:[%s6767_s2 + $0x2] ss:$0 sm:$0xff]  ;;  %s5284_s21 = smov 120   ;;  %s5285_s22 = smov 104  }
  0x12   :  { %4909 = vmatmul.mubr.msk.bf16.vlgmr.msra.gmra.mxu0 %vm71_vm0, %v5114_v5  ;;  %s5286_s23 = smov 96   ;;  %s5288_s24 = smov 64   ;;  %vm5289_vm2 = vmmov 0   ;;  %vm2139_vm3 = vcmask 64512   ;;  %vm2516_vm4 = vcmask 130048   ;;  %vm4079_vm5 = vcmask 195584  }
  0x13   :  { %s5292_s25 = smov 16   ;;  %s5293_s26 = smov 8   ;;  %vm4580_vm6 = vcmask 1041409   ;;  %vm4665_vm7 = vcmask 1041408  }
  0x14   :  { %s5294_s27 = smov 24   ;;  %s5295_s14 = smov 32  }
  0x15   :  { %s5296_s15 = smov 48   ;;  %s5297_s18 = smov 80  }
  0xd2   :  { %v4910_v7 = vpop.f32.mrf.mxu0 }
  0xd3   :  { %v121_v8 = vadd.f32 %v4910_v7, %v4740_v6 }
  0xd4   :  { %v112_v9 = vpop.f32.mrf.mxu0 }
  0xd5   :  { %v113_v10 = vadd.f32 %v4740_v6, %v112_v9  ;;  %v136_v11 = vsel %vm129_vm1, %v121_v8, 0.0 }
  0xd6   :  { %137 = vadd.xlane.f32.xlu1 %v136_v11  ;;  %v4911_v12 = vpop.f32.mrf.mxu0 }
  0xd7   :  { %v124_v13 = vadd.f32 %v4911_v12, %v4740_v6  ;;  %v130_v14 = vsel %vm129_vm1, %v113_v10, 0.0 }
  0xd8   :  { %v115_v15 = vpop.f32.mrf.mxu0  ;;  %131 = vadd.xlane.f32.xlu0 %v130_v14 }
  0xd9   :  { %v116_v16 = vadd.f32 %v4740_v6, %v115_v15  ;;  %v139_v17 = vsel %vm129_vm1, %v124_v13, 0.0 }
  0xda   :  { %140 = vadd.xlane.f32.xlu1 %v139_v17 }
  0xdb   :  { %v133_v18 = vsel %vm129_vm1, %v116_v16, 0.0 }
  0xdc   :  { %134 = vadd.xlane.f32.xlu0 %v133_v18 }
 0x15f   :  { %v138_v19 = vpop.xlane.xlu1 %137 }
 0x160   :  { %v145_v20 = vmul.f32 0.03125, %v138_v19 }
 0x161   :  { %v132_v21 = vpop.xlane.xlu0 %131 }
 0x162   :  { %v143_v22 = vmul.f32 0.03125, %v132_v21  ;;  %v149_v24 = vsub.f32 %v121_v8, %v145_v20 }
 0x163   :  { %v141_v23 = vpop.xlane.xlu1 %140 }
 0x164   :  { %v147_v25 = vsub.f32 %v113_v10, %v143_v22  ;;  %v146_v26 = vmul.f32 0.03125, %v141_v23  ;;  %v153_v33 = vmul.f32 %v149_v24, %v149_v24 }
 0x165   :  { %v135_v27 = vpop.xlane.xlu0 %134 }
 0x166   :  { %v144_v28 = vmul.f32 0.03125, %v135_v27  ;;  %v151_v29 = vmul.f32 %v147_v25, %v147_v25  ;;  %v150_v30 = vsub.f32 %v124_v13, %v146_v26  ;;  %v161_v35 = vsel %vm129_vm1, %v153_v33, 0.0 }
 0x168   :  { %v148_v31 = vsub.f32 %v116_v16, %v144_v28  ;;  %v155_v32 = vsel %vm129_vm1, %v151_v29, 0.0  ;;  %v154_v37 = vmul.f32 %v150_v30, %v150_v30  ;;  %v5115_v29 = vld [vmem:[%s6766_s1 + $0x28] sm:$0xff]  }
 0x169   :  { %156 = vadd.xlane.f32.xlu0 %v155_v32  ;;  %4912 = vmatprep.subr.bf16.mxu0 %v5115_v29 }
 0x16a   :  { %v152_v34 = vmul.f32 %v148_v31, %v148_v31  ;;  %v164_v38 = vsel %vm129_vm1, %v154_v37, 0.0  ;;  %4913 = vmatpush3.bf16.msra.mxu0 %v5115_v29 }
 0x16c   :  { %v158_v36 = vsel %vm129_vm1, %v152_v34, 0.0 }
 0x16d   :  { %162 = vadd.xlane.f32.xlu0 %v161_v35  ;;  %159 = vadd.xlane.f32.xlu1 %v158_v36 }
 0x171   :  { %165 = vadd.xlane.f32.xlu1 %v164_v38 }
 0x1f2   :  { %v157_v39 = vpop.xlane.xlu0 %156 }
 0x1f3   :  { %v167_v40 = vmul.f32 0.03125, %v157_v39 }
 0x1f5   :  { %v171_v41 = vadd.f32 1e-05, %v167_v40 }
 0x1f6   :  { %v160_v42 = vpop.xlane.xlu1 %159  ;;  %v163_v43 = vpop.xlane.xlu0 %162 }
 0x1f7   :  { %5131 = vrsqrt.f32 %v171_v41  ;;  %v168_v44 = vmul.f32 0.03125, %v160_v42  ;;  %v169_v45 = vmul.f32 0.03125, %v163_v43 }
 0x1f9   :  { %v172_v46 = vadd.f32 1e-05, %v168_v44  ;;  %v173_v47 = vadd.f32 1e-05, %v169_v45  ;;  %v4751_v45 = vld [vmem:[%s6767_s2 + $0x3] ss:$0 sm:$0xff] }
 0x1fa   :  { %v166_v48 = vpop.xlane.xlu1 %165 }
 0x1fb   :  { %5133 = vrsqrt.f32 %v172_v46  ;;  %v170_v49 = vmul.f32 0.03125, %v166_v48 }
 0x1fc   :  { %5135 = vrsqrt.f32 %v173_v47 }
 0x1fd   :  { %v174_v50 = vadd.f32 1e-05, %v170_v49 }
 0x1ff   :  { %5137 = vrsqrt.f32 %v174_v50 }
 0x204   :  { %v5132_v51 = vpop.eup %5131 }
 0x205   :  { %v179_v53 = vmul.f32 %v5132_v51, %v147_v25  ;;  %v4752_v51 = vld [vmem:[%s6767_s2 + $0x4] ss:$0 sm:$0xff] }
 0x207   :  { %v187_v55 = vmul.f32 %v4749_v52, %v179_v53 }
 0x208   :  { %v5134_v56 = vpop.eup %5133 }
 0x209   :  { %v5136_v57 = vpop.eup %5135  ;;  %v5369_v58 = vadd.f32 %v4750_v54, %v187_v55  ;;  %v180_v59 = vmul.f32 %v5134_v56, %v148_v31 }
 0x20a   :  { %v181_v60 = vmul.f32 %v5136_v57, %v149_v24 }
 0x20b   :  { %v201_v61 = vsel %vm129_vm1, %v5369_v58, 0.0  ;;  %v188_v62 = vmul.f32 %v4749_v52, %v180_v59 }
 0x20c   :  { %v5138_v63 = vpop.eup %5137  ;;  %202 = vadd.xlane.f32.xlu0 %v201_v61  ;;  %v189_v0 = vmul.f32 %v4749_v52, %v181_v60 }
 0x20d   :  { %v5373_v1 = vadd.f32 %v4750_v54, %v188_v62  ;;  %v182_v2 = vmul.f32 %v5138_v63, %v150_v30  ;;  %v5116_v30 = vld [vmem:[%s6766_s1 + $0x20] sm:$0xff]  }
 0x20e   :  { %v5375_v3 = vadd.f32 %v4750_v54, %v189_v0  ;;  %4914 = vmatprep.subr.bf16.mxu0 %v5116_v30 }
 0x20f   :  { %v204_v4 = vsel %vm129_vm1, %v5373_v1, 0.0  ;;  %v190_v5 = vmul.f32 %v4749_v52, %v182_v2  ;;  %4915 = vmatpush3.bf16.msra.mxu0 %v5116_v30  ;;  %v4753_v2 = vld [vmem:[%s6767_s2 + $0x5] ss:$0 sm:$0xff]  ;;  %v5291_v30 = vmov 1934713408  }
 0x210   :  { %205 = vadd.xlane.f32.xlu1 %v204_v4  ;;  %v207_v6 = vsel %vm129_vm1, %v5375_v3, 0.0 }
 0x211   :  { %208 = vadd.xlane.f32.xlu0 %v207_v6  ;;  %v5381_v7 = vadd.f32 %v4750_v54, %v190_v5 }
 0x213   :  { %v210_v8 = vsel %vm129_vm1, %v5381_v7, 0.0 }
 0x214   :  { %211 = vadd.xlane.f32.xlu1 %v210_v8 }
 0x295   :  { %v203_v9 = vpop.xlane.xlu0 %202 }
 0x296   :  { %v213_v10 = vmul.f32 0.03125, %v203_v9 }
 0x298   :  { %v217_v11 = vsub.f32 %v5369_v58, %v213_v10 }
 0x299   :  { %v206_v12 = vpop.xlane.xlu1 %205 }
 0x29a   :  { %v214_v13 = vmul.f32 0.03125, %v206_v12  ;;  %v209_v14 = vpop.xlane.xlu0 %208  ;;  %v221_v15 = vmul.f32 %v217_v11, %v217_v11 }
 0x29b   :  { %v215_v16 = vmul.f32 0.03125, %v209_v14 }
 0x29c   :  { %v218_v17 = vsub.f32 %v5373_v1, %v214_v13  ;;  %v225_v18 = vsel %vm129_vm1, %v221_v15, 0.0 }
 0x29d   :  { %v219_v19 = vsub.f32 %v5375_v3, %v215_v16  ;;  %v212_v20 = vpop.xlane.xlu1 %211  ;;  %226 = vadd.xlane.f32.xlu0 %v225_v18 }
 0x29e   :  { %v216_v21 = vmul.f32 0.03125, %v212_v20  ;;  %v222_v22 = vmul.f32 %v218_v17, %v218_v17 }
 0x29f   :  { %v223_v23 = vmul.f32 %v219_v19, %v219_v19 }
 0x2a0   :  { %v220_v24 = vsub.f32 %v5381_v7, %v216_v21  ;;  %v228_v25 = vsel %vm129_vm1, %v222_v22, 0.0 }
 0x2a1   :  { %229 = vadd.xlane.f32.xlu1 %v228_v25  ;;  %v231_v26 = vsel %vm129_vm1, %v223_v23, 0.0  ;;  %v6771_v23 = vmov 0.0   ;;  %v5290_v25 = vmov 1983009808  }
 0x2a2   :  { %232 = vadd.xlane.f32.xlu0 %v231_v26  ;;  %v224_v27 = vmul.f32 %v220_v24, %v220_v24  ;;  %4920 = vmatprep.subr.bf16.mxu1 %v6771_v23  ;;  %v390_v26 = vunpack.c.l.s4 %v5290_v25 }
 0x2a3   :  { %4926 = vmatprep.subr.bf16.mxu0 %v6771_v23  ;;  %4922 = vmatprep.mubr.msk.bf16.mxu1 %vm5289_vm2, %v6771_v23 }
 0x2a4   :  { %v234_v28 = vsel %vm129_vm1, %v224_v27, 0.0  ;;  %v392_v27 = vlaneseq }
 0x2a5   :  { %235 = vadd.xlane.f32.xlu1 %v234_v28  ;;  %v391_v28 = vunpack.c.0.s8 %v390_v26 }
 0x2a6   :  { %v5514_v29 = vshrl.u32 %v392_v27, 7 }
 0x2a8   :  { %6774 = vst [vmem:[#allocation8_spill] sm:$0xff] %v5514_v29 }
 0x326   :  { %v227_v31 = vpop.xlane.xlu0 %226 }
 0x327   :  { %v237_v32 = vmul.f32 0.03125, %v227_v31  ;;  %v422_v31 = vunpack.c.l.s4 %v5291_v30 }
 0x329   :  { %v241_v33 = vadd.f32 1e-05, %v237_v32 }
 0x32a   :  { %v230_v34 = vpop.xlane.xlu1 %229 }
 0x32b   :  { %5139 = vrsqrt.f32 %v241_v33  ;;  %v238_v35 = vmul.f32 0.03125, %v230_v34  ;;  %v233_v36 = vpop.xlane.xlu0 %232  ;;  %v5519_v34 = vsub.s32 %v391_v28, %v5514_v29 }
 0x32c   :  { %v239_v37 = vmul.f32 0.03125, %v233_v36 }
 0x32d   :  { %v242_v38 = vadd.f32 1e-05, %v238_v35 }
 0x32e   :  { %v243_v39 = vadd.f32 1e-05, %v239_v37  ;;  %v236_v40 = vpop.xlane.xlu1 %235 }
 0x32f   :  { %5141 = vrsqrt.f32 %v242_v38  ;;  %v240_v41 = vmul.f32 0.03125, %v236_v40 }
 0x330   :  { %5143 = vrsqrt.f32 %v243_v39  ;;  %v423_v39 = vunpack.c.0.s8 %v422_v31 }
 0x331   :  { %v244_v42 = vadd.f32 1e-05, %v240_v41 }
 0x333   :  { %5145 = vrsqrt.f32 %v244_v42 }
 0x338   :  { %v5140_v43 = vpop.eup %5139 }
 0x339   :  { %v249_v44 = vmul.f32 %v5140_v43, %v217_v11 }
 0x33b   :  { %v257_v49 = vmul.f32 %v4751_v45, %v249_v44 }
 0x33c   :  { %v5142_v46 = vpop.eup %5141 }
 0x33d   :  { %v5144_v47 = vpop.eup %5143  ;;  %v250_v48 = vmul.f32 %v5142_v46, %v218_v17  ;;  %v265_v55 = vadd.f32 %v4752_v51, %v257_v49 }
 0x33e   :  { %v251_v50 = vmul.f32 %v5144_v47, %v219_v19 }
 0x33f   :  { %v258_v52 = vmul.f32 %v4751_v45, %v250_v48  ;;  %v5538_v48 = vsub.s32 %v423_v39, %v5514_v29 }
 0x340   :  { %v5146_v53 = vpop.eup %5145  ;;  %v259_v57 = vmul.f32 %v4751_v45, %v251_v50 }
 0x341   :  { %v252_v54 = vmul.f32 %v5146_v53, %v220_v24  ;;  %v266_v56 = vadd.f32 %v4752_v51, %v258_v52 }
 0x342   :  { %v267_v61 = vadd.f32 %v4752_v51, %v259_v57 }
 0x343   :  { %v269_v59 = vpack.c.bf16 %v266_v56, %v265_v55  ;;  %v260_v60 = vmul.f32 %v4751_v45, %v252_v54 }
 0x345   :  { %4916 = vmatprep.mubr.msk.bf16.mxu0 %vm129_vm1, %v269_v59  ;;  %v268_v62 = vadd.f32 %v4752_v51, %v260_v60 }
 0x347   :  { %v270_v63 = vpack.c.bf16 %v268_v62, %v267_v61 }
 0x349   :  { %4917 = vmatmul.mubr.msk.bf16.vlgmr.msra.gmra.mxu0 %vm129_vm1, %v270_v63 }
 0x34a   :  { %4928 = vmatprep.mubr.msk.bf16.mxu0 %vm5289_vm2, %v6771_v23 }
 0x409   :  { %v4918_v0 = vpop.f32.mrf.mxu0 }
 0x40a   :  { %v5419_v10 = vadd.f32 %v4918_v0, %v4753_v2 }
 0x40b   :  { %v332_v4 = vpop.f32.mrf.mxu0 }
 0x40c   :  { %v5410_v5 = vadd.f32 %v4753_v2, %v332_v4 }
 0x40d   :  { %v4919_v6 = vpop.f32.mrf.mxu0 }
 0x40e   :  { %363 = vrot.lane.b32.xlu1 %v5410_v5, %s5283_s20  ;;  %351 = vrot.lane.b32.xlu0 %v5410_v5, %s5284_s21  ;;  %v5427_v11 = vadd.f32 %v4919_v6, %v4753_v2 }
 0x40f   :  { %v335_v8 = vpop.f32.mrf.mxu0 }
 0x410   :  { %v5415_v9 = vadd.f32 %v4753_v2, %v335_v8 }
 0x412   :  { %353 = vrot.lane.b32.xlu1 %v5415_v9, %s5284_s21  ;;  %375 = vrot.lane.b32.xlu0 %v5410_v5, %s5285_s22 }
 0x416   :  { %365 = vrot.lane.b32.xlu1 %v5415_v9, %s5283_s20  ;;  %355 = vrot.lane.b32.xlu0 %v5419_v10, %s5284_s21 }
 0x41a   :  { %377 = vrot.lane.b32.xlu1 %v5415_v9, %s5285_s22  ;;  %367 = vrot.lane.b32.xlu0 %v5419_v10, %s5283_s20 }
 0x41e   :  { %357 = vrot.lane.b32.xlu1 %v5427_v11, %s5284_s21  ;;  %379 = vrot.lane.b32.xlu0 %v5419_v10, %s5285_s22 }
 0x422   :  { %369 = vrot.lane.b32.xlu1 %v5427_v11, %s5283_s20  ;;  %939 = vrot.lane.b32.xlu0 %v5410_v5, %s5286_s23 }
 0x426   :  { %381 = vrot.lane.b32.xlu1 %v5427_v11, %s5285_s22 }
 0x42a   :  { %941 = vrot.lane.b32.xlu1 %v5415_v9, %s5286_s23 }
 0x480   :  { %v5438_v12 = vpop.permute.xlu1 %363  ;;  %v5440_v13 = vpop.permute.xlu0 %351 }
 0x481   :  { %947 = vrot.lane.b32.xlu0 %v5440_v13, %s5286_s23  ;;  %v387_v35 = vcombine.low %v5410_v5, %v5438_v12  ;;  %v388_v42 = vcombine.high %v5410_v5, %v5438_v12 }
 0x483   :  { %v395_v44 = vrot.slane %v387_v35, %v5519_v34  ;;  %v402_v52 = vrot.slane %v388_v42, %v5519_v34 }
 0x484   :  { %v5444_v14 = vpop.permute.xlu1 %353  ;;  %v376_v15 = vpop.permute.xlu0 %375 }
 0x485   :  { %949 = vrot.lane.b32.xlu1 %v5444_v14, %s5286_s23  ;;  %955 = vrot.lane.b32.xlu0 %v5438_v12, %s5286_s23  ;;  %v403_v32 = vcombine.low %v5440_v13, %v376_v15  ;;  %v404_v37 = vcombine.high %v5440_v13, %v376_v15 }
 0x487   :  { %v411_v40 = vrot.slane %v403_v32, %v5519_v34  ;;  %v418_v46 = vrot.slane %v404_v37, %v5519_v34 }
 0x488   :  { %v5450_v16 = vpop.permute.xlu1 %365  ;;  %v5455_v18 = vpop.permute.xlu0 %355 }
 0x489   :  { %957 = vrot.lane.b32.xlu1 %v5450_v16, %s5286_s23  ;;  %963 = vrot.lane.b32.xlu0 %v376_v15, %s5286_s23  ;;  %v455_v38 = vcombine.low %v5415_v9, %v5450_v16  ;;  %v456_v41 = vcombine.high %v5415_v9, %v5450_v16  ;;  %v419_v49 = vcombine.low %v395_v44, %v411_v40 }
 0x48a   :  { %v420_v50 = vcombine.high %v395_v44, %v411_v40  ;;  %v435_v57 = vcombine.low %v402_v52, %v418_v46  ;;  %v436_v59 = vcombine.high %v402_v52, %v418_v46 }
 0x48b   :  { %v463_v47 = vrot.slane %v455_v38, %v5519_v34  ;;  %v470_v51 = vrot.slane %v456_v41, %v5519_v34  ;;  %v427_v60 = vrot.slane %v419_v49, %v5538_v48 }
 0x48c   :  { %v378_v17 = vpop.permute.xlu1 %377  ;;  %v5466_v20 = vpop.permute.xlu0 %367  ;;  %v434_v61 = vrot.slane %v420_v50, %v5538_v48 }
 0x48d   :  { %965 = vrot.lane.b32.xlu1 %v378_v17, %s5286_s23  ;;  %943 = vrot.lane.b32.xlu0 %v5419_v10, %s5286_s23  ;;  %v471_v33 = vcombine.low %v5444_v14, %v378_v17  ;;  %v472_v36 = vcombine.high %v5444_v14, %v378_v17  ;;  %v523_v4 = vcombine.low %v5419_v10, %v5466_v20 }
 0x48e   :  { %v524_v8 = vcombine.high %v5419_v10, %v5466_v20  ;;  %v4758_v31 = vcombine.high %v427_v60, %v434_v61 }
 0x48f   :  { %v479_v43 = vrot.slane %v471_v33, %v5519_v34  ;;  %v486_v45 = vrot.slane %v472_v36, %v5519_v34 }
 0x490   :  { %v5460_v19 = vpop.permute.xlu1 %357  ;;  %v5474_v22 = vpop.permute.xlu0 %379  ;;  %v538_v30 = vrot.slane %v524_v8, %v5519_v34 }
 0x491   :  { %945 = vrot.lane.b32.xlu1 %v5427_v11, %s5286_s23  ;;  %951 = vrot.lane.b32.xlu0 %v5455_v18, %s5286_s23  ;;  %v487_v53 = vcombine.low %v463_v47, %v479_v43  ;;  %v488_v54 = vcombine.high %v463_v47, %v479_v43  ;;  %v503_v55 = vcombine.low %v470_v51, %v486_v45 }
 0x492   :  { %v504_v56 = vcombine.high %v470_v51, %v486_v45  ;;  %v539_v62 = vcombine.low %v5455_v18, %v5474_v22  ;;  %v540_v63 = vcombine.high %v5455_v18, %v5474_v22  ;;  %v674_v51 = vrot.slane %v4758_v31, %v5519_v34 }
 0x493   :  { %v495_v0 = vrot.slane %v487_v53, %v5538_v48  ;;  %v502_v2 = vrot.slane %v488_v54, %v5538_v48 }
 0x494   :  { %v5470_v21 = vpop.permute.xlu1 %369  ;;  %v518_v6 = vrot.slane %v504_v56, %v5538_v48 }
 0x495   :  { %953 = vrot.lane.b32.xlu1 %v5460_v19, %s5286_s23  ;;  %959 = vrot.lane.b32.xlu0 %v5466_v20, %s5286_s23  ;;  %v727_v25 = vcombine.low %v495_v0, %v502_v2  ;;  %v592_v26 = vcombine.high %v5427_v11, %v5470_v21 }
 0x497   :  { %v606_v41 = vrot.slane %v592_v26, %v5519_v34 }
 0x498   :  { %v5481_v24 = vpop.permute.xlu1 %381 }
 0x499   :  { %961 = vrot.lane.b32.xlu1 %v5470_v21, %s5286_s23  ;;  %967 = vrot.lane.b32.xlu0 %v5474_v22, %s5286_s23 }
 0x49d   :  { %969 = vrot.lane.b32.xlu1 %v5481_v24, %s5286_s23  ;;  %1539 = vrot.lane.b32.xlu0 %v5410_v5, %s5288_s24  ;;  %v511_v5 = vrot.slane %v503_v55, %v5538_v48 }
 0x49f   :  { %v743_v27 = vcombine.low %v511_v5, %v518_v6  ;;  %v4761_v28 = vcombine.high %v511_v5, %v518_v6 }
 0x4a1   :  { %1541 = vrot.lane.b32.xlu1 %v5415_v9, %s5288_s24  ;;  %1555 = vrot.lane.b32.xlu0 %v5438_v12, %s5288_s24  ;;  %v607_v9 = vcombine.low %v5460_v19, %v5481_v24  ;;  %v443_v12 = vrot.slane %v435_v57, %v5538_v48  ;;  %v750_v45 = vrot.slane %v743_v27, %v5519_v34 }
 0x4a2   :  { %v758_v46 = vrot.slane %v4761_v28, %v5519_v34 }
 0x4a4   :  { %v776_v28 = vcombine.high %v750_v45, %v758_v46 }
 0x4a5   :  { %1547 = vrot.lane.b32.xlu1 %v5440_v13, %s5288_s24  ;;  %1563 = vrot.lane.b32.xlu0 %v376_v15, %s5288_s24  ;;  %v450_v13 = vrot.slane %v436_v59, %v5538_v48  ;;  %v659_v15 = vcombine.low %v427_v60, %v434_v61  ;;  %v5586_v59 = vpop.permute.xlu0 %939 }
 0x4a7   :  { %v675_v32 = vcombine.low %v443_v12, %v450_v13  ;;  %v4759_v33 = vcombine.high %v443_v12, %v450_v13  ;;  %v666_v50 = vrot.slane %v659_v15, %v5519_v34  ;;  %v5592_v13 = vpop.permute.xlu1 %941 }
 0x4a9   :  { %1545 = vrot.lane.b32.xlu1 %v5427_v11, %s5288_s24  ;;  %1543 = vrot.lane.b32.xlu0 %v5419_v10, %s5288_s24  ;;  %v4760_v10 = vcombine.high %v495_v0, %v502_v2  ;;  %v682_v54 = vrot.slane %v675_v32, %v5519_v34  ;;  %v690_v55 = vrot.slane %v4759_v33, %v5519_v34 }
 0x4aa   :  { %v691_v6 = vcombine.low %v666_v50, %v674_v51  ;;  %v692_v15 = vcombine.high %v666_v50, %v674_v51 }
 0x4ab   :  { %v742_v42 = vrot.slane %v4760_v10, %v5519_v34  ;;  %v707_v8 = vcombine.low %v682_v54, %v690_v55 }
 0x4ac   :  { %v699_v31 = vrot.slane %v691_v6, %v5538_v48 }
 0x4ad   :  { %1551 = vrot.lane.b32.xlu1 %v5455_v18, %s5288_s24  ;;  %1559 = vrot.lane.b32.xlu0 %v5466_v20, %s5288_s24  ;;  %v591_v18 = vcombine.low %v5427_v11, %v5470_v21  ;;  %v531_v20 = vrot.slane %v523_v4, %v5519_v34  ;;  %v734_v11 = vrot.slane %v727_v25, %v5519_v34 }
 0x4ae   :  { %v715_v32 = vrot.slane %v707_v8, %v5538_v48 }
 0x4af   :  { %v599_v39 = vrot.slane %v591_v18, %v5519_v34  ;;  %v760_v27 = vcombine.high %v734_v11, %v742_v42 }
 0x4b1   :  { %1553 = vrot.lane.b32.xlu1 %v5460_v19, %s5288_s24 }
 0x4b5   :  { %1549 = vrot.lane.b32.xlu1 %v5444_v14, %s5288_s24  ;;  %v608_v14 = vcombine.high %v5460_v19, %v5481_v24  ;;  %v615_v19 = vrot.slane %v607_v9, %v5519_v34 }
 0x4b7   :  { %v622_v35 = vrot.slane %v608_v14, %v5519_v34  ;;  %v623_v43 = vcombine.low %v599_v39, %v615_v19  ;;  %v624_v44 = vcombine.high %v599_v39, %v615_v19 }
 0x4b9   :  { %1557 = vrot.lane.b32.xlu1 %v5450_v16, %s5288_s24  ;;  %v547_v16 = vrot.slane %v539_v62, %v5519_v34  ;;  %v639_v47 = vcombine.low %v606_v41, %v622_v35  ;;  %v640_v49 = vcombine.high %v606_v41, %v622_v35  ;;  %v631_v60 = vrot.slane %v623_v43, %v5538_v48 }
 0x4ba   :  { %v638_v61 = vrot.slane %v624_v44, %v5538_v48  ;;  %v759_v62 = vcombine.low %v734_v11, %v742_v42 }
 0x4bb   :  { %v555_v36 = vcombine.low %v531_v20, %v547_v16  ;;  %v556_v37 = vcombine.high %v531_v20, %v547_v16  ;;  %v647_v0 = vrot.slane %v639_v47, %v5538_v48  ;;  %v654_v2 = vrot.slane %v640_v49, %v5538_v48 }
 0x4bc   :  { %v708_v16 = vcombine.high %v682_v54, %v690_v55  ;;  %v4764_v18 = vcombine.high %v631_v60, %v638_v61  ;;  %v767_v25 = vrot.slane %v759_v62, %v5538_v48  ;;  %v723_v47 = vcombine.low %v699_v31, %v715_v32 }
 0x4bd   :  { %1565 = vrot.lane.b32.xlu1 %v378_v17, %s5288_s24  ;;  %v554_v17 = vrot.slane %v540_v63, %v5519_v34  ;;  %v563_v52 = vrot.slane %v555_v36, %v5538_v48  ;;  %v570_v53 = vrot.slane %v556_v37, %v5538_v48  ;;  %v775_v63 = vcombine.low %v750_v45, %v758_v46 }
 0x4be   :  { %v879_v20 = vcombine.low %v647_v0, %v654_v2  ;;  %v4765_v26 = vcombine.high %v647_v0, %v654_v2  ;;  %v5614_v39 = vrot.slane %v708_v16, %v5538_v48  ;;  %v5620_v41 = vrot.slane %v4764_v18, %v5519_v34 }
 0x4bf   :  { %v571_v38 = vcombine.low %v538_v30, %v554_v17  ;;  %v572_v40 = vcombine.high %v538_v30, %v554_v17  ;;  %v795_v4 = vcombine.low %v563_v52, %v570_v53  ;;  %v4762_v5 = vcombine.high %v563_v52, %v570_v53 }
 0x4c0   :  { %v863_v17 = vcombine.low %v631_v60, %v638_v61  ;;  %v783_v10 = vrot.slane %v775_v63, %v5538_v48  ;;  %v5623_v43 = vrot.slane %v879_v20, %v5519_v34  ;;  %v5626_v44 = vrot.slane %v4765_v26, %v5519_v34 }
 0x4c1   :  { %v579_v56 = vrot.slane %v571_v38, %v5538_v48  ;;  %v586_v57 = vrot.slane %v572_v40, %v5538_v48  ;;  %v5597_v30 = vrot.slane %v795_v4, %v5519_v34  ;;  %v5600_v19 = vrot.slane %v4762_v5, %v5519_v34 }
 0x4c2   :  { %v5611_v38 = vrot.slane %v692_v15, %v5538_v48  ;;  %v5617_v40 = vrot.slane %v863_v17, %v5519_v34  ;;  %v791_v11 = vcombine.low %v767_v25, %v783_v10  ;;  %v792_v42 = vcombine.high %v767_v25, %v783_v10 }
 0x4c3   :  { %v811_v9 = vcombine.low %v579_v56, %v586_v57  ;;  %v4763_v12 = vcombine.high %v579_v56, %v586_v57  ;;  %v5629_v45 = vrot.slane %v760_v27, %v5538_v48  ;;  %v5632_v46 = vrot.slane %v776_v28, %v5538_v48 }
 0x4c4   :  { %v724_v49 = vcombine.high %v699_v31, %v715_v32  ;;  %v827_v50 = vcombine.low %v5597_v30, %v5600_v19  ;;  %v725_v54 = vcombine.low %v5611_v38, %v5614_v39  ;;  %v5642_v57 = vpack.c.bf16 %v791_v11, %v723_v47 }
 0x4c5   :  { %v5605_v33 = vrot.slane %v811_v9, %v5519_v34  ;;  %v5608_v35 = vrot.slane %v4763_v12, %v5519_v34  ;;  %v895_v62 = vcombine.low %v5617_v40, %v5620_v41  ;;  %v793_v0 = vcombine.low %v5629_v45, %v5632_v46 }
 0x4c6   :  { %v5644_v60 = vpack.c.bf16 %v792_v42, %v724_v49  ;;  %v911_v2 = vcombine.low %v5623_v43, %v5626_v44  ;;  %v5659_v8 = vrot.slane %v827_v50, %v5538_v48 }
 0x4c7   :  { %v843_v61 = vcombine.low %v5605_v33, %v5608_v35  ;;  %v5669_v10 = vrot.slane %v895_v62, %v5538_v48 }
 0x4f3   :  { %v948_v14 = vpop.permute.xlu0 %947 }
 0x4f7   :  { %v950_v36 = vpop.permute.xlu1 %949  ;;  %v956_v37 = vpop.permute.xlu0 %955 }
 0x4f8   :  { %v987_v51 = vcombine.low %v5586_v59, %v956_v37  ;;  %v988_v52 = vcombine.high %v5586_v59, %v956_v37 }
 0x4fa   :  { %v995_v9 = vrot.slane %v987_v51, %v5519_v34  ;;  %v1002_v12 = vrot.slane %v988_v52, %v5519_v34 }
 0x4fb   :  { %v958_v53 = vpop.permute.xlu1 %957  ;;  %v964_v56 = vpop.permute.xlu0 %963 }
 0x4fc   :  { %v1003_v63 = vcombine.low %v948_v14, %v964_v56  ;;  %v1004_v59 = vcombine.high %v948_v14, %v964_v56  ;;  %v1055_v4 = vcombine.low %v5592_v13, %v958_v53  ;;  %v1056_v5 = vcombine.high %v5592_v13, %v958_v53 }
 0x4fd   :  { %v5666_v13 = vrot.slane %v843_v61, %v5538_v48 }
 0x4fe   :  { %v1011_v14 = vrot.slane %v1003_v63, %v5519_v34  ;;  %v1018_v15 = vrot.slane %v1004_v59, %v5519_v34  ;;  %v1063_v31 = vrot.slane %v1055_v4, %v5519_v34  ;;  %v1070_v32 = vrot.slane %v1056_v5, %v5519_v34 }
 0x4ff   :  { %v966_v16 = vpop.permute.xlu1 %965  ;;  %v944_v25 = vpop.permute.xlu0 %943 }
 0x500   :  { %v1071_v17 = vcombine.low %v950_v36, %v966_v16  ;;  %v1072_v18 = vcombine.high %v950_v36, %v966_v16  ;;  %v1019_v20 = vcombine.low %v995_v9, %v1011_v14  ;;  %v1020_v26 = vcombine.high %v995_v9, %v1011_v14 }
 0x501   :  { %v1035_v27 = vcombine.low %v1002_v12, %v1018_v15  ;;  %v1036_v28 = vcombine.high %v1002_v12, %v1018_v15 }
 0x502   :  { %v1079_v37 = vrot.slane %v1071_v17, %v5519_v34  ;;  %v1086_v11 = vrot.slane %v1072_v18, %v5519_v34  ;;  %v1027_v36 = vrot.slane %v1019_v20, %v5538_v48  ;;  %v1034_v42 = vrot.slane %v1020_v26, %v5538_v48 }
 0x503   :  { %v1043_v47 = vrot.slane %v1035_v27, %v5538_v48  ;;  %v1050_v49 = vrot.slane %v1036_v28, %v5538_v48  ;;  %v5679_v50 = vpop.permute.xlu1 %945  ;;  %v952_v61 = vpop.permute.xlu0 %951 }
 0x504   :  { %v1087_v51 = vcombine.low %v1063_v31, %v1079_v37  ;;  %v1088_v52 = vcombine.high %v1063_v31, %v1079_v37  ;;  %v1103_v53 = vcombine.low %v1070_v32, %v1086_v11  ;;  %v1104_v56 = vcombine.high %v1070_v32, %v1086_v11 }
 0x505   :  { %v1259_v62 = vcombine.low %v1027_v36, %v1034_v42  ;;  %v4766_v63 = vcombine.high %v1027_v36, %v1034_v42  ;;  %v1275_v59 = vcombine.low %v1043_v47, %v1050_v49  ;;  %v4767_v4 = vcombine.high %v1043_v47, %v1050_v49 }
 0x506   :  { %v1095_v5 = vrot.slane %v1087_v51, %v5538_v48  ;;  %v1102_v9 = vrot.slane %v1088_v52, %v5538_v48  ;;  %v1111_v12 = vrot.slane %v1103_v53, %v5538_v48  ;;  %v1118_v14 = vrot.slane %v1104_v56, %v5538_v48 }
 0x507   :  { %v954_v15 = vpop.permute.xlu1 %953  ;;  %v5686_v16 = vrot.slane %v1259_v62, %v5519_v34  ;;  %v5689_v17 = vrot.slane %v4766_v63, %v5519_v34  ;;  %v5692_v18 = vrot.slane %v1275_v59, %v5519_v34  ;;  %v5695_v20 = vrot.slane %v4767_v4, %v5519_v34  ;;  %v960_v32 = vpop.permute.xlu0 %959 }
 0x508   :  { %v1327_v26 = vcombine.low %v1095_v5, %v1102_v9  ;;  %v4768_v27 = vcombine.high %v1095_v5, %v1102_v9  ;;  %v1343_v28 = vcombine.low %v1111_v12, %v1118_v14  ;;  %v4769_v31 = vcombine.high %v1111_v12, %v1118_v14 }
 0x509   :  { %v1123_v37 = vcombine.low %v944_v25, %v960_v32  ;;  %v1124_v11 = vcombine.high %v944_v25, %v960_v32  ;;  %v1291_v36 = vcombine.low %v5686_v16, %v5689_v17  ;;  %v1307_v42 = vcombine.low %v5692_v18, %v5695_v20 }
 0x50a   :  { %v5702_v47 = vrot.slane %v1327_v26, %v5519_v34  ;;  %v5705_v49 = vrot.slane %v4768_v27, %v5519_v34  ;;  %v5708_v51 = vrot.slane %v1343_v28, %v5519_v34  ;;  %v5711_v52 = vrot.slane %v4769_v31, %v5519_v34 }
 0x50b   :  { %v962_v53 = vpop.permute.xlu1 %961  ;;  %v1299_v25 = vrot.slane %v1291_v36, %v5538_v48  ;;  %v1315_v56 = vrot.slane %v1307_v42, %v5538_v48  ;;  %v5716_v62 = vrot.slane %v911_v2, %v5538_v48  ;;  %v968_v59 = vpop.permute.xlu0 %967  ;;  %v5730_v9 = vpack.c.bf16 %v793_v0, %v725_v54 }
 0x50c   :  { %v1359_v4 = vcombine.low %v5702_v47, %v5705_v49  ;;  %v1375_v5 = vcombine.low %v5708_v51, %v5711_v52  ;;  %v1131_v12 = vrot.slane %v1123_v37, %v5519_v34  ;;  %v1138_v14 = vrot.slane %v1124_v11, %v5519_v34 }
 0x50d   :  { %v1139_v26 = vcombine.low %v952_v61, %v968_v59  ;;  %v1140_v27 = vcombine.high %v952_v61, %v968_v59  ;;  %v1191_v28 = vcombine.low %v5679_v50, %v962_v53  ;;  %v1192_v31 = vcombine.high %v5679_v50, %v962_v53 }
 0x50e   :  { %v1367_v32 = vrot.slane %v1359_v4, %v5538_v48  ;;  %v1383_v36 = vrot.slane %v1375_v5, %v5538_v48  ;;  %v1323_v2 = vcombine.low %v1299_v25, %v1315_v56  ;;  %v1324_v63 = vcombine.high %v1299_v25, %v1315_v56 }
 0x50f   :  { %v1147_v54 = vrot.slane %v1139_v26, %v5519_v34  ;;  %v1154_v0 = vrot.slane %v1140_v27, %v5519_v34  ;;  %v970_v42 = vpop.permute.xlu1 %969  ;;  %v1540_v11 = vpop.permute.xlu0 %1539  ;;  %v1199_v53 = vrot.slane %v1191_v28, %v5519_v34  ;;  %v6775_v26 = vcombine.high %v5611_v38, %v5614_v39 }
 0x510   :  { %v1207_v37 = vcombine.low %v954_v15, %v970_v42  ;;  %v1208_v23 = vcombine.high %v954_v15, %v970_v42  ;;  %v1391_v6 = vcombine.low %v1367_v32, %v1383_v36  ;;  %v1392_v61 = vcombine.high %v1367_v32, %v1383_v36 }
 0x511   :  { %v1155_v59 = vcombine.low %v1131_v12, %v1147_v54  ;;  %v1156_v55 = vcombine.high %v1131_v12, %v1147_v54  ;;  %v1171_v29 = vcombine.low %v1138_v14, %v1154_v0  ;;  %v1172_v50 = vcombine.high %v1138_v14, %v1154_v0 }
 0x512   :  { %v1215_v4 = vrot.slane %v1207_v37, %v5519_v34  ;;  %v1222_v5 = vrot.slane %v1208_v23, %v5519_v34  ;;  %v6776_v25 = vcombine.high %v5629_v45, %v5632_v46  ;;  %v1531_v14 = vpack.c.bf16 %v1391_v6, %v1323_v2 }
 0x513   :  { %v1163_v56 = vrot.slane %v1155_v59, %v5538_v48  ;;  %v1170_v12 = vrot.slane %v1156_v55, %v5538_v48  ;;  %v5755_v27 = vpop.permute.xlu1 %1541  ;;  %v1532_v28 = vpack.c.bf16 %v1392_v61, %v1324_v63  ;;  %v1206_v32 = vrot.slane %v1192_v31, %v5519_v34  ;;  %v1556_v45 = vpop.permute.xlu0 %1555 }
 0x514   :  { %v5751_v15 = vpack.c.bf16 %v6776_v25, %v6775_v26  ;;  %v5759_v23 = vrot.slane %v1171_v29, %v5538_v48  ;;  %v5762_v38 = vrot.slane %v1172_v50, %v5538_v48  ;;  %v1223_v39 = vcombine.low %v1199_v53, %v1215_v4 }
 0x515   :  { %v1224_v46 = vcombine.high %v1199_v53, %v1215_v4  ;;  %v1292_v36 = vcombine.high %v5686_v16, %v5689_v17  ;;  %v859_v55 = vcombine.low %v5659_v8, %v5666_v13  ;;  %v860_v6 = vcombine.high %v5659_v8, %v5666_v13 }
 0x516   :  { %v1395_v63 = vcombine.low %v1163_v56, %v1170_v12  ;;  %v1239_v2 = vcombine.low %v1206_v32, %v1222_v5  ;;  %v1240_v31 = vcombine.high %v1206_v32, %v1222_v5  ;;  %v1308_v29 = vcombine.high %v5692_v18, %v5695_v20 }
 0x517   :  { %v4770_v54 = vcombine.high %v1163_v56, %v1170_v12  ;;  %v1587_v0 = vcombine.low %v1540_v11, %v1556_v45  ;;  %v2144_v42 = vsel %vm2139_vm3, %v1531_v14, 0  ;;  %v2191_v37 = vsel %vm2139_vm3, %v1532_v28, 0  ;;  %v1548_v61 = vpop.permute.xlu1 %1547  ;;  %v1564_v53 = vpop.permute.xlu0 %1563 }
 0x518   :  { %v1411_v16 = vcombine.low %v5759_v23, %v5762_v38  ;;  %v4771_v17 = vcombine.high %v5759_v23, %v5762_v38  ;;  %v5779_v59 = vrot.slane %v1223_v39, %v5538_v48  ;;  %v1588_v50 = vcombine.high %v1540_v11, %v1556_v45  ;;  %4921 = vmatpush3.bf16.xpose.msra.mxu1 %v2144_v42 }
 0x519   :  { %v1238_v18 = vrot.slane %v1224_v46, %v5538_v48  ;;  %v1595_v20 = vrot.slane %v1587_v0, %v5519_v34  ;;  %4927 = vmatpush3.bf16.xpose.msra.mxu0 %v2191_v37  ;;  %v1603_v4 = vcombine.low %v1548_v61, %v1564_v53  ;;  %v1604_v5 = vcombine.high %v1548_v61, %v1564_v53 }
 0x51a   :  { %v6777_v26 = vmov 0.0   ;;  %v1306_v25 = vrot.slane %v1292_v36, %v5538_v48  ;;  %v1322_v56 = vrot.slane %v1308_v29, %v5538_v48  ;;  %v1360_v11 = vcombine.high %v5702_v47, %v5705_v49 }
 0x51b   :  { %4932 = vmatprep.subr.bf16.mxu1 %v6777_v26  ;;  %4938 = vmatprep.subr.bf16.mxu0 %v6777_v26  ;;  %v1611_v12 = vrot.slane %v1603_v4, %v5519_v34  ;;  %v1618_v14 = vrot.slane %v1604_v5, %v5519_v34  ;;  %v5791_v28 = vpop.permute.xlu1 %1545  ;;  %v1376_v32 = vcombine.high %v5708_v51, %v5711_v52 }
 0x51c   :  { %v5796_v23 = vrot.slane %v1395_v63, %v5519_v34  ;;  %v1247_v38 = vrot.slane %v1239_v2, %v5538_v48  ;;  %v1602_v39 = vrot.slane %v1588_v50, %v5519_v34  ;;  %v1374_v45 = vrot.slane %v1360_v11, %v5538_v48 }
 0x51d   :  { %v5802_v47 = vrot.slane %v4770_v54, %v5519_v34  ;;  %v1254_v49 = vrot.slane %v1240_v31, %v5538_v48  ;;  %v1463_v46 = vcombine.low %v5779_v59, %v1238_v18  ;;  %v1619_v36 = vcombine.low %v1595_v20, %v1611_v12 }
 0x51e   :  { %v1620_v29 = vcombine.high %v1595_v20, %v1611_v12  ;;  %v4772_v51 = vcombine.high %v5779_v59, %v1238_v18  ;;  %v1635_v52 = vcombine.low %v1602_v39, %v1618_v14  ;;  %v1325_v63 = vcombine.low %v1306_v25, %v1322_v56 }
 0x51f   :  { %v1390_v0 = vrot.slane %v1376_v32, %v5538_v48  ;;  %v1627_v2 = vrot.slane %v1619_v36, %v5538_v48  ;;  %v1636_v37 = vcombine.high %v1602_v39, %v1618_v14  ;;  %4923 = vmatmul.mubr.msk.bf16.vlgmr.msra.gmra.mxu1 %vm2139_vm3, %v5642_v57  ;;  %v5812_v54 = vpop.permute.xlu1 %1551  ;;  %v1427_v31 = vcombine.low %v5796_v23, %v5802_v47 }
 0x520   :  { %v1634_v42 = vrot.slane %v1620_v29, %v5538_v48  ;;  %4929 = vmatmul.mubr.msk.bf16.vlgmr.msra.gmra.mxu0 %vm2139_vm3, %v5644_v60  ;;  %v1326_v59 = vcombine.high %v1306_v25, %v1322_v56  ;;  %4934 = vmatprep.mubr.msk.bf16.mxu1 %vm5289_vm2, %v6777_v26  ;;  %v1418_v57 = vrot.slane %v1411_v16, %v5519_v34 }
 0x521   :  { %v1393_v61 = vcombine.low %v1374_v45, %v1390_v0  ;;  %v1394_v50 = vcombine.high %v1374_v45, %v1390_v0  ;;  %4940 = vmatprep.mubr.msk.bf16.mxu0 %vm5289_vm2, %v6777_v26  ;;  %v1426_v20 = vrot.slane %v4771_v17, %v5519_v34  ;;  %v1479_v4 = vcombine.low %v1247_v38, %v1254_v49 }
 0x522   :  { %v1859_v53 = vcombine.low %v1627_v2, %v1634_v42  ;;  %v4774_v18 = vcombine.high %v1627_v2, %v1634_v42  ;;  %v4773_v5 = vcombine.high %v1247_v38, %v1254_v49  ;;  %v1643_v60 = vrot.slane %v1635_v52, %v5538_v48 }
 0x523   :  { %v1533_v11 = vpack.c.bf16 %v1393_v61, %v1325_v63  ;;  %v1534_v12 = vpack.c.bf16 %v1394_v50, %v1326_v59  ;;  %v1650_v25 = vrot.slane %v1636_v37, %v5538_v48  ;;  %v5826_v56 = vpop.permute.xlu1 %1553  ;;  %v1435_v14 = vrot.slane %v1427_v31, %v5538_v48 }
 0x524   :  { %v927_v32 = vcombine.low %v5669_v10, %v5716_v62  ;;  %v5832_v39 = vrot.slane %v1859_v53, %v5519_v34  ;;  %v5835_v16 = vrot.slane %v4774_v18, %v5519_v34  ;;  %v1443_v45 = vcombine.low %v1418_v57, %v1426_v20 }
 0x525   :  { %v2238_v17 = vsel %vm2139_vm3, %v1533_v11, 0  ;;  %v2285_v38 = vsel %vm2139_vm3, %v1534_v12, 0  ;;  %v1470_v49 = vrot.slane %v1463_v46, %v5519_v34  ;;  %v1478_v36 = vrot.slane %v4772_v51, %v5519_v34 }
 0x526   :  { %4933 = vmatpush3.bf16.xpose.msra.mxu1 %v2238_v17  ;;  %4939 = vmatpush3.bf16.xpose.msra.mxu0 %v2285_v38  ;;  %v1486_v29 = vrot.slane %v1479_v4, %v5519_v34  ;;  %v1494_v52 = vrot.slane %v4773_v5, %v5519_v34  ;;  %v1428_v63 = vcombine.high %v5796_v23, %v5802_v47 }
 0x527   :  { %4944 = vmatprep.subr.bf16.mxu1 %v6777_v26  ;;  %4950 = vmatprep.subr.bf16.mxu0 %v6777_v26  ;;  %v1451_v0 = vrot.slane %v1443_v45, %v5538_v48  ;;  %v1495_v2 = vcombine.low %v1470_v49, %v1478_v36  ;;  %v1550_v42 = vpop.permute.xlu1 %1549  ;;  %v1444_v37 = vcombine.high %v1418_v57, %v1426_v20 }
 0x528   :  { %v1496_v31 = vcombine.high %v1470_v49, %v1478_v36  ;;  %v1511_v46 = vcombine.low %v1486_v29, %v1494_v52  ;;  %v928_v51 = vcombine.high %v5669_v10, %v5716_v62  ;;  %v1512_v61 = vcombine.high %v1486_v29, %v1494_v52 }
 0x529   :  { %v6778_v59 = vcombine.high %v5597_v30, %v5600_v19  ;;  %v1875_v53 = vcombine.low %v1643_v60, %v1650_v25  ;;  %v1503_v23 = vrot.slane %v1495_v2, %v5538_v48  ;;  %v6779_v47 = vcombine.high %v5605_v33, %v5608_v35 }
 0x52a   :  { %v896_v57 = vcombine.high %v5617_v40, %v5620_v41  ;;  %v4775_v10 = vcombine.high %v1643_v60, %v1650_v25  ;;  %v1459_v62 = vcombine.low %v1435_v14, %v1451_v0  ;;  %v1519_v20 = vrot.slane %v1511_v46, %v5538_v48 }
 0x52b   :  { %v5854_v50 = vrot.slane %v6778_v59, %v5538_v48  ;;  %v5861_v18 = vrot.slane %v6779_v47, %v5538_v48  ;;  %v1442_v30 = vrot.slane %v1428_v63, %v5538_v48  ;;  %v1558_v19 = vpop.permute.xlu1 %1557  ;;  %v1458_v4 = vrot.slane %v1444_v37, %v5538_v48 }
 0x52c   :  { %v1510_v5 = vrot.slane %v1496_v31, %v5538_v48  ;;  %v1526_v11 = vrot.slane %v1512_v61, %v5538_v48  ;;  %v1892_v33 = vcombine.high %v5832_v39, %v5835_v16  ;;  %v1527_v35 = vcombine.low %v1503_v23, %v1519_v20 }
 0x52d   :  { %4935 = vmatmul.mubr.msk.bf16.vlgmr.msra.gmra.mxu1 %vm2139_vm3, %v5730_v9  ;;  %4941 = vmatmul.mubr.msk.bf16.vlgmr.msra.gmra.mxu0 %vm2139_vm3, %v5751_v15  ;;  %v1460_v40 = vcombine.high %v1435_v14, %v1451_v0  ;;  %v1528_v41 = vcombine.high %v1503_v23, %v1519_v20  ;;  %v1655_v12 = vcombine.low %v5755_v27, %v1558_v19 }
 0x52e   :  { %v1656_v60 = vcombine.high %v5755_v27, %v1558_v19  ;;  %4946 = vmatprep.mubr.msk.bf16.mxu1 %vm5289_vm2, %v6777_v26  ;;  %4952 = vmatprep.mubr.msk.bf16.mxu0 %vm5289_vm2, %v6777_v26  ;;  %v912_v25 = vcombine.high %v5623_v43, %v5626_v44  ;;  %v5885_v9 = vrot.slane %v1875_v53, %v5519_v34 }
 0x52f   :  { %v5888_v15 = vrot.slane %v4775_v10, %v5519_v34  ;;  %v1535_v14 = vpack.c.bf16 %v1527_v35, %v1459_v62  ;;  %v1536_v17 = vpack.c.bf16 %v1528_v41, %v1460_v40  ;;  %v935_v27 = vpack.c.bf16 %v927_v32, %v859_v55  ;;  %v1566_v36 = vpop.permute.xlu1 %1565 }
 0x530   :  { %v1461_v38 = vcombine.low %v1442_v30, %v1458_v4  ;;  %v1529_v45 = vcombine.low %v1510_v5, %v1526_v11  ;;  %v1530_v49 = vcombine.high %v1510_v5, %v1526_v11  ;;  %v1671_v44 = vcombine.low %v1550_v42, %v1566_v36 }
 0x531   :  { %v2332_v29 = vsel %vm2139_vm3, %v1535_v14, 0  ;;  %v2379_v43 = vsel %vm2139_vm3, %v1536_v17, 0  ;;  %v1672_v52 = vcombine.high %v1550_v42, %v1566_v36  ;;  %v1663_v63 = vrot.slane %v1655_v12, %v5519_v34 }
 0x532   :  { %4945 = vmatpush3.bf16.xpose.msra.mxu1 %v2332_v29  ;;  %4951 = vmatpush3.bf16.xpose.msra.mxu0 %v2379_v43  ;;  %v1670_v0 = vrot.slane %v1656_v60, %v5519_v34  ;;  %v1462_v2 = vcombine.high %v1442_v30, %v1458_v4  ;;  %v1679_v55 = vrot.slane %v1671_v44, %v5519_v34 }
 0x533   :  { %4956 = vmatprep.subr.bf16.mxu1 %v6777_v26  ;;  %4962 = vmatprep.subr.bf16.mxu0 %v6777_v26  ;;  %v1686_v32 = vrot.slane %v1672_v52, %v5519_v34  ;;  %v1908_v37 = vcombine.high %v5885_v9, %v5888_v15  ;;  %v936_v42 = vpack.c.bf16 %v928_v51, %v860_v6 }
 0x534   :  { %v1537_v31 = vpack.c.bf16 %v1529_v45, %v1461_v38  ;;  %v1538_v46 = vpack.c.bf16 %v1530_v49, %v1462_v2  ;;  %v5907_v61 = vrot.slane %v1892_v33, %v5538_v48  ;;  %v1687_v59 = vcombine.low %v1663_v63, %v1679_v55 }
 0x535   :  { %v1688_v53 = vcombine.high %v1663_v63, %v1679_v55  ;;  %v1703_v23 = vcombine.low %v1670_v0, %v1686_v32  ;;  %v1704_v47 = vcombine.high %v1670_v0, %v1686_v32  ;;  %v910_v10 = vrot.slane %v896_v57, %v5538_v48 }
 0x536   :  { %v926_v62 = vrot.slane %v912_v25, %v5538_v48  ;;  %v1891_v20 = vcombine.low %v5832_v39, %v5835_v16  ;;  %v1922_v30 = vrot.slane %v1908_v37, %v5538_v48  ;;  %v1695_v8 = vrot.slane %v1687_v59, %v5538_v48 }
 0x537   :  { %v1702_v13 = vrot.slane %v1688_v53, %v5538_v48  ;;  %v1711_v6 = vrot.slane %v1703_v23, %v5538_v48  ;;  %v1718_v51 = vrot.slane %v1704_v47, %v5538_v48  ;;  %v2426_v19 = vsel %vm2139_vm3, %v1537_v31, 0 }
 0x538   :  { %v1907_v57 = vcombine.low %v5885_v9, %v5888_v15  ;;  %v1925_v4 = vcombine.low %v5907_v61, %v1922_v30  ;;  %v1926_v5 = vcombine.high %v5907_v61, %v1922_v30  ;;  %v2473_v39 = vsel %vm2139_vm3, %v1538_v46, 0 }
 0x539   :  { %4947 = vmatmul.mubr.msk.bf16.vlgmr.msra.gmra.mxu1 %vm2139_vm3, %v935_v27  ;;  %4953 = vmatmul.mubr.msk.bf16.vlgmr.msra.gmra.mxu0 %vm2139_vm3, %v936_v42  ;;  %v1927_v16 = vcombine.low %v1695_v8, %v1702_v13  ;;  %v4776_v11 = vcombine.high %v1695_v8, %v1702_v13  ;;  %v1943_v33 = vcombine.low %v1711_v6, %v1718_v51 }
 0x53a   :  { %4957 = vmatpush3.bf16.xpose.msra.mxu1 %v2426_v19  ;;  %4963 = vmatpush3.bf16.xpose.msra.mxu0 %v2473_v39  ;;  %v4777_v35 = vcombine.high %v1711_v6, %v1718_v51  ;;  %v929_v40 = vcombine.low %v910_v10, %v926_v62  ;;  %v930_v41 = vcombine.high %v910_v10, %v926_v62 }
 0x53b   :  { %v1934_v12 = vrot.slane %v1927_v16, %v5519_v34  ;;  %v1942_v60 = vrot.slane %v4776_v11, %v5519_v34  ;;  %v1950_v25 = vrot.slane %v1943_v33, %v5519_v34  ;;  %4958 = vmatprep.mubr.msk.bf16.mxu1 %vm5289_vm2, %v6777_v26  ;;  %4964 = vmatprep.mubr.msk.bf16.mxu0 %vm5289_vm2, %v6777_v26 }
 0x53c   :  { %v1958_v9 = vrot.slane %v4777_v35, %v5519_v34  ;;  %v861_v15 = vcombine.low %v5854_v50, %v5861_v18  ;;  %v862_v14 = vcombine.high %v5854_v50, %v5861_v18  ;;  %4968 = vmatprep.subr.bf16.mxu1 %v6777_v26  ;;  %4974 = vmatprep.subr.bf16.mxu0 %v6777_v26 }
 0x53d   :  { %v1899_v17 = vrot.slane %v1891_v20, %v5538_v48  ;;  %v1915_v27 = vrot.slane %v1907_v57, %v5538_v48  ;;  %v1959_v38 = vcombine.low %v1934_v12, %v1942_v60  ;;  %v1960_v45 = vcombine.high %v1934_v12, %v1942_v60 }
 0x53e   :  { %v1975_v49 = vcombine.low %v1950_v25, %v1958_v9  ;;  %v1976_v36 = vcombine.high %v1950_v25, %v1958_v9  ;;  %v937_v29 = vpack.c.bf16 %v929_v40, %v861_v15  ;;  %v938_v43 = vpack.c.bf16 %v930_v41, %v862_v14 }
 0x53f   :  { %v1967_v44 = vrot.slane %v1959_v38, %v5538_v48  ;;  %v1974_v52 = vrot.slane %v1960_v45, %v5538_v48  ;;  %v1923_v63 = vcombine.low %v1899_v17, %v1915_v27  ;;  %v1924_v0 = vcombine.high %v1899_v17, %v1915_v27 }
 0x540   :  { %v1983_v50 = vrot.slane %v1975_v49, %v5538_v48  ;;  %v1990_v18 = vrot.slane %v1976_v36, %v5538_v48 }
 0x541   :  { %4959 = vmatmul.mubr.msk.bf16.vlgmr.msra.gmra.mxu1 %vm2139_vm3, %v937_v29  ;;  %4965 = vmatmul.mubr.msk.bf16.vlgmr.msra.gmra.mxu0 %vm2139_vm3, %v938_v43 }
 0x542   :  { %v1991_v2 = vcombine.low %v1967_v44, %v1983_v50  ;;  %v1992_v55 = vcombine.high %v1967_v44, %v1983_v50  ;;  %4970 = vmatprep.mubr.msk.bf16.mxu1 %vm5289_vm2, %v6777_v26  ;;  %v1993_v32 = vcombine.low %v1974_v52, %v1990_v18  ;;  %4976 = vmatprep.mubr.msk.bf16.mxu0 %vm5289_vm2, %v6777_v26 }
 0x543   :  { %v1994_v37 = vcombine.high %v1974_v52, %v1990_v18 }
 0x544   :  { %v2131_v42 = vpack.c.bf16 %v1991_v2, %v1923_v63  ;;  %v2132_v31 = vpack.c.bf16 %v1992_v55, %v1924_v0  ;;  %v5952_v46 = vpack.c.bf16 %v1993_v32, %v1925_v4 }
 0x545   :  { %v5954_v61 = vpack.c.bf16 %v1994_v37, %v1926_v5 }
 0x546   :  { %4969 = vmatpush3.bf16.msra.mxu1 %v2131_v42  ;;  %4975 = vmatpush3.bf16.msra.mxu0 %v2132_v31  ;;  %v6026_v31 = vpop.permute.xlu0 %1543 }
 0x547   :  { %4980 = vmatprep.subr.bf16.mxu1 %v6777_v26  ;;  %4986 = vmatprep.subr.bf16.mxu0 %v6777_v26 }
 0x5df   :  { %v5958_v59 = vpop.f32.mrf.mxu1 }
 0x5e0   :  { %v5960_v53 = vpop.f32.mrf.mxu0  ;;  %v2517_v23 = vsel %vm2516_vm4, %v5958_v59, -inf }
 0x5e1   :  { %2518 = vmax.xlane.f32.xlu0 %v2517_v23  ;;  %v4924_v47 = vpop.f32.mrf.mxu1  ;;  %v2523_v30 = vsel %vm2516_vm4, %v5960_v53, -inf  ;;  %v6028_v23 = vpop.permute.xlu0 %1559 }
 0x5e2   :  { %v4930_v10 = vpop.f32.mrf.mxu0 }
 0x5e3   :  { %v5964_v62 = vpop.f32.mrf.mxu1 }
 0x5e4   :  { %v5966_v20 = vpop.f32.mrf.mxu0  ;;  %v2520_v8 = vsel %vm2516_vm4, %v5964_v62, -inf }
 0x5e5   :  { %2524 = vmax.xlane.f32.xlu0 %v2523_v30  ;;  %2521 = vmax.xlane.f32.xlu1 %v2520_v8  ;;  %v4925_v13 = vpop.f32.mrf.mxu1  ;;  %v2526_v51 = vsel %vm2516_vm4, %v5966_v20, -inf }
 0x5e6   :  { %v4931_v6 = vpop.f32.mrf.mxu0 }
 0x5e9   :  { %2527 = vmax.xlane.f32.xlu0 %v2526_v51 }
 0x5ed   :  { %v5974_v19 = vpop.f32.mrf.mxu1  ;;  %v5976_v57 = vpop.f32.mrf.mxu0 }
 0x5ee   :  { %v2529_v4 = vsel %vm2516_vm4, %v5974_v19, -inf  ;;  %v2535_v35 = vsel %vm2516_vm4, %v5976_v57, -inf }
 0x5ef   :  { %v4942_v5 = vpop.f32.mrf.mxu0  ;;  %v4936_v39 = vpop.f32.mrf.mxu1  ;;  %2530 = vmax.xlane.f32.xlu0 %v2529_v4 }
 0x5f1   :  { %v5980_v16 = vpop.f32.mrf.mxu1  ;;  %v5982_v11 = vpop.f32.mrf.mxu0 }
 0x5f2   :  { %v2532_v33 = vsel %vm2516_vm4, %v5980_v16, -inf  ;;  %v2538_v12 = vsel %vm2516_vm4, %v5982_v11, -inf }
 0x5f3   :  { %v4943_v40 = vpop.f32.mrf.mxu0  ;;  %2533 = vmax.xlane.f32.xlu1 %v2532_v33  ;;  %v4937_v41 = vpop.f32.mrf.mxu1  ;;  %2536 = vmax.xlane.f32.xlu0 %v2535_v35 }
 0x5f7   :  { %2539 = vmax.xlane.f32.xlu1 %v2538_v12 }
 0x5f9   :  { %v5990_v60 = vpop.f32.mrf.mxu1  ;;  %v5992_v25 = vpop.f32.mrf.mxu0 }
 0x5fa   :  { %v2541_v9 = vsel %vm2516_vm4, %v5990_v60, -inf  ;;  %v2547_v45 = vsel %vm2516_vm4, %v5992_v25, -inf }
 0x5fb   :  { %v4948_v15 = vpop.f32.mrf.mxu1  ;;  %v4954_v14 = vpop.f32.mrf.mxu0  ;;  %2542 = vmax.xlane.f32.xlu0 %v2541_v9 }
 0x5fd   :  { %v5996_v17 = vpop.f32.mrf.mxu1  ;;  %v5998_v27 = vpop.f32.mrf.mxu0 }
 0x5fe   :  { %v2544_v38 = vsel %vm2516_vm4, %v5996_v17, -inf  ;;  %v2550_v44 = vsel %vm2516_vm4, %v5998_v27, -inf }
 0x5ff   :  { %v4955_v49 = vpop.f32.mrf.mxu0  ;;  %2545 = vmax.xlane.f32.xlu1 %v2544_v38  ;;  %v4949_v36 = vpop.f32.mrf.mxu1  ;;  %2548 = vmax.xlane.f32.xlu0 %v2547_v45 }
 0x601   :  { %v6004_v29 = vpop.f32.mrf.mxu1  ;;  %v6006_v43 = vpop.f32.mrf.mxu0 }
 0x602   :  { %v2553_v52 = vsel %vm2516_vm4, %v6004_v29, -inf  ;;  %v2559_v55 = vsel %vm2516_vm4, %v6006_v43, -inf }
 0x603   :  { %v4966_v50 = vpop.f32.mrf.mxu0  ;;  %2551 = vmax.xlane.f32.xlu1 %v2550_v44  ;;  %v4960_v18 = vpop.f32.mrf.mxu1  ;;  %2554 = vmax.xlane.f32.xlu0 %v2553_v52 }
 0x605   :  { %v6012_v63 = vpop.f32.mrf.mxu1  ;;  %v6014_v0 = vpop.f32.mrf.mxu0 }
 0x606   :  { %v2556_v2 = vsel %vm2516_vm4, %v6012_v63, -inf  ;;  %v2562_v42 = vsel %vm2516_vm4, %v6014_v0, -inf }
 0x607   :  { %v4967_v32 = vpop.f32.mrf.mxu0  ;;  %2557 = vmax.xlane.f32.xlu1 %v2556_v2  ;;  %v4961_v37 = vpop.f32.mrf.mxu1  ;;  %2560 = vmax.xlane.f32.xlu0 %v2559_v55 }
 0x60b   :  { %2563 = vmax.xlane.f32.xlu1 %v2562_v42 }
 0x61c   :  { %1561 = vrot.lane.b32.xlu1 %v5470_v21, %s5288_s24 }
 0x61d   :  { %1567 = vrot.lane.b32.xlu0 %v5474_v22, %s5288_s24 }
 0x66a   :  { %v2519_v47 = vpop.xlane.xlu0 %2518 }
 0x66b   :  { %v2565_v10 = vsub.f32 %v5958_v59, %v2519_v47 }
 0x66d   :  { %v2581_v30 = vmul.f32 1.442695, %v2565_v10 }
 0x66e   :  { %v2522_v8 = vpop.xlane.xlu1 %2521  ;;  %v2525_v13 = vpop.xlane.xlu0 %2524 }
 0x66f   :  { %5147 = vpow2.f32 %v2581_v30  ;;  %v2566_v6 = vsub.f32 %v5964_v62, %v2522_v8  ;;  %v2567_v51 = vsub.f32 %v5960_v53, %v2525_v13 }
 0x671   :  { %v2583_v4 = vmul.f32 1.442695, %v2566_v6  ;;  %v2585_v21 = vmul.f32 1.442695, %v2567_v51 }
 0x672   :  { %v2528_v5 = vpop.xlane.xlu0 %2527 }
 0x673   :  { %5149 = vpow2.f32 %v2583_v4  ;;  %v2568_v22 = vsub.f32 %v5966_v20, %v2528_v5 }
 0x674   :  { %5151 = vpow2.f32 %v2585_v21 }
 0x675   :  { %v2587_v39 = vmul.f32 1.442695, %v2568_v22 }
 0x677   :  { %5153 = vpow2.f32 %v2587_v39 }
 0x678   :  { %v2531_v33 = vpop.xlane.xlu0 %2530 }
 0x679   :  { %v2569_v59 = vsub.f32 %v5974_v19, %v2531_v33 }
 0x67b   :  { %v2589_v35 = vmul.f32 1.442695, %v2569_v59 }
 0x67c   :  { %v2534_v40 = vpop.xlane.xlu1 %2533  ;;  %v2537_v41 = vpop.xlane.xlu0 %2536 }
 0x67d   :  { %v6035_v12 = vpop.eup %5147  ;;  %v2570_v62 = vsub.f32 %v5980_v16, %v2534_v40  ;;  %5155 = vpow2.f32 %v2589_v35  ;;  %v2571_v53 = vsub.f32 %v5976_v57, %v2537_v41 }
 0x67e   :  { %v2613_v9 = vsel %vm2516_vm4, %v6035_v12, 0.0 }
 0x67f   :  { %v2591_v20 = vmul.f32 1.442695, %v2570_v62  ;;  %v2593_v15 = vmul.f32 1.442695, %v2571_v53  ;;  %2614 = vadd.xlane.f32.xlu0 %v2613_v9 }
 0x680   :  { %v2540_v14 = vpop.xlane.xlu1 %2539  ;;  %v6041_v38 = vpop.eup %5149 }
 0x681   :  { %5157 = vpow2.f32 %v2591_v20  ;;  %v2572_v19 = vsub.f32 %v5982_v11, %v2540_v14  ;;  %v6044_v45 = vpop.eup %5151  ;;  %v2616_v16 = vsel %vm2516_vm4, %v6041_v38, 0.0 }
 0x682   :  { %5159 = vpow2.f32 %v2593_v15  ;;  %2617 = vadd.xlane.f32.xlu1 %v2616_v16  ;;  %v2619_v57 = vsel %vm2516_vm4, %v6044_v45, 0.0 }
 0x683   :  { %v2595_v49 = vmul.f32 1.442695, %v2572_v19  ;;  %2620 = vadd.xlane.f32.xlu0 %v2619_v57 }
 0x684   :  { %v2543_v36 = vpop.xlane.xlu0 %2542  ;;  %v6050_v44 = vpop.eup %5153 }
 0x685   :  { %5161 = vpow2.f32 %v2595_v49  ;;  %v2573_v52 = vsub.f32 %v5990_v60, %v2543_v36  ;;  %v2622_v11 = vsel %vm2516_vm4, %v6050_v44, 0.0 }
 0x686   :  { %2623 = vadd.xlane.f32.xlu1 %v2622_v11 }
 0x687   :  { %v2597_v50 = vmul.f32 1.442695, %v2573_v52 }
 0x688   :  { %v2546_v18 = vpop.xlane.xlu1 %2545  ;;  %v2549_v2 = vpop.xlane.xlu0 %2548 }
 0x689   :  { %v2574_v55 = vsub.f32 %v5996_v17, %v2546_v18  ;;  %5163 = vpow2.f32 %v2597_v50  ;;  %v2575_v32 = vsub.f32 %v5992_v25, %v2549_v2 }
 0x68a   :  { %v6057_v37 = vpop.eup %5155 }
 0x68b   :  { %v2599_v42 = vmul.f32 1.442695, %v2574_v55  ;;  %v2601_v47 = vmul.f32 1.442695, %v2575_v32  ;;  %v2625_v10 = vsel %vm2516_vm4, %v6057_v37, 0.0 }
 0x68c   :  { %v2552_v60 = vpop.xlane.xlu1 %2551  ;;  %v2555_v30 = vpop.xlane.xlu0 %2554  ;;  %2626 = vadd.xlane.f32.xlu0 %v2625_v10  ;;  %v1723_v10 = vcombine.low %v6026_v31, %v6028_v23 }
 0x68d   :  { %5165 = vpow2.f32 %v2599_v42  ;;  %v2576_v8 = vsub.f32 %v5998_v27, %v2552_v60  ;;  %v2577_v13 = vsub.f32 %v6004_v29, %v2555_v30 }
 0x68e   :  { %v6063_v6 = vpop.eup %5157  ;;  %5167 = vpow2.f32 %v2601_v47 }
 0x68f   :  { %v6065_v17 = vpop.eup %5159  ;;  %v2603_v25 = vmul.f32 1.442695, %v2576_v8  ;;  %v2605_v51 = vmul.f32 1.442695, %v2577_v13  ;;  %v2628_v4 = vsel %vm2516_vm4, %v6063_v6, 0.0  ;;  %v1724_v8 = vcombine.high %v6026_v31, %v6028_v23 }
 0x690   :  { %v2558_v21 = vpop.xlane.xlu1 %2557  ;;  %2629 = vadd.xlane.f32.xlu1 %v2628_v4  ;;  %v2561_v5 = vpop.xlane.xlu0 %2560  ;;  %v2631_v22 = vsel %vm2516_vm4, %v6065_v17, 0.0 }
 0x691   :  { %5169 = vpow2.f32 %v2603_v25  ;;  %v2579_v27 = vsub.f32 %v6006_v43, %v2561_v5  ;;  %2632 = vadd.xlane.f32.xlu0 %v2631_v22  ;;  %v2578_v52 = vsub.f32 %v6012_v63, %v2558_v21  ;;  %v1738_v22 = vrot.slane %v1724_v8, %v5519_v34 }
 0x692   :  { %v6072_v29 = vpop.eup %5161  ;;  %5171 = vpow2.f32 %v2605_v51  ;;  %v1731_v51 = vrot.slane %v1723_v10, %v5519_v34 }
 0x693   :  { %v2609_v39 = vmul.f32 1.442695, %v2579_v27  ;;  %v2634_v59 = vsel %vm2516_vm4, %v6072_v29, 0.0  ;;  %v2607_v11 = vmul.f32 1.442695, %v2578_v52 }
 0x694   :  { %v2564_v33 = vpop.xlane.xlu1 %2563  ;;  %v1568_v2 = vpop.permute.xlu0 %1567 }
 0x695   :  { %v2580_v35 = vsub.f32 %v6014_v0, %v2564_v33  ;;  %2635 = vadd.xlane.f32.xlu0 %v2634_v59  ;;  %5173 = vpow2.f32 %v2609_v39  ;;  %v1739_v63 = vcombine.low %v5812_v54, %v1568_v2  ;;  %v1740_v60 = vcombine.high %v5812_v54, %v1568_v2 }
 0x696   :  { %v6077_v40 = vpop.eup %5163 }
 0x697   :  { %v2611_v41 = vmul.f32 1.442695, %v2580_v35  ;;  %v2637_v62 = vsel %vm2516_vm4, %v6077_v40, 0.0  ;;  %v1747_v13 = vrot.slane %v1739_v63, %v5519_v34  ;;  %v1754_v4 = vrot.slane %v1740_v60, %v5519_v34 }
 0x698   :  { %v6112_v55 = vpop.permute.xlu1 %1561 }
 0x699   :  { %5175 = vpow2.f32 %v2611_v41  ;;  %2638 = vadd.xlane.f32.xlu0 %v2637_v62  ;;  %v1755_v27 = vcombine.low %v1731_v51, %v1747_v13  ;;  %v1756_v54 = vcombine.high %v1731_v51, %v1747_v13  ;;  %v1771_v59 = vcombine.low %v1738_v22, %v1754_v4 }
 0x69a   :  { %v6081_v43 = vpop.eup %5165  ;;  %5177 = vpow2.f32 %v2607_v11  ;;  %v1772_v35 = vcombine.high %v1738_v22, %v1754_v4  ;;  %v1791_v10 = vcombine.low %v5791_v28, %v6112_v55 }
 0x69b   :  { %v6083_v53 = vpop.eup %5167  ;;  %v2640_v9 = vsel %vm2516_vm4, %v6081_v43, 0.0 }
 0x69c   :  { %2641 = vadd.xlane.f32.xlu1 %v2640_v9  ;;  %v2643_v0 = vsel %vm2516_vm4, %v6083_v53, 0.0  ;;  %v1763_v9 = vrot.slane %v1755_v27, %v5538_v48 }
 0x69d   :  { %2644 = vadd.xlane.f32.xlu0 %v2643_v0 }
 0x69e   :  { %v6089_v20 = vpop.eup %5169 }
 0x69f   :  { %v6091_v15 = vpop.eup %5171  ;;  %v2646_v14 = vsel %vm2516_vm4, %v6089_v20, 0.0 }
 0x6a0   :  { %2647 = vadd.xlane.f32.xlu1 %v2646_v14  ;;  %v2649_v19 = vsel %vm2516_vm4, %v6091_v15, 0.0  ;;  %v1770_v14 = vrot.slane %v1756_v54, %v5538_v48 }
 0x6a1   :  { %2650 = vadd.xlane.f32.xlu0 %v2649_v19 }
 0x6a2   :  { %v6097_v16 = vpop.eup %5173  ;;  %v4778_v11 = vcombine.high %v1763_v9, %v1770_v14 }
 0x6a3   :  { %v2655_v49 = vsel %vm2516_vm4, %v6097_v16, 0.0 }
 0x6a5   :  { %2656 = vadd.xlane.f32.xlu0 %v2655_v49  ;;  %v1786_v49 = vrot.slane %v1772_v35, %v5538_v48 }
 0x6a6   :  { %v6101_v57 = vpop.eup %5175 }
 0x6a7   :  { %v2658_v36 = vsel %vm2516_vm4, %v6101_v57, 0.0  ;;  %v6108_v50 = vpop.eup %5177 }
 0x6a8   :  { %v2652_v18 = vsel %vm2516_vm4, %v6108_v50, 0.0 }
 0x6a9   :  { %2659 = vadd.xlane.f32.xlu0 %v2658_v36 }
 0x6b1   :  { %1569 = vrot.lane.b32.xlu1 %v5481_v24, %s5288_s24 }
 0x6d5   :  { %2653 = vadd.xlane.f32.xlu1 %v2652_v18 }
 0x708   :  { %v2615_v32 = vpop.xlane.xlu0 %2614 }
 0x709   :  { %5179 = vrcp.f32 %v2615_v32 }
 0x70b   :  { %v2618_v42 = vpop.xlane.xlu1 %2617 }
 0x70c   :  { %5181 = vrcp.f32 %v2618_v42  ;;  %v2621_v47 = vpop.xlane.xlu0 %2620 }
 0x70d   :  { %5183 = vrcp.f32 %v2621_v47 }
 0x70f   :  { %v2624_v24 = vpop.xlane.xlu1 %2623 }
 0x710   :  { %5185 = vrcp.f32 %v2624_v24 }
 0x715   :  { %v2627_v30 = vpop.xlane.xlu0 %2626 }
 0x716   :  { %5187 = vrcp.f32 %v2627_v30  ;;  %v5180_v25 = vpop.eup %5179  ;;  %v6162_v30 = vrot.slane %v4778_v11, %v5519_v34 }
 0x717   :  { %v6125_v33 = vmul.f32 %v5180_v25, %v6035_v12 }
 0x719   :  { %v2630_v21 = vpop.xlane.xlu1 %2629  ;;  %v5182_v5 = vpop.eup %5181 }
 0x71a   :  { %5189 = vrcp.f32 %v2630_v21  ;;  %v2633_v39 = vpop.xlane.xlu0 %2632  ;;  %v6128_v31 = vmul.f32 %v5182_v5, %v6041_v38  ;;  %v5184_v23 = vpop.eup %5183  ;;  %v1779_v38 = vrot.slane %v1771_v59, %v5538_v48  ;;  %v1799_v5 = vrot.slane %v1791_v10, %v5519_v34 }
 0x71b   :  { %5191 = vrcp.f32 %v2633_v39  ;;  %v2666_v19 = vmul.f32 %v5184_v23, %v6044_v45 }
 0x71c   :  { %v3119_v41 = vpack.c.bf16 %v6128_v31, %v6125_v33  ;;  %v2011_v18 = vcombine.low %v1779_v38, %v1786_v49  ;;  %v4779_v2 = vcombine.high %v1779_v38, %v1786_v49 }
 0x71d   :  { %v5186_v62 = vpop.eup %5185 }
 0x71e   :  { %v2636_v0 = vpop.xlane.xlu0 %2635  ;;  %v6136_v12 = vmul.f32 %v5186_v62, %v6050_v44  ;;  %4971 = vmatmul.mubr.msk.bf16.vlgmr.msra.gmra.mxu1 %vm2516_vm4, %v3119_v41  ;;  %v1995_v44 = vcombine.low %v1763_v9, %v1770_v14  ;;  %v6165_v8 = vrot.slane %v2011_v18, %v5519_v34  ;;  %v6168_v13 = vrot.slane %v4779_v2, %v5519_v34 }
 0x71f   :  { %5193 = vrcp.f32 %v2636_v0  ;;  %4981 = vmatpush3.bf16.msra.mxu1 %v5952_v46  ;;  %4982 = vmatprep.mubr.msk.bf16.mxu1 %vm5289_vm2, %v6777_v26 }
 0x720   :  { %v3120_v36 = vpack.c.bf16 %v6136_v12, %v2666_v19  ;;  %4992 = vmatprep.subr.bf16.mxu1 %v6777_v26 }
 0x722   :  { %v2639_v45 = vpop.xlane.xlu0 %2638  ;;  %4977 = vmatmul.mubr.msk.bf16.vlgmr.msra.gmra.mxu0 %vm2516_vm4, %v3120_v36 }
 0x723   :  { %v5188_v52 = vpop.eup %5187  ;;  %4987 = vmatpush3.bf16.msra.mxu0 %v5954_v61  ;;  %4988 = vmatprep.mubr.msk.bf16.mxu0 %vm5289_vm2, %v6777_v26  ;;  %v6159_v61 = vrot.slane %v1995_v44, %v5519_v34  ;;  %5195 = vrcp.f32 %v2639_v45 }
 0x724   :  { %v2670_v32 = vmul.f32 %v5188_v52, %v6057_v37  ;;  %4998 = vmatprep.subr.bf16.mxu0 %v6777_v26  ;;  %v1792_v37 = vcombine.high %v5791_v28, %v6112_v55 }
 0x725   :  { %v2642_v46 = vpop.xlane.xlu1 %2641  ;;  %v2028_v44 = vcombine.high %v6159_v61, %v6162_v30 }
 0x726   :  { %v2645_v42 = vpop.xlane.xlu0 %2644  ;;  %v2693_v47 = vcombine.low %v6125_v33, %v2670_v32  ;;  %v2694_v24 = vcombine.high %v6125_v33, %v2670_v32  ;;  %5197 = vrcp.f32 %v2642_v46  ;;  %v1806_v54 = vrot.slane %v1792_v37, %v5519_v34 }
 0x727   :  { %v5190_v63 = vpop.eup %5189  ;;  %v2043_v33 = vcombine.low %v6165_v8, %v6168_v13 }
 0x728   :  { %v5192_v60 = vpop.eup %5191  ;;  %v6171_v25 = vmul.f32 %v5190_v63, %v6063_v6  ;;  %v6192_v35 = vrot.slane %v2693_v47, %v5519_v34  ;;  %v2044_v63 = vcombine.high %v6165_v8, %v6168_v13 }
 0x729   :  { %v2674_v51 = vmul.f32 %v5192_v60, %v6065_v17  ;;  %v2648_v4 = vpop.xlane.xlu1 %2647  ;;  %v2027_v17 = vcombine.low %v6159_v61, %v6162_v30 }
 0x72a   :  { %v3121_v28 = vpack.c.bf16 %v6171_v25, %v2670_v32  ;;  %v2761_v55 = vcombine.low %v6128_v31, %v6171_v25  ;;  %v2762_v21 = vcombine.high %v6128_v31, %v6171_v25  ;;  %v2651_v22 = vpop.xlane.xlu0 %2650 }
 0x72b   :  { %v2709_v27 = vcombine.low %v2666_v19, %v2674_v51  ;;  %v2710_v39 = vcombine.high %v2666_v19, %v2674_v51  ;;  %5199 = vrcp.f32 %v2651_v22  ;;  %v2042_v22 = vrot.slane %v2028_v44, %v5538_v48 }
 0x72c   :  { %v5194_v6 = vpop.eup %5193  ;;  %4983 = vmatmul.mubr.msk.bf16.vlgmr.msra.gmra.mxu1 %vm2516_vm4, %v3121_v28  ;;  %5201 = vrcp.f32 %v2645_v42  ;;  %v6220_v11 = vrot.slane %v2761_v55, %v5519_v34 }
 0x72d   :  { %v6187_v23 = vmul.f32 %v5194_v6, %v6072_v29  ;;  %v1570_v59 = vpop.permute.xlu1 %1569  ;;  %4994 = vmatprep.mubr.msk.bf16.mxu1 %vm5289_vm2, %v6777_v26  ;;  %v6195_v41 = vrot.slane %v2709_v27, %v5519_v34  ;;  %v6198_v62 = vrot.slane %v2710_v39, %v5519_v34  ;;  %v6203_v29 = vrot.slane %v2694_v24, %v5519_v34 }
 0x72e   :  { %v1807_v9 = vcombine.low %v5826_v56, %v1570_v59  ;;  %v1808_v0 = vcombine.high %v5826_v56, %v1570_v59  ;;  %v2657_v14 = vpop.xlane.xlu0 %2656  ;;  %v2035_v24 = vrot.slane %v2027_v17, %v5538_v48  ;;  %v2058_v17 = vrot.slane %v2044_v63, %v5538_v48 }
 0x72f   :  { %v3122_v19 = vpack.c.bf16 %v6187_v23, %v2674_v51  ;;  %v2777_v38 = vcombine.low %v6136_v12, %v6187_v23  ;;  %v2725_v49 = vcombine.low %v6192_v35, %v6195_v41  ;;  %v2726_v36 = vcombine.high %v6192_v35, %v6195_v41 }
 0x730   :  { %v1815_v45 = vrot.slane %v1807_v9, %v5519_v34  ;;  %v1822_v56 = vrot.slane %v1808_v0, %v5519_v34  ;;  %5203 = vrcp.f32 %v2657_v14  ;;  %v2051_v51 = vrot.slane %v2043_v33, %v5538_v48  ;;  %v5196_v8 = vpop.eup %5195 }
 0x731   :  { %5205 = vrcp.f32 %v2648_v4  ;;  %4989 = vmatmul.mubr.msk.bf16.vlgmr.msra.gmra.mxu0 %vm2516_vm4, %v3122_v19  ;;  %v6223_v18 = vrot.slane %v2777_v38, %v5519_v34  ;;  %v6249_v0 = vrot.slane %v2762_v21, %v5519_v34  ;;  %v2778_v14 = vcombine.high %v6136_v12, %v6187_v23 }
 0x732   :  { %v1823_v2 = vcombine.low %v1799_v5, %v1815_v45  ;;  %v1824_v32 = vcombine.high %v1799_v5, %v1815_v45  ;;  %v1839_v46 = vcombine.low %v1806_v54, %v1822_v56  ;;  %v1840_v42 = vcombine.high %v1806_v54, %v1822_v56  ;;  %5000 = vmatprep.mubr.msk.bf16.mxu0 %vm5289_vm2, %v6777_v26  ;;  %v2660_v47 = vpop.xlane.xlu0 %2659 }
 0x733   :  { %v2793_v10 = vcombine.low %v6220_v11, %v6223_v18  ;;  %5207 = vrcp.f32 %v2660_v47  ;;  %v5198_v27 = vpop.eup %5197  ;;  %v2059_v54 = vcombine.low %v2035_v24, %v2051_v51  ;;  %v2678_v19 = vmul.f32 %v5196_v8, %v6077_v40 }
 0x734   :  { %v1831_v61 = vrot.slane %v1823_v2, %v5538_v48  ;;  %v1838_v60 = vrot.slane %v1824_v32, %v5538_v48  ;;  %v1847_v30 = vrot.slane %v1839_v46, %v5538_v48  ;;  %v1854_v4 = vrot.slane %v1840_v42, %v5538_v48 }
 0x735   :  { %v6258_v46 = vrot.slane %v2778_v14, %v5519_v34  ;;  %v2060_v42 = vcombine.high %v2035_v24, %v2051_v51  ;;  %v2062_v51 = vcombine.high %v2042_v22, %v2058_v17  ;;  %v6782_v35 = vcombine.low %v6203_v29, %v6198_v62 }
 0x736   :  { %v2063_v28 = vcombine.low %v1831_v61, %v1838_v60  ;;  %v4780_v55 = vcombine.high %v1831_v61, %v1838_v60  ;;  %v2079_v13 = vcombine.low %v1847_v30, %v1854_v4  ;;  %v4781_v5 = vcombine.high %v1847_v30, %v1854_v4 }
 0x737   :  { %v2680_v60 = vmul.f32 %v5198_v27, %v6081_v43  ;;  %v2749_v41 = vrot.slane %v6782_v35, %v5538_v48 }
 0x738   :  { %v2070_v39 = vrot.slane %v2063_v28, %v5519_v34  ;;  %v2078_v6 = vrot.slane %v4780_v55, %v5519_v34  ;;  %v5200_v59 = vpop.eup %5199  ;;  %v2086_v33 = vrot.slane %v2079_v13, %v5519_v34  ;;  %v2094_v9 = vrot.slane %v4781_v5, %v5519_v34 }
 0x739   :  { %v6255_v38 = vmul.f32 %v5200_v59, %v6091_v15  ;;  %v5202_v44 = vpop.eup %5201  ;;  %v2061_v13 = vcombine.low %v2042_v22, %v2058_v17  ;;  %v3123_v24 = vpack.c.bf16 %v2680_v60, %v2678_v19 }
 0x73a   :  { %v2095_v45 = vcombine.low %v2070_v39, %v2078_v6  ;;  %v2096_v56 = vcombine.high %v2070_v39, %v2078_v6  ;;  %v2111_v2 = vcombine.low %v2086_v33, %v2094_v9  ;;  %v2112_v32 = vcombine.high %v2086_v33, %v2094_v9 }
 0x73b   :  { %v2829_v40 = vcombine.low %v2678_v19, %v6255_v38  ;;  %v2830_v15 = vcombine.high %v2678_v19, %v6255_v38  ;;  %v2682_v30 = vmul.f32 %v5202_v44, %v6083_v53 }
 0x73c   :  { %v2103_v25 = vrot.slane %v2095_v45, %v5538_v48  ;;  %v2110_v12 = vrot.slane %v2096_v56, %v5538_v48  ;;  %v2119_v23 = vrot.slane %v2111_v2, %v5538_v48  ;;  %v2126_v47 = vrot.slane %v2112_v32, %v5538_v48 }
 0x73d   :  { %v5204_v21 = vpop.eup %5203  ;;  %v6277_v53 = vrot.slane %v2829_v40, %v5519_v34  ;;  %v6283_v14 = vrot.slane %v2830_v15, %v5519_v34 }
 0x73e   :  { %v5206_v61 = vpop.eup %5205  ;;  %v2690_v4 = vmul.f32 %v5204_v21, %v6097_v16  ;;  %v2127_v55 = vcombine.low %v2103_v25, %v2119_v23  ;;  %v2128_v8 = vcombine.high %v2103_v25, %v2119_v23  ;;  %v2129_v5 = vcombine.low %v2110_v12, %v2126_v47 }
 0x73f   :  { %v2684_v59 = vmul.f32 %v5206_v61, %v6089_v20  ;;  %v2130_v43 = vcombine.high %v2110_v12, %v2126_v47 }
 0x740   :  { %v2845_v39 = vcombine.low %v2682_v30, %v2690_v4  ;;  %v2846_v6 = vcombine.high %v2682_v30, %v2690_v4  ;;  %v2135_v33 = vpack.c.bf16 %v2127_v55, %v2059_v54  ;;  %v2136_v9 = vpack.c.bf16 %v2128_v8, %v2060_v42  ;;  %v5208_v27 = vpop.eup %5207 }
 0x741   :  { %v2692_v22 = vmul.f32 %v5208_v27, %v6101_v57  ;;  %v3124_v20 = vpack.c.bf16 %v2684_v59, %v2682_v30  ;;  %v2137_v54 = vpack.c.bf16 %v2129_v5, %v2061_v13  ;;  %v2138_v44 = vpack.c.bf16 %v2130_v43, %v2062_v51 }
 0x742   :  { %v6280_v16 = vrot.slane %v2845_v39, %v5519_v34  ;;  %v6286_v19 = vrot.slane %v2846_v6, %v5519_v34  ;;  %4993 = vmatpush3.bf16.msra.mxu1 %v2135_v33  ;;  %4999 = vmatpush3.bf16.msra.mxu0 %v2136_v9 }
 0x743   :  { %5004 = vmatprep.subr.bf16.mxu1 %v6777_v26  ;;  %5010 = vmatprep.subr.bf16.mxu0 %v6777_v26  ;;  %v2913_v2 = vcombine.low %v2684_v59, %v2692_v22  ;;  %v2914_v57 = vcombine.high %v2684_v59, %v2692_v22  ;;  %v3126_v25 = vpack.c.bf16 %v2692_v22, %v2690_v4 }
 0x744   :  { %v2861_v17 = vcombine.low %v6277_v53, %v6280_v16  ;;  %v2862_v45 = vcombine.high %v6277_v53, %v6280_v16  ;;  %v2877_v56 = vcombine.low %v6283_v14, %v6286_v19  ;;  %v2878_v32 = vcombine.high %v6283_v14, %v6286_v19 }
 0x745   :  { %4995 = vmatmul.mubr.msk.bf16.vlgmr.msra.gmra.mxu1 %vm2516_vm4, %v3123_v24  ;;  %5001 = vmatmul.mubr.msk.bf16.vlgmr.msra.gmra.mxu0 %vm2516_vm4, %v3124_v20  ;;  %v6313_v61 = vrot.slane %v2913_v2, %v5519_v34  ;;  %v6319_v4 = vrot.slane %v2914_v57, %v5519_v34 }
 0x746   :  { %5005 = vmatpush3.bf16.msra.mxu1 %v2137_v54  ;;  %5011 = vmatpush3.bf16.msra.mxu0 %v2138_v44  ;;  %v2885_v53 = vrot.slane %v2877_v56, %v5538_v48  ;;  %v5130_v56 = vld [vmem:[%s6766_s1 + $0x90] sm:$0xff]  }
 0x747   :  { %5012 = vmatprep.mubr.msk.bf16.mxu0 %vm5289_vm2, %v6777_v26  ;;  %5006 = vmatprep.mubr.msk.bf16.mxu1 %vm5289_vm2, %v6777_v26 }
 0x74d   :  { %5013 = vmatmul.mubr.msk.bf16.vlgmr.msra.gmra.mxu0 %vm2516_vm4, %v3126_v25 }
 0x75e   :  { %v2654_v12 = vpop.xlane.xlu1 %2653 }
 0x75f   :  { %5209 = vrcp.f32 %v2654_v12 }
 0x76c   :  { %v5210_v40 = vpop.eup %5209 }
 0x76d   :  { %v2688_v15 = vmul.f32 %v5210_v40, %v6108_v50 }
 0x76f   :  { %v3125_v21 = vpack.c.bf16 %v2688_v15, %v6255_v38  ;;  %v2897_v23 = vcombine.low %v2680_v60, %v2688_v15  ;;  %v2898_v42 = vcombine.high %v2680_v60, %v2688_v15 }
 0x771   :  { %5007 = vmatmul.mubr.msk.bf16.vlgmr.msra.gmra.mxu1 %vm2516_vm4, %v3125_v21  ;;  %v6310_v47 = vrot.slane %v2897_v23, %v5519_v34  ;;  %v6316_v30 = vrot.slane %v2898_v42, %v5519_v34 }
 0x773   :  { %v2929_v50 = vcombine.low %v6310_v47, %v6313_v61  ;;  %v2930_v38 = vcombine.high %v6310_v47, %v6313_v61  ;;  %v2945_v60 = vcombine.low %v6316_v30, %v6319_v4  ;;  %v2946_v55 = vcombine.high %v6316_v30, %v6319_v4 }
 0x774   :  { %v2895_v47 = vcombine.high %v2885_v53, %v6777_v26 }
 0x775   :  { %v2953_v16 = vrot.slane %v2945_v60, %v5538_v48  ;;  %v6626_v60 = vrot.slane %v2946_v55, %v5538_v48 }
 0x777   :  { %v2963_v61 = vcombine.high %v2953_v16, %v6777_v26 }
 0x7de   :  { %v3164_v8 = vpop.f32.mrf.mxu1 }
 0x7e0   :  { %v4972_v13 = vpop.f32.mrf.mxu1 }
 0x7e2   :  { %v3167_v5 = vpop.f32.mrf.mxu1  ;;  %v3208_v24 = vpop.f32.mrf.mxu0 }
 0x7e4   :  { %v4973_v51 = vpop.f32.mrf.mxu1  ;;  %v4978_v39 = vpop.f32.mrf.mxu0 }
 0x7e6   :  { %v3211_v6 = vpop.f32.mrf.mxu0 }
 0x7e8   :  { %v4979_v59 = vpop.f32.mrf.mxu0 }
 0x7ec   :  { %v3252_v33 = vpop.f32.mrf.mxu1 }
 0x7ed   :  { %v3479_v43 = vcombine.low %v3164_v8, %v3252_v33  ;;  %v3480_v27 = vcombine.high %v3164_v8, %v3252_v33 }
 0x7ee   :  { %v4984_v9 = vpop.f32.mrf.mxu1 }
 0x7ef   :  { %v3487_v25 = vrot.slane %v3479_v43, %v5519_v34  ;;  %v3494_v12 = vrot.slane %v3480_v27, %v5519_v34 }
 0x7f0   :  { %v3255_v22 = vpop.f32.mrf.mxu1 }
 0x7f1   :  { %v3296_v20 = vpop.f32.mrf.mxu0  ;;  %v3547_v21 = vcombine.low %v3167_v5, %v3255_v22  ;;  %v3548_v23 = vcombine.high %v3167_v5, %v3255_v22 }
 0x7f2   :  { %v4985_v54 = vpop.f32.mrf.mxu1  ;;  %v3495_v44 = vcombine.low %v3208_v24, %v3296_v20  ;;  %v3496_v2 = vcombine.high %v3208_v24, %v3296_v20 }
 0x7f3   :  { %v4990_v57 = vpop.f32.mrf.mxu0  ;;  %v3555_v54 = vrot.slane %v3547_v21, %v5519_v34  ;;  %v3562_v5 = vrot.slane %v3548_v23, %v5519_v34 }
 0x7f4   :  { %v3503_v40 = vrot.slane %v3495_v44, %v5519_v34  ;;  %v3510_v15 = vrot.slane %v3496_v2, %v5519_v34 }
 0x7f5   :  { %v3299_v42 = vpop.f32.mrf.mxu0 }
 0x7f6   :  { %v3511_v13 = vcombine.low %v3487_v25, %v3503_v40  ;;  %v3512_v51 = vcombine.high %v3487_v25, %v3503_v40  ;;  %v3527_v8 = vcombine.low %v3494_v12, %v3510_v15  ;;  %v3528_v39 = vcombine.high %v3494_v12, %v3510_v15 }
 0x7f7   :  { %v3563_v59 = vcombine.low %v3211_v6, %v3299_v42  ;;  %v3564_v33 = vcombine.high %v3211_v6, %v3299_v42  ;;  %v4991_v9 = vpop.f32.mrf.mxu0 }
 0x7f8   :  { %v3519_v24 = vrot.slane %v3511_v13, %v5538_v48  ;;  %v3526_v43 = vrot.slane %v3512_v51, %v5538_v48  ;;  %v3535_v27 = vrot.slane %v3527_v8, %v5538_v48  ;;  %v3542_v20 = vrot.slane %v3528_v39, %v5538_v48 }
 0x7f9   :  { %v3571_v22 = vrot.slane %v3563_v59, %v5519_v34  ;;  %v3578_v44 = vrot.slane %v3564_v33, %v5519_v34 }
 0x7fa   :  { %v3751_v2 = vcombine.low %v3519_v24, %v3526_v43  ;;  %v4798_v57 = vcombine.high %v3519_v24, %v3526_v43  ;;  %v3767_v6 = vcombine.low %v3535_v27, %v3542_v20  ;;  %v4799_v25 = vcombine.high %v3535_v27, %v3542_v20 }
 0x7fb   :  { %v3579_v12 = vcombine.low %v3555_v54, %v3571_v22  ;;  %v3580_v40 = vcombine.high %v3555_v54, %v3571_v22  ;;  %v3595_v15 = vcombine.low %v3562_v5, %v3578_v44  ;;  %v3596_v42 = vcombine.high %v3562_v5, %v3578_v44 }
 0x7fc   :  { %v3758_v13 = vrot.slane %v3751_v2, %v5519_v34  ;;  %v3766_v51 = vrot.slane %v4798_v57, %v5519_v34  ;;  %v3774_v21 = vrot.slane %v3767_v6, %v5519_v34  ;;  %v3782_v23 = vrot.slane %v4799_v25, %v5519_v34 }
 0x7fd   :  { %v3587_v8 = vrot.slane %v3579_v12, %v5538_v48  ;;  %v3594_v39 = vrot.slane %v3580_v40, %v5538_v48  ;;  %v3603_v59 = vrot.slane %v3595_v15, %v5538_v48  ;;  %v3610_v33 = vrot.slane %v3596_v42, %v5538_v48 }
 0x7fe   :  { %v3784_v9 = vcombine.high %v3758_v13, %v3766_v51  ;;  %v3800_v24 = vcombine.high %v3774_v21, %v3782_v23  ;;  %v3783_v43 = vcombine.low %v3758_v13, %v3766_v51  ;;  %v3799_v27 = vcombine.low %v3774_v21, %v3782_v23 }
 0x7ff   :  { %v3819_v20 = vcombine.low %v3587_v8, %v3594_v39  ;;  %v4800_v54 = vcombine.high %v3587_v8, %v3594_v39  ;;  %v3835_v5 = vcombine.low %v3603_v59, %v3610_v33  ;;  %v4801_v22 = vcombine.high %v3603_v59, %v3610_v33 }
 0x800   :  { %v6350_v44 = vrot.slane %v3783_v43, %v5538_v48  ;;  %v6353_v2 = vrot.slane %v3799_v27, %v5538_v48  ;;  %v3798_v40 = vrot.slane %v3784_v9, %v5538_v48  ;;  %v3814_v15 = vrot.slane %v3800_v24, %v5538_v48 }
 0x801   :  { %v3826_v57 = vrot.slane %v3819_v20, %v5519_v34  ;;  %v3834_v6 = vrot.slane %v4800_v54, %v5519_v34  ;;  %v3842_v25 = vrot.slane %v3835_v5, %v5519_v34  ;;  %v3850_v12 = vrot.slane %v4801_v22, %v5519_v34 }
 0x802   :  { %v3815_v42 = vcombine.low %v6350_v44, %v6353_v2  ;;  %v3817_v24 = vcombine.low %v3798_v40, %v3814_v15  ;;  %v3816_v20 = vcombine.high %v6350_v44, %v6353_v2 }
 0x803   :  { %v3852_v13 = vcombine.high %v3826_v57, %v3834_v6  ;;  %v3868_v51 = vcombine.high %v3842_v25, %v3850_v12  ;;  %v3851_v21 = vcombine.low %v3826_v57, %v3834_v6  ;;  %v3867_v23 = vcombine.low %v3842_v25, %v3850_v12 }
 0x805   :  { %v3866_v8 = vrot.slane %v3852_v13, %v5538_v48  ;;  %v3882_v39 = vrot.slane %v3868_v51, %v5538_v48  ;;  %v6366_v59 = vrot.slane %v3851_v21, %v5538_v48  ;;  %v6369_v33 = vrot.slane %v3867_v23, %v5538_v48  ;;  %v3340_v9 = vpop.f32.mrf.mxu1  ;;  %v3384_v43 = vpop.f32.mrf.mxu0 }
 0x806   :  { %v3818_v21 = vcombine.high %v3798_v40, %v3814_v15 }
 0x807   :  { %v3885_v27 = vcombine.low %v3866_v8, %v3882_v39  ;;  %v3884_v54 = vcombine.high %v6366_v59, %v6369_v33  ;;  %v3883_v5 = vcombine.low %v6366_v59, %v6369_v33  ;;  %v4996_v22 = vpop.f32.mrf.mxu1  ;;  %v5002_v57 = vpop.f32.mrf.mxu0  ;;  %v3886_v12 = vcombine.high %v3866_v8, %v3882_v39 }
 0x809   :  { %v5084_v6 = vpack.i.bf16 %v3885_v27, %v3817_v24  ;;  %v5079_v25 = vpack.i.bf16 %v3884_v54, %v3816_v20  ;;  %v3343_v13 = vpop.f32.mrf.mxu1  ;;  %v3387_v51 = vpop.f32.mrf.mxu0  ;;  %v5089_v31 = vpack.i.bf16 %v3886_v12, %v3818_v21 }
 0x80b   :  { %5085 = vrot.lane.b32.xlu1 %v5084_v6, %s5292_s25  ;;  %5080 = vrot.lane.b32.xlu0 %v5079_v25, %s5293_s26  ;;  %v4997_v23 = vpop.f32.mrf.mxu1  ;;  %v5003_v28 = vpop.f32.mrf.mxu0 }
 0x80d   :  { %v3472_v63 = vpop.f32.mrf.mxu0 }
 0x80e   :  { %v3631_v8 = vcombine.low %v3384_v43, %v3472_v63  ;;  %v3632_v39 = vcombine.high %v3384_v43, %v3472_v63 }
 0x80f   :  { %5090 = vrot.lane.b32.xlu0 %v5089_v31, %s5294_s27  ;;  %v5014_v22 = vpop.f32.mrf.mxu0 }
 0x810   :  { %v3639_v52 = vrot.slane %v3631_v8, %v5519_v34  ;;  %v3646_v40 = vrot.slane %v3632_v39, %v5519_v34 }
 0x811   :  { %v3475_v24 = vpop.f32.mrf.mxu0 }
 0x812   :  { %v3699_v25 = vcombine.low %v3387_v51, %v3475_v24  ;;  %v3700_v12 = vcombine.high %v3387_v51, %v3475_v24 }
 0x813   :  { %v5015_v27 = vpop.f32.mrf.mxu0 }
 0x814   :  { %v3714_v51 = vrot.slane %v3700_v12, %v5519_v34 }
 0x831   :  { %v3428_v20 = vpop.f32.mrf.mxu1 }
 0x832   :  { %v3615_v54 = vcombine.low %v3340_v9, %v3428_v20  ;;  %v3616_v57 = vcombine.high %v3340_v9, %v3428_v20 }
 0x833   :  { %v5008_v6 = vpop.f32.mrf.mxu1 }
 0x834   :  { %v3623_v28 = vrot.slane %v3615_v54, %v5519_v34  ;;  %v3630_v15 = vrot.slane %v3616_v57, %v5519_v34  ;;  %v3707_v54 = vrot.slane %v3699_v25, %v5519_v34 }
 0x835   :  { %v3431_v31 = vpop.f32.mrf.mxu1 }
 0x836   :  { %v3647_v21 = vcombine.low %v3623_v28, %v3639_v52  ;;  %v3648_v23 = vcombine.high %v3623_v28, %v3639_v52  ;;  %v3663_v22 = vcombine.low %v3630_v15, %v3646_v40  ;;  %v3664_v27 = vcombine.high %v3630_v15, %v3646_v40 }
 0x837   :  { %v3683_v63 = vcombine.low %v3343_v13, %v3431_v31  ;;  %v3684_v43 = vcombine.high %v3343_v13, %v3431_v31  ;;  %v5009_v37 = vpop.f32.mrf.mxu1 }
 0x838   :  { %v3655_v9 = vrot.slane %v3647_v21, %v5538_v48  ;;  %v3662_v8 = vrot.slane %v3648_v23, %v5538_v48  ;;  %v3671_v39 = vrot.slane %v3663_v22, %v5538_v48  ;;  %v3678_v20 = vrot.slane %v3664_v27, %v5538_v48 }
 0x839   :  { %v3691_v24 = vrot.slane %v3683_v63, %v5519_v34  ;;  %v3698_v52 = vrot.slane %v3684_v43, %v5519_v34 }
 0x83a   :  { %v3887_v57 = vcombine.low %v3655_v9, %v3662_v8  ;;  %v4802_v6 = vcombine.high %v3655_v9, %v3662_v8  ;;  %v3903_v13 = vcombine.low %v3671_v39, %v3678_v20  ;;  %v4803_v37 = vcombine.high %v3671_v39, %v3678_v20 }
 0x83b   :  { %v3715_v40 = vcombine.low %v3691_v24, %v3707_v54  ;;  %v3716_v28 = vcombine.high %v3691_v24, %v3707_v54  ;;  %v3731_v15 = vcombine.low %v3698_v52, %v3714_v51  ;;  %v3732_v31 = vcombine.high %v3698_v52, %v3714_v51 }
 0x83c   :  { %v3894_v21 = vrot.slane %v3887_v57, %v5519_v34  ;;  %v3902_v23 = vrot.slane %v4802_v6, %v5519_v34  ;;  %v3910_v25 = vrot.slane %v3903_v13, %v5519_v34  ;;  %v3918_v12 = vrot.slane %v4803_v37, %v5519_v34 }
 0x83d   :  { %v3723_v22 = vrot.slane %v3715_v40, %v5538_v48  ;;  %v3730_v27 = vrot.slane %v3716_v28, %v5538_v48  ;;  %v3739_v63 = vrot.slane %v3731_v15, %v5538_v48  ;;  %v3746_v43 = vrot.slane %v3732_v31, %v5538_v48 }
 0x83e   :  { %v3919_v9 = vcombine.low %v3894_v21, %v3902_v23  ;;  %v3935_v8 = vcombine.low %v3910_v25, %v3918_v12  ;;  %v3920_v28 = vcombine.high %v3894_v21, %v3902_v23  ;;  %v3936_v15 = vcombine.high %v3910_v25, %v3918_v12 }
 0x83f   :  { %v3955_v39 = vcombine.low %v3723_v22, %v3730_v27  ;;  %v4804_v20 = vcombine.high %v3723_v22, %v3730_v27  ;;  %v3971_v54 = vcombine.low %v3739_v63, %v3746_v43  ;;  %v4805_v51 = vcombine.high %v3739_v63, %v3746_v43  ;;  %v5117_v43 = vld [vmem:[%s6766_s1 + $0x38] sm:$0xff]  }
 0x840   :  { %v6401_v24 = vrot.slane %v3919_v9, %v5538_v48  ;;  %v6404_v52 = vrot.slane %v3935_v8, %v5538_v48  ;;  %5016 = vmatprep.subr.bf16.mxu1 %v5117_v43  ;;  %v3950_v12 = vrot.slane %v3936_v15, %v5538_v48 }
 0x841   :  { %v3962_v57 = vrot.slane %v3955_v39, %v5519_v34  ;;  %v3970_v6 = vrot.slane %v4804_v20, %v5519_v34  ;;  %v3978_v13 = vrot.slane %v3971_v54, %v5519_v34  ;;  %v3986_v37 = vrot.slane %v4805_v51, %v5519_v34  ;;  %5017 = vmatpush3.bf16.msra.mxu1 %v5117_v43 }
 0x842   :  { %v3951_v40 = vcombine.low %v6401_v24, %v6404_v52  ;;  %v3934_v20 = vrot.slane %v3920_v28, %v5538_v48  ;;  %v3952_v21 = vcombine.high %v6401_v24, %v6404_v52 }
 0x843   :  { %v3987_v31 = vcombine.low %v3962_v57, %v3970_v6  ;;  %v4003_v22 = vcombine.low %v3978_v13, %v3986_v37  ;;  %v3988_v27 = vcombine.high %v3962_v57, %v3970_v6  ;;  %v4004_v63 = vcombine.high %v3978_v13, %v3986_v37  ;;  %v5118_v57 = vld [vmem:[%s6766_s1 + $0x30] sm:$0xff]  }
 0x844   :  { %v3953_v6 = vcombine.low %v3934_v20, %v3950_v12  ;;  %5018 = vmatprep.subr.bf16.mxu1 %v5118_v57  ;;  %v3954_v24 = vcombine.high %v3934_v20, %v3950_v12 }
 0x845   :  { %v3995_v9 = vrot.slane %v3987_v31, %v5538_v48  ;;  %v4011_v8 = vrot.slane %v4003_v22, %v5538_v48  ;;  %v4002_v39 = vrot.slane %v3988_v27, %v5538_v48  ;;  %v4018_v34 = vrot.slane %v4004_v63, %v5538_v48  ;;  %5019 = vmatpush3.bf16.msra.mxu1 %v5118_v57 }
 0x847   :  { %v4020_v23 = vcombine.high %v3995_v9, %v4011_v8  ;;  %v4019_v25 = vcombine.low %v3995_v9, %v4011_v8  ;;  %v4021_v51 = vcombine.low %v4002_v39, %v4018_v34  ;;  %v4022_v37 = vcombine.high %v4002_v39, %v4018_v34 }
 0x849   :  { %v5094_v54 = vpack.i.bf16 %v4020_v23, %v3952_v21  ;;  %v5099_v13 = vpack.i.bf16 %v4021_v51, %v3953_v6  ;;  %v5104_v52 = vpack.i.bf16 %v4022_v37, %v3954_v24 }
 0x84b   :  { %5095 = vrot.lane.b32.xlu1 %v5094_v54, %s5293_s26 }
 0x84f   :  { %5100 = vrot.lane.b32.xlu1 %v5099_v13, %s5292_s25 }
 0x853   :  { %5105 = vrot.lane.b32.xlu1 %v5104_v52, %s5294_s27 }
 0x87d   :  { %v5086_v28 = vpop.permute.xlu1 %5085  ;;  %v5081_v15 = vpop.permute.xlu0 %5080 }
 0x87e   :  { %v5083_v31 = vunpack.i.h.bf16 %v5081_v15  ;;  %v5082_v22 = vunpack.i.l.bf16 %v5081_v15  ;;  %v5088_v27 = vunpack.i.h.bf16 %v5086_v28  ;;  %v5087_v63 = vunpack.i.l.bf16 %v5086_v28 }
 0x880   :  { %v4072_v43 = vsel %vm2139_vm3, %v3883_v5, %v5083_v31  ;;  %v4071_v9 = vsel %vm2139_vm3, %v3815_v42, %v5082_v22 }
 0x881   :  { %v5091_v8 = vpop.permute.xlu0 %5090  ;;  %v4075_v20 = vsel %vm2516_vm4, %v4071_v9, %v5087_v63  ;;  %v4076_v21 = vsel %vm2516_vm4, %v4072_v43, %v5088_v27 }
 0x882   :  { %v5093_v39 = vunpack.i.h.bf16 %v5091_v8  ;;  %v5092_v34 = vunpack.i.l.bf16 %v5091_v8 }
 0x884   :  { %v4080_v23 = vsel %vm4079_vm5, %v4075_v20, %v5092_v34  ;;  %v4081_v12 = vsel %vm4079_vm5, %v4076_v21, %v5093_v39 }
 0x885   :  { %v4088_v59 = vpack.c.bf16 %v4081_v12, %v4080_v23 }
 0x887   :  { %5020 = vmatprep.mubr.msk.bf16.mxu1 %vm129_vm1, %v4088_v59 }
 0x8bd   :  { %v5096_v33 = vpop.permute.xlu1 %5095 }
 0x8be   :  { %v5098_v44 = vunpack.i.h.bf16 %v5096_v33  ;;  %v5097_v2 = vunpack.i.l.bf16 %v5096_v33 }
 0x8c0   :  { %v4073_v57 = vsel %vm2139_vm3, %v3951_v40, %v5097_v2  ;;  %v4074_v6 = vsel %vm2139_vm3, %v4019_v25, %v5098_v44  ;;  %v4806_v40 = vld [vmem:[%s6767_s2 + $0x6] ss:$0 sm:$0xff] }
 0x8c1   :  { %v5101_v5 = vpop.permute.xlu1 %5100 }
 0x8c2   :  { %v5103_v42 = vunpack.i.h.bf16 %v5101_v5  ;;  %v5102_v54 = vunpack.i.l.bf16 %v5101_v5 }
 0x8c4   :  { %v4077_v24 = vsel %vm2516_vm4, %v4073_v57, %v5102_v54  ;;  %v4078_v52 = vsel %vm2516_vm4, %v4074_v6, %v5103_v42 }
 0x8c5   :  { %v5106_v51 = vpop.permute.xlu1 %5105 }
 0x8c6   :  { %v5108_v13 = vunpack.i.h.bf16 %v5106_v51  ;;  %v5107_v37 = vunpack.i.l.bf16 %v5106_v51 }
 0x8c8   :  { %v4082_v28 = vsel %vm4079_vm5, %v4077_v24, %v5107_v37  ;;  %v4083_v15 = vsel %vm4079_vm5, %v4078_v52, %v5108_v13 }
 0x8c9   :  { %v4089_v31 = vpack.c.bf16 %v4083_v15, %v4082_v28 }
 0x8cb   :  { %5021 = vmatmul.mubr.msk.bf16.vlgmr.msra.gmra.mxu1 %vm129_vm1, %v4089_v31 }
 0x98b   :  { %v5022_v22 = vpop.f32.mrf.mxu1 }
 0x98c   :  { %v4156_v25 = vadd.f32 %v5022_v22, %v4806_v40 }
 0x98d   :  { %v4147_v27 = vpop.f32.mrf.mxu1 }
 0x98e   :  { %v4148_v63 = vadd.f32 %v4806_v40, %v4147_v27  ;;  %v6456_v39 = vadd.f32 %v4156_v25, %v5375_v3  ;;  %v5119_v27 = vld [vmem:[%s6766_s1 + $0x48] sm:$0xff]   ;;  %v5120_v25 = vld [vmem:[%s6766_s1 + $0x40] sm:$0xff]  }
 0x98f   :  { %v5023_v43 = vpop.f32.mrf.mxu1  ;;  %5024 = vmatprep.subr.bf16.mxu0 %v5119_v27 }
 0x990   :  { %v6453_v9 = vadd.f32 %v4148_v63, %v5369_v58  ;;  %v4159_v34 = vadd.f32 %v5023_v43, %v4806_v40  ;;  %v4174_v59 = vsel %vm129_vm1, %v6456_v39, 0.0  ;;  %5025 = vmatpush3.bf16.msra.mxu0 %v5119_v27 }
 0x991   :  { %v4150_v8 = vpop.f32.mrf.mxu1  ;;  %5026 = vmatprep.subr.bf16.mxu0 %v5120_v25 }
 0x992   :  { %v4151_v20 = vadd.f32 %v4806_v40, %v4150_v8  ;;  %v4168_v21 = vsel %vm129_vm1, %v6453_v9, 0.0  ;;  %v6464_v12 = vadd.f32 %v4159_v34, %v5381_v7 }
 0x993   :  { %4169 = vadd.xlane.f32.xlu0 %v4168_v21 }
 0x994   :  { %v6461_v23 = vadd.f32 %v4151_v20, %v5373_v1  ;;  %v4177_v3 = vsel %vm129_vm1, %v6464_v12, 0.0  ;;  %5027 = vmatpush3.bf16.msra.mxu0 %v5120_v25 }
 0x995   :  { %5052 = vmatprep.subr.bf16.mxu0 %v6777_v26 }
 0x996   :  { %v4171_v58 = vsel %vm129_vm1, %v6461_v23, 0.0 }
 0x997   :  { %4172 = vadd.xlane.f32.xlu1 %v4171_v58  ;;  %4175 = vadd.xlane.f32.xlu0 %v4174_v59 }
 0x99b   :  { %4178 = vadd.xlane.f32.xlu0 %v4177_v3 }
 0xa1c   :  { %v4170_v33 = vpop.xlane.xlu0 %4169 }
 0xa1d   :  { %v4180_v5 = vmul.f32 0.03125, %v4170_v33 }
 0xa1f   :  { %v4184_v1 = vsub.f32 %v6453_v9, %v4180_v5 }
 0xa20   :  { %v4173_v44 = vpop.xlane.xlu1 %4172  ;;  %v4176_v2 = vpop.xlane.xlu0 %4175 }
 0xa21   :  { %v4181_v7 = vmul.f32 0.03125, %v4173_v44  ;;  %v4182_v42 = vmul.f32 0.03125, %v4176_v2  ;;  %v4188_v54 = vmul.f32 %v4184_v1, %v4184_v1 }
 0xa23   :  { %v4185_v51 = vsub.f32 %v6461_v23, %v4181_v7  ;;  %v4186_v57 = vsub.f32 %v6456_v39, %v4182_v42  ;;  %v4192_v6 = vsel %vm129_vm1, %v4188_v54, 0.0  ;;  %v4811_v42 = vld [vmem:[%s6767_s2 + $0x7] ss:$0 sm:$0xff] }
 0xa24   :  { %4193 = vadd.xlane.f32.xlu0 %v4192_v6  ;;  %v4179_v13 = vpop.xlane.xlu0 %4178 }
 0xa25   :  { %v4183_v37 = vmul.f32 0.03125, %v4179_v13  ;;  %v4189_v24 = vmul.f32 %v4185_v51, %v4185_v51  ;;  %v4190_v52 = vmul.f32 %v4186_v57, %v4186_v57 }
 0xa27   :  { %v4187_v28 = vsub.f32 %v6464_v12, %v4183_v37  ;;  %v4195_v15 = vsel %vm129_vm1, %v4189_v24, 0.0  ;;  %v4198_v31 = vsel %vm129_vm1, %v4190_v52, 0.0  ;;  %v4812_v52 = vld [vmem:[%s6767_s2 + $0x8] ss:$0 sm:$0xff] }
 0xa28   :  { %4196 = vadd.xlane.f32.xlu1 %v4195_v15  ;;  %4199 = vadd.xlane.f32.xlu0 %v4198_v31 }
 0xa29   :  { %v4191_v22 = vmul.f32 %v4187_v28, %v4187_v28 }
 0xa2b   :  { %v4201_v40 = vsel %vm129_vm1, %v4191_v22, 0.0 }
 0xa2c   :  { %4202 = vadd.xlane.f32.xlu1 %v4201_v40 }
 0xaad   :  { %v4194_v63 = vpop.xlane.xlu0 %4193 }
 0xaae   :  { %v4204_v43 = vmul.f32 0.03125, %v4194_v63 }
 0xab0   :  { %v4208_v8 = vadd.f32 1e-05, %v4204_v43 }
 0xab1   :  { %v4197_v34 = vpop.xlane.xlu1 %4196  ;;  %v4200_v20 = vpop.xlane.xlu0 %4199 }
 0xab2   :  { %5211 = vrsqrt.f32 %v4208_v8  ;;  %v4205_v21 = vmul.f32 0.03125, %v4197_v34  ;;  %v4206_v58 = vmul.f32 0.03125, %v4200_v20  ;;  %v5124_v20 = vld [vmem:[%s6766_s1 + $0x70] sm:$0xff]  }
 0xab4   :  { %v4209_v59 = vadd.f32 1e-05, %v4205_v21  ;;  %v4210_v3 = vadd.f32 1e-05, %v4206_v58  ;;  %v5125_v21 = vld [vmem:[%s6766_s1 + $0x68] sm:$0xff]   ;;  %v5126_v58 = vld [vmem:[%s6766_s1 + $0x60] sm:$0xff]  }
 0xab5   :  { %v4203_v33 = vpop.xlane.xlu1 %4202 }
 0xab6   :  { %5213 = vrsqrt.f32 %v4209_v59  ;;  %v4207_v5 = vmul.f32 0.03125, %v4203_v33  ;;  %v5127_v59 = vld [vmem:[%s6766_s1 + $0x58] sm:$0xff]   ;;  %v4813_v33 = vld [vmem:[%s6767_s2 + $0x9] ss:$0 sm:$0xff] }
 0xab7   :  { %5215 = vrsqrt.f32 %v4210_v3  ;;  %v5128_v3 = vld [vmem:[%s6766_s1 + $0x50] sm:$0xff]  }
 0xab8   :  { %v4211_v44 = vadd.f32 1e-05, %v4207_v5 }
 0xaba   :  { %5217 = vrsqrt.f32 %v4211_v44 }
 0xabf   :  { %v5212_v2 = vpop.eup %5211 }
 0xac0   :  { %v4216_v7 = vmul.f32 %v5212_v2, %v4184_v1 }
 0xac2   :  { %v4224_v37 = vmul.f32 %v4811_v42, %v4216_v7 }
 0xac3   :  { %v5214_v54 = vpop.eup %5213 }
 0xac4   :  { %v5216_v6 = vpop.eup %5215  ;;  %v4217_v13 = vmul.f32 %v5214_v54, %v4185_v51  ;;  %v4232_v40 = vadd.f32 %v4812_v52, %v4224_v37  ;;  %v5121_v51 = vld [vmem:[%s6766_s1 + $0x88] sm:$0xff]  }
 0xac5   :  { %v4218_v24 = vmul.f32 %v5216_v6, %v4186_v57  ;;  %5032 = vmatprep.subr.bf16.mxu1 %v5121_v51  ;;  %v5122_v57 = vld [vmem:[%s6766_s1 + $0x80] sm:$0xff]  }
 0xac6   :  { %v4225_v15 = vmul.f32 %v4811_v42, %v4217_v13  ;;  %5033 = vmatpush3.bf16.msra.mxu1 %v5121_v51 }
 0xac7   :  { %v5218_v31 = vpop.eup %5217  ;;  %v4226_v25 = vmul.f32 %v4811_v42, %v4218_v24  ;;  %5034 = vmatprep.subr.bf16.mxu1 %v5122_v57 }
 0xac8   :  { %v4219_v22 = vmul.f32 %v5218_v31, %v4187_v28  ;;  %v4233_v27 = vadd.f32 %v4812_v52, %v4225_v15  ;;  %v5123_v28 = vld [vmem:[%s6766_s1 + $0x78] sm:$0xff]  }
 0xac9   :  { %v4234_v43 = vadd.f32 %v4812_v52, %v4226_v25 }
 0xaca   :  { %v4236_v1 = vpack.c.bf16 %v4233_v27, %v4232_v40  ;;  %v4227_v63 = vmul.f32 %v4811_v42, %v4219_v22  ;;  %5035 = vmatpush3.bf16.msra.mxu1 %v5122_v57 }
 0xacb   :  { %5036 = vmatprep.subr.bf16.mxu1 %v5123_v28 }
 0xacc   :  { %5028 = vmatprep.mubr.msk.bf16.mxu0 %vm129_vm1, %v4236_v1  ;;  %v4235_v8 = vadd.f32 %v4812_v52, %v4227_v63 }
 0xace   :  { %v4237_v34 = vpack.c.bf16 %v4235_v8, %v4234_v43  ;;  %5037 = vmatpush3.bf16.msra.mxu1 %v5123_v28 }
 0xacf   :  { %5038 = vmatprep.subr.bf16.mxu1 %v5124_v20 }
 0xad0   :  { %5029 = vmatmul.mubr.msk.bf16.vlgmr.msra.gmra.mxu0 %vm129_vm1, %v4237_v34 }
 0xad1   :  { %5056 = vmatprep.mubr.msk.bf16.mxu0 %vm5289_vm2, %v6777_v26 }
 0xad2   :  { %5039 = vmatpush3.bf16.msra.mxu1 %v5124_v20 }
 0xad3   :  { %5040 = vmatprep.subr.bf16.mxu1 %v5125_v21 }
 0xad6   :  { %5041 = vmatpush3.bf16.msra.mxu1 %v5125_v21 }
 0xad7   :  { %5042 = vmatprep.subr.bf16.mxu1 %v5126_v58 }
 0xada   :  { %5043 = vmatpush3.bf16.msra.mxu1 %v5126_v58 }
 0xadb   :  { %5044 = vmatprep.subr.bf16.mxu1 %v5127_v59 }
 0xade   :  { %5045 = vmatpush3.bf16.msra.mxu1 %v5127_v59 }
 0xadf   :  { %5046 = vmatprep.subr.bf16.mxu1 %v5128_v3 }
 0xae2   :  { %5047 = vmatpush3.bf16.msra.mxu1 %v5128_v3 }
 0xb90   :  { %v5030_v5 = vpop.f32.mrf.mxu0 }
 0xb91   :  { %v4308_v44 = vadd.f32 %v5030_v5, %v4813_v33 }
 0xb92   :  { %v4299_v2 = vpop.f32.mrf.mxu0 }
 0xb93   :  { %v4316_v7 = vmul.f32 %v4308_v44, %v4308_v44  ;;  %v4300_v42 = vadd.f32 %v4813_v33, %v4299_v2 }
 0xb94   :  { %v5031_v54 = vpop.f32.mrf.mxu0 }
 0xb95   :  { %v4320_v6 = vmul.f32 %v4316_v7, %v4308_v44  ;;  %v4314_v13 = vmul.f32 %v4300_v42, %v4300_v42  ;;  %v4311_v37 = vadd.f32 %v5031_v54, %v4813_v33 }
 0xb96   :  { %v4302_v24 = vpop.f32.mrf.mxu0 }
 0xb97   :  { %v4324_v52 = vmul.f32 0.044715, %v4320_v6  ;;  %v4318_v15 = vmul.f32 %v4314_v13, %v4300_v42  ;;  %v4317_v31 = vmul.f32 %v4311_v37, %v4311_v37  ;;  %v4303_v22 = vadd.f32 %v4813_v33, %v4302_v24 }
 0xb99   :  { %v4328_v40 = vadd.f32 %v4324_v52, %v4308_v44  ;;  %v4322_v27 = vmul.f32 0.044715, %v4318_v15  ;;  %v4321_v25 = vmul.f32 %v4317_v31, %v4311_v37  ;;  %v4315_v1 = vmul.f32 %v4303_v22, %v4303_v22 }
 0xb9b   :  { %v4332_v63 = vmul.f32 0.7978846, %v4328_v40  ;;  %v4326_v43 = vadd.f32 %v4322_v27, %v4300_v42  ;;  %v4325_v8 = vmul.f32 0.044715, %v4321_v25  ;;  %v4319_v34 = vmul.f32 %v4315_v1, %v4303_v22 }
 0xb9d   :  { %v4330_v51 = vmul.f32 0.7978846, %v4326_v43  ;;  %v4329_v57 = vadd.f32 %v4325_v8, %v4311_v37  ;;  %v4323_v28 = vmul.f32 0.044715, %v4319_v34  ;;  %5219 = vtanh.f32 %v4332_v63  ;;  %v4818_v8 = vld [vmem:[%s6767_s2 + $0xa] ss:$0 sm:$0xff] }
 0xb9f   :  { %5221 = vtanh.f32 %v4330_v51  ;;  %v4333_v20 = vmul.f32 0.7978846, %v4329_v57  ;;  %v4327_v21 = vadd.f32 %v4323_v28, %v4303_v22 }
 0xba1   :  { %5223 = vtanh.f32 %v4333_v20  ;;  %v4331_v58 = vmul.f32 0.7978846, %v4327_v21 }
 0xba3   :  { %5225 = vtanh.f32 %v4331_v58 }
 0xbaa   :  { %v5220_v59 = vpop.eup %5219 }
 0xbab   :  { %v4340_v2 = vadd.f32 1.0, %v5220_v59 }
 0xbac   :  { %v5222_v3 = vpop.eup %5221 }
 0xbad   :  { %v4338_v33 = vadd.f32 1.0, %v5222_v3  ;;  %v4344_v52 = vmul.f32 0.5, %v4340_v2 }
 0xbae   :  { %v5224_v5 = vpop.eup %5223 }
 0xbaf   :  { %v4341_v7 = vadd.f32 1.0, %v5224_v5  ;;  %v4342_v24 = vmul.f32 0.5, %v4338_v33  ;;  %v4348_v25 = vmul.f32 %v4344_v52, %v4308_v44 }
 0xbb0   :  { %v5226_v54 = vpop.eup %5225 }
 0xbb1   :  { %v4345_v6 = vmul.f32 0.5, %v4341_v7  ;;  %v4339_v13 = vadd.f32 1.0, %v5226_v54  ;;  %v4346_v40 = vmul.f32 %v4342_v24, %v4300_v42 }
 0xbb3   :  { %v4343_v15 = vmul.f32 0.5, %v4339_v13  ;;  %v4349_v31 = vmul.f32 %v4345_v6, %v4311_v37 }
 0xbb5   :  { %v4347_v27 = vmul.f32 %v4343_v15, %v4303_v22  ;;  %v4367_v63 = vpack.c.bf16 %v4349_v31, %v4348_v25 }
 0xbb7   :  { %v4366_v1 = vpack.c.bf16 %v4347_v27, %v4346_v40 }
 0xbb9   :  { %5048 = vmatprep.mubr.bf16.mxu1 %v4366_v1 }
 0xbba   :  { %5049 = vmatmul.mubr.bf16.vlgmr.msra.gmra.mxu1 %v4367_v63 }
 0xc7a   :  { %v5050_v43 = vpop.f32.mrf.mxu1 }
 0xc7b   :  { %v4464_v51 = vadd.f32 %v5050_v43, %v4818_v8 }
 0xc7c   :  { %v4455_v34 = vpop.f32.mrf.mxu1 }
 0xc7d   :  { %v4456_v57 = vadd.f32 %v4818_v8, %v4455_v34  ;;  %v4472_v42 = vadd.f32 %v4464_v51, %v6456_v39  ;;  %v6559_v34 = vrot.slane %v2861_v17, %v5538_v48  ;;  %v6576_v17 = vrot.slane %v2929_v50, %v5538_v48 }
 0xc7e   :  { %v5051_v28 = vpop.f32.mrf.mxu1  ;;  %v2944_v50 = vrot.slane %v2930_v38, %v5538_v48  ;;  %v2892_v38 = vrot.slane %v2878_v32, %v5538_v48 }
 0xc7f   :  { %v4470_v20 = vadd.f32 %v4456_v57, %v6453_v9  ;;  %v4467_v37 = vadd.f32 %v5051_v28, %v4818_v8  ;;  %v4482_v33 = vsel %vm129_vm1, %v4472_v42, 0.0  ;;  %v2893_v51 = vcombine.high %v6559_v34, %v6777_v26 }
 0xc80   :  { %v4458_v21 = vpop.f32.mrf.mxu1  ;;  %v6567_v57 = vrot.slane %v2793_v10, %v5538_v48  ;;  %v2876_v10 = vrot.slane %v2862_v45, %v5538_v48  ;;  %v5129_v45 = vld [vmem:[%s6766_s1 + $0x98] sm:$0xff]  }
 0xc81   :  { %v4459_v44 = vadd.f32 %v4818_v8, %v4458_v21  ;;  %v4476_v22 = vsel %vm129_vm1, %v4470_v20, 0.0  ;;  %v4473_v59 = vadd.f32 %v4467_v37, %v6464_v12  ;;  %5053 = vmatpush3.bf16.msra.mxu0 %v5129_v45  ;;  %v2896_v37 = vcombine.high %v2892_v38, %v6777_v26 }
 0xc82   :  { %4477 = vadd.xlane.f32.xlu0 %v4476_v22  ;;  %v2825_v28 = vcombine.high %v6567_v57, %v6777_v26  ;;  %v2894_v21 = vcombine.high %v2876_v10, %v6777_v26  ;;  %5054 = vmatprep.subr.bf16.mxu0 %v6777_v26 }
 0xc83   :  { %v4471_v58 = vadd.f32 %v4459_v44, %v6461_v23  ;;  %v4485_v9 = vsel %vm129_vm1, %v4473_v59, 0.0 }
 0xc85   :  { %v4479_v3 = vsel %vm129_vm1, %v4471_v58, 0.0  ;;  %5055 = vmatpush3.bf16.msra.mxu0 %v5130_v56 }
 0xc86   :  { %4480 = vadd.xlane.f32.xlu1 %v4479_v3  ;;  %4483 = vadd.xlane.f32.xlu0 %v4482_v33 }
 0xc8a   :  { %4486 = vadd.xlane.f32.xlu1 %v4485_v9 }
 0xd0b   :  { %v4478_v5 = vpop.xlane.xlu0 %4477 }
 0xd0c   :  { %v4488_v39 = vmul.f32 0.03125, %v4478_v5  ;;  %v4827_v5 = vld [vmem:[%s6767_s2 + $0xb] ss:$0 sm:$0xff] }
 0xd0e   :  { %v6535_v2 = vsub.f32 %v4470_v20, %v4488_v39  ;;  %v2961_v20 = vcombine.high %v6576_v17, %v6777_v26 }
 0xd0f   :  { %v4481_v7 = vpop.xlane.xlu1 %4480  ;;  %v4484_v54 = vpop.xlane.xlu0 %4483 }
 0xd10   :  { %v4489_v6 = vmul.f32 0.03125, %v4481_v7  ;;  %v4490_v13 = vmul.f32 0.03125, %v4484_v54  ;;  %v4496_v23 = vmul.f32 %v6535_v2, %v6535_v2 }
 0xd12   :  { %v6539_v12 = vsub.f32 %v4471_v58, %v4489_v6  ;;  %v6541_v24 = vsub.f32 %v4472_v42, %v4490_v13  ;;  %v4500_v52 = vsel %vm129_vm1, %v4496_v23, 0.0  ;;  %v2962_v42 = vcombine.high %v2944_v50, %v6777_v26  ;;  %v4828_v6 = vld [vmem:[%s6767_s2 + $0xc] ss:$0 sm:$0xff] }
 0xd13   :  { %v4487_v15 = vpop.xlane.xlu1 %4486  ;;  %4501 = vadd.xlane.f32.xlu0 %v4500_v52 }
 0xd14   :  { %v4491_v31 = vmul.f32 0.03125, %v4487_v15  ;;  %v4497_v40 = vmul.f32 %v6539_v12, %v6539_v12  ;;  %v4498_v27 = vmul.f32 %v6541_v24, %v6541_v24 }
 0xd16   :  { %v6548_v25 = vsub.f32 %v4473_v59, %v4491_v31  ;;  %v4503_v1 = vsel %vm129_vm1, %v4497_v40, 0.0  ;;  %v4506_v63 = vsel %vm129_vm1, %v4498_v27, 0.0 }
 0xd17   :  { %4504 = vadd.xlane.f32.xlu1 %v4503_v1  ;;  %4507 = vadd.xlane.f32.xlu0 %v4506_v63 }
 0xd18   :  { %v4499_v43 = vmul.f32 %v6548_v25, %v6548_v25 }
 0xd1a   :  { %v4509_v8 = vsel %vm129_vm1, %v4499_v43, 0.0 }
 0xd1b   :  { %4510 = vadd.xlane.f32.xlu1 %v4509_v8 }
 0xd2c   :  { %2969 = vrot.lane.b32.xlu1 %v2893_v51, %s5292_s25 }
 0xd30   :  { %3023 = vrot.lane.b32.xlu1 %v2825_v28, %s5292_s25 }
 0xd34   :  { %3025 = vrot.lane.b32.xlu1 %v2961_v20, %s5292_s25 }
 0xd38   :  { %2977 = vrot.lane.b32.xlu1 %v2876_v10, %s5295_s14 }
 0xd3c   :  { %3033 = vrot.lane.b32.xlu1 %v2944_v50, %s5295_s14 }
 0xd40   :  { %2985 = vrot.lane.b32.xlu1 %v2894_v21, %s5296_s15 }
 0xd44   :  { %3041 = vrot.lane.b32.xlu1 %v2962_v42, %s5296_s15 }
 0xd48   :  { %2993 = vrot.lane.b32.xlu1 %v2885_v53, %s5288_s24 }
 0xd4c   :  { %3049 = vrot.lane.b32.xlu1 %v2953_v16, %s5288_s24 }
 0xd50   :  { %3001 = vrot.lane.b32.xlu1 %v2895_v47, %s5297_s18 }
 0xd54   :  { %3057 = vrot.lane.b32.xlu1 %v2963_v61, %s5297_s18 }
 0xd58   :  { %3009 = vrot.lane.b32.xlu1 %v2892_v38, %s5286_s23 }
 0xd5c   :  { %3065 = vrot.lane.b32.xlu1 %v6626_v60, %s5286_s23 }
 0xd60   :  { %3017 = vrot.lane.b32.xlu1 %v2896_v37, %s5283_s20 }
 0xd9c   :  { %v4502_v44 = vpop.xlane.xlu0 %4501 }
 0xd9d   :  { %v4512_v22 = vmul.f32 0.03125, %v4502_v44 }
 0xd9f   :  { %v4516_v58 = vadd.f32 1e-05, %v4512_v22 }
 0xda0   :  { %v4505_v14 = vpop.xlane.xlu1 %4504  ;;  %v4508_v19 = vpop.xlane.xlu0 %4507 }
 0xda1   :  { %5227 = vrsqrt.f32 %v4516_v58  ;;  %v4513_v32 = vmul.f32 0.03125, %v4505_v14  ;;  %v4514_v59 = vmul.f32 0.03125, %v4508_v19 }
 0xda3   :  { %v4517_v3 = vadd.f32 1e-05, %v4513_v32  ;;  %v4518_v33 = vadd.f32 1e-05, %v4514_v59 }
 0xda4   :  { %v4511_v30 = vpop.xlane.xlu1 %4510 }
 0xda5   :  { %5229 = vrsqrt.f32 %v4517_v3  ;;  %v4515_v4 = vmul.f32 0.03125, %v4511_v30 }
 0xda6   :  { %5231 = vrsqrt.f32 %v4518_v33  ;;  %v5298_v33 = vmov 1966171168  }
 0xda7   :  { %v4519_v55 = vadd.f32 1e-05, %v4515_v4  ;;  %v4640_v30 = vunpack.c.l.s4 %v5298_v33 }
 0xda9   :  { %5233 = vrsqrt.f32 %v4519_v55  ;;  %v4641_v4 = vunpack.c.0.s8 %v4640_v30  ;;  %v4829_v55 = vld [vmem:[%s6767_s2 + $0xd] ss:$0 sm:$0xff]  ;;  %s5299_s2 = smov [#allocation2]  }
 0xdae   :  { %v5228_v9 = vpop.eup %5227 }
 0xdaf   :  { %v4524_v39 = vmul.f32 %v5228_v9, %v6535_v2  ;;  %v6780_v9 = vld [vmem:[#allocation8_spill] sm:$0xff] }
 0xdb1   :  { %v4532_v7 = vmul.f32 %v4827_v5, %v4524_v39 }
 0xdb2   :  { %v5230_v54 = vpop.eup %5229 }
 0xdb3   :  { %v5232_v13 = vpop.eup %5231  ;;  %v4525_v23 = vmul.f32 %v5230_v54, %v6539_v12  ;;  %v4540_v15 = vadd.f32 %v4828_v6, %v4532_v7 }
 0xdb4   :  { %v4526_v52 = vmul.f32 %v5232_v13, %v6541_v24 }
 0xdb5   :  { %v4533_v31 = vmul.f32 %v4827_v5, %v4525_v23  ;;  %v4544_v2 = vsel %vm129_vm1, %v4540_v15, 0.0 }
 0xdb6   :  { %v5234_v40 = vpop.eup %5233  ;;  %v4534_v27 = vmul.f32 %v4827_v5, %v4526_v52 }
 0xdb7   :  { %v4541_v1 = vadd.f32 %v4828_v6, %v4533_v31  ;;  %v4527_v63 = vmul.f32 %v5234_v40, %v6548_v25  ;;  %v6659_v31 = vrot.slane %v2725_v49, %v5538_v48 }
 0xdb8   :  { %v4542_v8 = vadd.f32 %v4828_v6, %v4534_v27  ;;  %v2740_v27 = vrot.slane %v2726_v36, %v5538_v48  ;;  %v6783_v36 = vcombine.low %v6249_v0, %v6258_v46 }
 0xdb9   :  { %v4545_v43 = vsel %vm129_vm1, %v4541_v1, 0.0  ;;  %v4535_v51 = vmul.f32 %v4827_v5, %v4527_v63  ;;  %v6651_v5 = vsub.s32 %v4641_v4, %v6780_v9  ;;  %v2757_v40 = vcombine.high %v6659_v31, %v6777_v26 }
 0xdba   :  { %v4546_v28 = vadd.f32 %v4545_v43, %v4544_v2  ;;  %v4553_v12 = vsel %vm129_vm1, %v4542_v8, 0.0  ;;  %v6781_v1 = vcombine.high %v6220_v11, %v6223_v18  ;;  %v2758_v49 = vcombine.high %v2740_v27, %v6777_v26 }
 0xdbb   :  { %v4543_v20 = vadd.f32 %v4828_v6, %v4535_v51  ;;  %v2817_v11 = vrot.slane %v6783_v36, %v5538_v48  ;;  %v2759_v18 = vcombine.high %v2749_v41, %v6777_v26  ;;  %v6784_v8 = vcombine.high %v6203_v29, %v6198_v62 }
 0xdbc   :  { %v4547_v10 = vrot.slane %v4546_v28, 4  ;;  %v2808_v63 = vrot.slane %v6781_v1, %v5538_v48 }
 0xdbd   :  { %v4554_v24 = vsel %vm129_vm1, %v4543_v20, 0.0  ;;  %v2827_v43 = vcombine.high %v2817_v11, %v6777_v26  ;;  %v2756_v51 = vrot.slane %v6784_v8, %v5538_v48 }
 0xdbe   :  { %v4555_v50 = vadd.f32 %v4554_v24, %v4553_v12  ;;  %v4548_v21 = vadd.f32 %v4547_v10, %v4546_v28  ;;  %v2826_v2 = vcombine.high %v2808_v63, %v6777_v26  ;;  %v6785_v28 = vcombine.high %v6249_v0, %v6258_v46 }
 0xdbf   :  { %v2760_v10 = vcombine.high %v2756_v51, %v6777_v26 }
 0xdc0   :  { %v4549_v42 = vrot.slane %v4548_v21, 2  ;;  %v4556_v53 = vrot.slane %v4555_v50, 4  ;;  %v2824_v20 = vrot.slane %v6785_v28, %v5538_v48 }
 0xdc2   :  { %v4550_v16 = vadd.f32 %v4549_v42, %v4548_v21  ;;  %v4557_v45 = vadd.f32 %v4556_v53, %v4555_v50  ;;  %v2828_v12 = vcombine.high %v2824_v20, %v6777_v26 }
 0xdc4   :  { %v4551_v25 = vrot.slane %v4550_v16, 1  ;;  %v4558_v47 = vrot.slane %v4557_v45, 2 }
 0xdc6   :  { %v4552_v56 = vadd.f32 %v4551_v25, %v4550_v16  ;;  %v4559_v61 = vadd.f32 %v4558_v47, %v4557_v45  ;;  %v2964_v47 = vcombine.high %v6626_v60, %v6777_v26 }
 0xdc8   :  { %v4560_v38 = vrot.slane %v4559_v61, 1  ;;  %v4563_v37 = vmul.f32 0.0625, %v4552_v56 }
 0xdca   :  { %v4561_v44 = vadd.f32 %v4560_v38, %v4559_v61  ;;  %v4569_v58 = vpack.c.bf16 %v4563_v37, %v4563_v37  ;;  %v2970_v61 = vpop.permute.xlu1 %2969 }
 0xdcc   :  { %v4564_v22 = vmul.f32 0.0625, %v4561_v44  ;;  %v4578_v19 = vunpack.c.l.b16 %v4569_v58 }
 0xdce   :  { %v4570_v14 = vpack.c.bf16 %v4564_v22, %v4564_v22 }
 0xdd0   :  { %v4579_v32 = vunpack.c.l.b16 %v4570_v14 }
 0xdd2   :  { %v4581_v59 = vsel %vm4580_vm6, %v4579_v32, %v4578_v19 }
 0xdd3   :  { %v4582_v3 = vpack.c.b16 %v4581_v59, %v4581_v59 }
 0xdd5   :  { %5057 = vmatmul.mubr.msk.bf16.vlgmr.msra.gmra.mxu0 %vm129_vm1, %v4582_v3 }
 0xe95   :  { %v4632_v39 = vpop.f32.mrf.mxu0 }
 0xe96   :  { %v4633_v7 = vadd.f32 %v4829_v55, %v4632_v39 }
 0xe97   :  { %v5058_v54 = vpop.f32.mrf.mxu0 }
 0xe98   :  { %v4645_v6 = vrot.slane %v4633_v7, %v6651_v5  ;;  %v4666_v13 = vsel %vm4665_vm7, %v4633_v7, -inf }
 0xe99   :  { %4667 = vmax.xlane.f32.xlu0 %v4666_v13  ;;  %v4635_v23 = vpop.f32.mrf.mxu0 }
 0xe9a   :  { %4833 = vst.sshfl [vmem:[#allocation2] sm:$0x1 pattern:$0x73625140] %v4645_v6  ;;  %v4646_v52 = vcombine.high %v4645_v6, %v4645_v6 }
 0xe9b   :  { %v5059_v15 = vpop.f32.mrf.mxu0 }
 0xe9c   :  { %4834 = vst.sshfl [vmem:[#allocation2 + $0x1] sm:$0x1 pattern:$0x73625140] %v4646_v52 }
 0xeaf   :  { %2967 = vrot.lane.b32.xlu0 %v2757_v40, %s5292_s25 }
 0xeb3   :  { %2975 = vrot.lane.b32.xlu0 %v2740_v27, %s5295_s14 }
 0xeb7   :  { %3031 = vrot.lane.b32.xlu0 %v2808_v63, %s5295_s14 }
 0xebb   :  { %2983 = vrot.lane.b32.xlu0 %v2758_v49, %s5296_s15 }
 0xebf   :  { %3039 = vrot.lane.b32.xlu0 %v2826_v2, %s5296_s15 }
 0xec3   :  { %2991 = vrot.lane.b32.xlu0 %v2749_v41, %s5288_s24 }
 0xec7   :  { %3047 = vrot.lane.b32.xlu0 %v2817_v11, %s5288_s24 }
 0xecb   :  { %2999 = vrot.lane.b32.xlu0 %v2759_v18, %s5297_s18 }
 0xecf   :  { %3055 = vrot.lane.b32.xlu0 %v2827_v43, %s5297_s18 }
 0xed3   :  { %3007 = vrot.lane.b32.xlu0 %v2756_v51, %s5286_s23 }
 0xed7   :  { %3063 = vrot.lane.b32.xlu0 %v2824_v20, %s5286_s23  ;;  %s4709_s23 = sshll.u32 %s5299_s2, 4  ;;  %s4710_s23 = int_to_ptr.vmem [resolvable:$true] %s4709_s23 }
 0xed8   :  { %s5239_s24 = scalar_lea.vmem %s4710_s23, 32  ;;  %p5244_p1 = scmp.lt.s32.totalorder %s4710_s23, %s4710_s23 }
 0xed9   :  { %p5240_p0 = scmp.ne.s32.totalorder %s4710_s23, %s5239_s24  ;;  %p5245_p2 = scmp.lt.s32.totalorder %s5239_s24, %s5239_s24 }
 0xedb   :  { %3015 = vrot.lane.b32.xlu0 %v2760_v10, %s5283_s20  ;;  %p5246_p3 = por %p5245_p2, %p5244_p1 }
 0xedd   :  { %p5247_p4 = pnand %p5246_p3, %p5240_p0 }
 0xedf   :  { %3071 = vrot.lane.b32.xlu0 %v2828_v12, %s5283_s20 }
 0xf22   :  { %v4668_v24 = vpop.xlane.xlu0 %4667 }
 0xf23   :  { %v4669_v62 = vsub.f32 %v4633_v7, %v4668_v24 }
 0xf25   :  { %v4670_v29 = vmul.f32 1.442695, %v4669_v62 }
 0xf26   :  { %v2968_v50 = vpop.permute.xlu0 %2967 }
 0xf27   :  { %5235 = vpow2.f32 %v4670_v29 }
 0xf2a   :  { %v2976_v21 = vpop.permute.xlu0 %2975 }
 0xf2e   :  { %v3032_v42 = vpop.permute.xlu0 %3031 }
 0xf32   :  { %v2984_v53 = vpop.permute.xlu0 %2983 }
 0xf34   :  { %v6706_v0 = vpop.eup %5235 }
 0xf35   :  { %v4672_v48 = vsel %vm4665_vm7, %v6706_v0, 0.0 }
 0xf36   :  { %4673 = vadd.xlane.f32.xlu1 %v4672_v48  ;;  %v3040_v46 = vpop.permute.xlu0 %3039 }
 0xf3a   :  { %v2992_v16 = vpop.permute.xlu0 %2991 }
 0xf3e   :  { %v3048_v45 = vpop.permute.xlu0 %3047 }
 0xf42   :  { %v3000_v25 = vpop.permute.xlu0 %2999 }
 0xf46   :  { %v3056_v56 = vpop.permute.xlu0 %3055 }
 0xf47   :  { %3073 = vrot.lane.b32.xlu1 %v2964_v47, %s5283_s20 }
 0xf4a   :  { %v3008_v38 = vpop.permute.xlu0 %3007 }
 0xf4b   :  { %5250 = shalt.err (!%p5247_p4)
}
 0xf4c   :  { %s5300_s30 = smov 1   ;;  %v3024_v26 = vpop.permute.xlu1 %3023  ;;  %v3077_v44 = vsel %vm2516_vm4, %v6659_v31, %v2968_v50  ;;  %vm3081_vm8 = vcmask 392192   ;;  %vm3086_vm9 = vcmask 654336   ;;  %vm3089_vm10 = vcmask 785408   ;;  %s5301_s9 = smov [#allocation4]  }
 0xf4d   :  { %4715 = dma.vmem_to_hbm [thread:$0]  %s4710_s23, 32, %s6768_s3, [#allocation3], %s5292_s25, %s5292_s25, %s5300_s30   ;;  %v3095_v37 = vsel %vm2516_vm4, %v6567_v57, %v3024_v26  ;;  %v3079_v22 = vsel %vm129_vm1, %v3077_v44, %v2976_v21  ;;  %vm3092_vm11 = vcmask 916480   ;;  %v3078_v2 = vsel %vm2516_vm4, %v6559_v34, %v2970_v61 }
 0xf4e   :  { %v3064_v60 = vpop.permute.xlu0 %3063  ;;  %v3097_v58 = vsel %vm129_vm1, %v3095_v37, %v3032_v42  ;;  %v3082_v19 = vsel %vm3081_vm8, %v3079_v22, %v2984_v53  ;;  %s4721_s10 = sshll.u32 %s5301_s9, 4  ;;  %s4722_s10 = int_to_ptr.vmem [resolvable:$true] %s4721_s10 }
 0xf4f   :  { %v3099_v32 = vsel %vm3081_vm8, %v3097_v58, %v3040_v46  ;;  %v3084_v59 = vsel %vm71_vm0, %v3082_v19, %v2992_v16  ;;  %s5259_s11 = scalar_lea.vmem %s4722_s10, 32  ;;  %p5264_p6 = scmp.lt.s32.totalorder %s4722_s10, %s4722_s10 }
 0xf50   :  { %v3101_v3 = vsel %vm71_vm0, %v3099_v32, %v3048_v45  ;;  %v3087_v57 = vsel %vm3086_vm9, %v3084_v59, %v3000_v25  ;;  %v3026_v54 = vpop.permute.xlu1 %3025  ;;  %p5260_p5 = scmp.ne.s32.totalorder %s4722_s10, %s5259_s11  ;;  %p5265_p7 = scmp.lt.s32.totalorder %s5259_s11, %s5259_s11 }
 0xf51   :  { %v3103_v33 = vsel %vm3086_vm9, %v3101_v3, %v3056_v56  ;;  %v3090_v30 = vsel %vm3089_vm10, %v3087_v57, %v3008_v38  ;;  %v3096_v35 = vsel %vm2516_vm4, %v6576_v17, %v3026_v54 }
 0xf52   :  { %v3016_v14 = vpop.permute.xlu0 %3015  ;;  %v3105_v4 = vsel %vm3089_vm10, %v3103_v33, %v3064_v60  ;;  %p5266_p8 = por %p5265_p7, %p5264_p6 }
 0xf53   :  { %v3093_v9 = vsel %vm3092_vm11, %v3090_v30, %v3016_v14 }
 0xf54   :  { %v2978_v6 = vpop.permute.xlu1 %2977  ;;  %p5267_p9 = pnand %p5266_p8, %p5260_p5 }
 0xf55   :  { %v3080_v41 = vsel %vm129_vm1, %v3078_v2, %v2978_v6 }
 0xf56   :  { %v3072_v55 = vpop.permute.xlu0 %3071 }
 0xf57   :  { %v3107_v39 = vsel %vm3092_vm11, %v3105_v4, %v3072_v55 }
 0xf58   :  { %v3113_v7 = vcombine.low %v3093_v9, %v3107_v39  ;;  %v3034_v13 = vpop.permute.xlu1 %3033 }
 0xf59   :  { %v3098_v36 = vsel %vm129_vm1, %v3096_v35, %v3034_v13 }
 0xf5a   :  { %3117 = vst [vmem:[%s6770_s5] sm:$0xff] %v3113_v7 }
 0xf5c   :  { %v2986_v23 = vpop.permute.xlu1 %2985 }
 0xf5d   :  { %v3083_v18 = vsel %vm3081_vm8, %v3080_v41, %v2986_v23 }
 0xf60   :  { %v3042_v52 = vpop.permute.xlu1 %3041 }
 0xf61   :  { %v3100_v43 = vsel %vm3081_vm8, %v3098_v36, %v3042_v52 }
 0xf64   :  { %v2994_v15 = vpop.permute.xlu1 %2993 }
 0xf65   :  { %v3085_v8 = vsel %vm71_vm0, %v3083_v18, %v2994_v15 }
 0xf68   :  { %v3050_v31 = vpop.permute.xlu1 %3049 }
 0xf69   :  { %v3102_v51 = vsel %vm71_vm0, %v3100_v43, %v3050_v31 }
 0xf6c   :  { %v3002_v40 = vpop.permute.xlu1 %3001 }
 0xf6d   :  { %v3088_v28 = vsel %vm3086_vm9, %v3085_v8, %v3002_v40 }
 0xf70   :  { %v3058_v27 = vpop.permute.xlu1 %3057 }
 0xf71   :  { %v3104_v34 = vsel %vm3086_vm9, %v3102_v51, %v3058_v27 }
 0xf74   :  { %v3010_v1 = vpop.permute.xlu1 %3009 }
 0xf75   :  { %v3091_v17 = vsel %vm3089_vm10, %v3088_v28, %v3010_v1 }
 0xf78   :  { %v3066_v63 = vpop.permute.xlu1 %3065 }
 0xf79   :  { %v3106_v20 = vsel %vm3089_vm10, %v3104_v34, %v3066_v63 }
 0xf7c   :  { %v3018_v49 = vpop.permute.xlu1 %3017 }
 0xf7d   :  { %v3094_v12 = vsel %vm3092_vm11, %v3091_v17, %v3018_v49 }
 0xfbf   :  { %v4674_v11 = vpop.xlane.xlu1 %4673 }
 0xfc0   :  { %5237 = vrcp.f32 %v4674_v11 }
 0xfc3   :  { %v3074_v10 = vpop.permute.xlu1 %3073 }
 0xfc4   :  { %v3108_v24 = vsel %vm3092_vm11, %v3106_v20, %v3074_v10 }
 0xfc5   :  { %v3114_v62 = vcombine.low %v3094_v12, %v3108_v24 }
 0xfc7   :  { %3118 = vst [vmem:[%s6770_s5 + $0x8] sm:$0xff] %v3114_v62 }
 0xfcd   :  { %v5238_v29 = vpop.eup %5237 }
 0xfce   :  { %v4676_v50 = vmul.f32 %v5238_v29, %v6706_v0 }
 0xfd0   :  { %v4684_v21 = vrot.slane %v4676_v50, %v6651_v5 }
 0xfd2   :  { %v4685_v42 = vcombine.high %v4684_v21, %v4684_v21  ;;  %4835 = vst.sshfl [vmem:[#allocation4] sm:$0x1 pattern:$0x73625140] %v4684_v21 }
 0xfd4   :  { %4836 = vst.sshfl [vmem:[#allocation4 + $0x1] sm:$0x1 pattern:$0x73625140] %v4685_v42 }
 0xfd5   :  { %5270 = shalt.err (!%p5267_p9)
}
 0xfd6   :  { %4727 = dma.vmem_to_hbm [thread:$0]  %s4722_s10, 32, %s6769_s4, [#allocation5], %s5292_s25, %s5292_s25, %s5300_s30  }
 0xfd7   :  { %5279 = dma.done.wait [#allocation3], 32  }
 0xfd8   :  { %5280 = vsyncadd [#allocation3], 4294967264 }
 0xfd9   :  { %5281 = dma.done.wait [#allocation5], 32  }
 0xfda   :  { %5282 = vsyncadd [#allocation5], 4294967264 }
 0xfdb   :  { %4738 = vsyncpa [#allocation3], 1 }
 0xfdc   :  { %4739 = vsyncpa [#allocation5], 1 }

</bundles_post_ra>
